<compile_context>
chip_gen: v6e
topology: v6e:2x2x1
jax: 0.10.0
libtpu: 0.0.40
codegen_flags: <defaults>
</compile_context>

<pallas_src>
import functools
from typing import NamedTuple

import jax
import jax.numpy as jnp
from jax.experimental import pallas as pl
from jax.experimental.pallas import tpu as pltpu


# ----------------------------- in-kernel helpers (traced) -----------------------------

def _ln(x, g, b, eps=1e-5):
    """LayerNorm over last dim. x: [L, D], g/b: [1, D]."""
    mu = jnp.mean(x, axis=-1, keepdims=True)
    xc = x - mu
    var = jnp.mean(xc * xc, axis=-1, keepdims=True)
    return xc * jax.lax.rsqrt(var + eps) * g + b


def _transformer_stack(x, refs, depth, heads):
    """x: [L, D]; refs: tuple of depth-stacked weight refs; returns [L, D]."""
    (ln1g, ln1b, qkvw, qkvb, pw, pb,
     ln2g, ln2b, f1w, f1b, f2w, f2b, ng, nb) = refs
    L, D = x.shape
    Dh = D // heads
    scale = 1.0 / (Dh ** 0.5)

    for d in range(depth):
        # ---------------- attention ----------------
        h = _ln(x, ln1g[d], ln1b[d])                                       # [L, D]
        qkv = jnp.dot(h, qkvw[d], preferred_element_type=jnp.float32) + qkvb[d]  # [L, 3D]

        # TODO(synk): per-head 8-lane slices remain; a head-major batched
        # dot_general would need in-kernel relayouts or 3x more tiny matmuls
        # at Dh=8, so the lane slices are kept and the proj is fused instead.
        heads_out = []
        for hh in range(heads):
            q = qkv[:, hh * Dh:(hh + 1) * Dh]                              # [L, Dh]
            k = qkv[:, D + hh * Dh:D + (hh + 1) * Dh]
            v = qkv[:, 2 * D + hh * Dh:2 * D + (hh + 1) * Dh]
            s = jax.lax.dot_general(q, k, (((1,), (1,)), ((), ())),
                                    preferred_element_type=jnp.float32) * scale  # [L, L]
            s = s - jnp.max(s, axis=-1, keepdims=True)
            p = jnp.exp(s)
            # EUP-side approx reciprocal (use approx=False for bit-parity).
            p = p * pl.reciprocal(jnp.sum(p, axis=-1, keepdims=True), approx=True)
            heads_out.append(jnp.dot(p, v, preferred_element_type=jnp.float32))  # [L, Dh]
        o = jnp.concatenate(heads_out, axis=-1)                            # [L, D]
        # single output projection (1 MXU push instead of 4 per-head folds)
        x = x + jnp.dot(o, pw[d], preferred_element_type=jnp.float32) + pb[d]

        # ---------------- MLP ----------------
        h = _ln(x, ln2g[d], ln2b[d])
        h = jnp.dot(h, f1w[d], preferred_element_type=jnp.float32) + f1b[d]
        # TODO(synk): PyTorch nn.GELU defaults to exact erf; tanh approx used here.
        h = jax.nn.gelu(h, approximate=True)
        h = jnp.dot(h, f2w[d], preferred_element_type=jnp.float32) + f2b[d]
        x = x + h

    return _ln(x, ng[...], nb[...])


# ----------------------------- the fused MAE kernel -----------------------------

def _mae_fused_kernel(
        x_ref, idk_ref, idr_ref,
        eew_ref, eeb_ref, epos_ref,
        e_ln1g, e_ln1b, e_qkvw, e_qkvb, e_pw, e_pb,
        e_ln2g, e_ln2b, e_f1w, e_f1b, e_f2w, e_f2b, e_ng, e_nb,
        dew_ref, deb_ref, mtok_ref, dpos_ref,
        d_ln1g, d_ln1b, d_qkvw, d_qkvb, d_pw, d_pb,
        d_ln2g, d_ln2b, d_f1w, d_f1b, d_f2w, d_f2b, d_ng, d_nb,
        fpw_ref, fpb_ref,
        out_ref,
        *, enc_depth, enc_heads, dec_depth, dec_heads, len_keep):
    f32 = jnp.float32
    x = x_ref[...].astype(f32)                       # [T, N]  (also the loss target)
    T = x.shape[0]
    Lk = len_keep

    idk = idk_ref[...]                               # [Lk, 1] int32 (kept time-bins)
    idr = idr_ref[...]                               # [T, 1]  int32 (restore order)

    # ----- ids_keep gather as a one-hot matmul (no XLA gather) -----
    gcols = jax.lax.broadcasted_iota(jnp.int32, (Lk, T), 1)
    G = (idk == gcols).astype(f32)                   # [Lk, T]
    xk = jnp.dot(G, x, preferred_element_type=f32)                    # [Lk, N]
    posk = jnp.dot(G, epos_ref[...].astype(f32), preferred_element_type=f32)  # [Lk, De]

    # ----- token embed + bias + positional embed (kept tokens only) -----
    tok = (jnp.dot(xk, eew_ref[...].astype(f32), preferred_element_type=f32)
           + eeb_ref[...] + posk)                    # [Lk, De]

    # ----- encoder stack -----
    enc_refs = (e_ln1g, e_ln1b, e_qkvw, e_qkvb, e_pw, e_pb,
                e_ln2g, e_ln2b, e_f1w, e_f1b, e_f2w, e_f2b, e_ng, e_nb)
    lat = _transformer_stack(tok, enc_refs, enc_depth, enc_heads)     # [Lk, De]

    # ----- decoder embed (folded; latents never leave VMEM) -----
    xdec = (jnp.dot(lat, dew_ref[...].astype(f32), preferred_element_type=f32)
            + deb_ref[...])                          # [Lk, Dd]

    # ----- mask-token insert + ids_restore unshuffle (one-hot matmul) -----
    rcols = jax.lax.broadcasted_iota(jnp.int32, (T, Lk), 1)
    R = (idr == rcols).astype(f32)                   # [T, Lk]
    keep = (idr < Lk).astype(f32)                    # [T, 1]  1 = token was kept
    x_full = (jnp.dot(R, xdec, preferred_element_type=f32)
              + (1.0 - keep) * mtok_ref[...]         # mask_token rows
              + dpos_ref[...].astype(f32))           # [T, Dd]

    # ----- decoder stack -----
    dec_refs = (d_ln1g, d_ln1b, d_qkvw, d_qkvb, d_pw, d_pb,
                d_ln2g, d_ln2b, d_f1w, d_f1b, d_f2w, d_f2b, d_ng, d_nb)
    dec = _transformer_stack(x_full, dec_refs, dec_depth, dec_heads)  # [T, Dd]

    # ----- projection + PoissonNLL(log_input=True) masked partial sums -----
    pred = (jnp.dot(dec, fpw_ref[...].astype(f32), preferred_element_type=f32)
            + fpb_ref[...])                          # [T, N]
    mask = 1.0 - keep                                # [T, 1]
    loss = jnp.exp(pred) - x * pred                  # [T, N]
    lsum = jnp.sum(loss * mask)
    msum = jnp.sum(mask)

    lane = jax.lax.broadcasted_iota(jnp.int32, (1, 128), 1)
    out_ref[...] = jnp.where(lane == 0, lsum, jnp.where(lane == 1, msum, 0.0))


_STACK_PARAM_NAMES = ("ln1_g", "ln1_b", "qkv_w", "qkv_b", "proj_w", "proj_b",
                      "ln2_g", "ln2_b", "fc1_w", "fc1_b", "fc2_w", "fc2_b",
                      "norm_g", "norm_b")


def mae_fused(x, ids_keep, ids_restore, params, *, cfg, len_keep):
    """x: [B, T, N]; ids_keep: [B, Lk] int32; ids_restore: [B, T] int32 -> scalar loss."""
    B, T, N = x.shape
    Lk = len_keep
    idk = ids_keep.astype(jnp.int32).reshape(B, Lk, 1)
    idr = ids_restore.astype(jnp.int32).reshape(B, T, 1)

    enc_ws = [params["enc"][n] for n in _STACK_PARAM_NAMES]
    dec_ws = [params["dec"][n] for n in _STACK_PARAM_NAMES]
    shared = ([params["enc_embed_w"], params["enc_embed_b"], params["enc_pos"]]
              + enc_ws
              + [params["dec_embed_w"], params["dec_embed_b"],
                 params["mask_token"], params["dec_pos"]]
              + dec_ws
              + [params["proj_w"], params["proj_b"]])

    # TODO(synk): at real NDT sizes (D>=256, depth>=6) the depth-stacked
    # whole-array weight inputs should become a per-layer "arbitrary" grid axis
    # (and bf16 storage) so the fused kernel fits v7x's 64 MiB VMEM.
    def whole(arr):
        nd = arr.ndim
        return pl.BlockSpec(arr.shape, lambda b, _nd=nd: (0,) * _nd)

    kernel = functools.partial(
        _mae_fused_kernel,
        enc_depth=cfg.enc_depth, enc_heads=cfg.enc_heads,
        dec_depth=cfg.dec_depth, dec_heads=cfg.dec_heads, len_keep=Lk)

    part = pl.pallas_call(
        kernel,
        out_shape=jax.ShapeDtypeStruct((B, 1, 128), jnp.float32),
        grid=(B,),
        in_specs=[pl.BlockSpec((None, T, N), lambda b: (b, 0, 0)),
                  pl.BlockSpec((None, Lk, 1), lambda b: (b, 0, 0)),
                  pl.BlockSpec((None, T, 1), lambda b: (b, 0, 0))]
                 + [whole(a) for a in shared],
        out_specs=pl.BlockSpec((None, 1, 128), lambda b: (b, 0, 0)),
        compiler_params=pltpu.CompilerParams(dimension_semantics=("parallel",)),
    )(x, idk, idr, *shared)

    # final masked-mean: sum over batch partials, one divide in JAX
    return jnp.sum(part[:, 0, 0]) / jnp.sum(part[:, 0, 1])


# ----------------------------- params & JAX glue -----------------------------

class MAEConfig(NamedTuple):
    enc_depth: int = 2
    enc_heads: int = 4
    dec_depth: int = 1
    dec_heads: int = 4


def init_params(key, num_neurons=137, T=16,
                enc_dim=32, enc_depth=2, dec_dim=32, dec_depth=1, mlp_ratio=4):
    ks = iter(jax.random.split(key, 64))

    def w(shape):
        return 0.02 * jax.random.normal(next(ks), shape, jnp.float32)

    def stack(depth, d, ratio):
        return {
            "ln1_g": jnp.ones((depth, 1, d), jnp.float32),
            "ln1_b": jnp.zeros((depth, 1, d), jnp.float32),
            "qkv_w": w((depth, d, 3 * d)),
            "qkv_b": jnp.zeros((depth, 1, 3 * d), jnp.float32),
            "proj_w": w((depth, d, d)),
            "proj_b": jnp.zeros((depth, 1, d), jnp.float32),
            "ln2_g": jnp.ones((depth, 1, d), jnp.float32),
            "ln2_b": jnp.zeros((depth, 1, d), jnp.float32),
            "fc1_w": w((depth, d, ratio * d)),
            "fc1_b": jnp.zeros((depth, 1, ratio * d), jnp.float32),
            "fc2_w": w((depth, ratio * d, d)),
            "fc2_b": jnp.zeros((depth, 1, d), jnp.float32),
            "norm_g": jnp.ones((1, d), jnp.float32),
            "norm_b": jnp.zeros((1, d), jnp.float32),
        }

    return {
        "enc_embed_w": w((num_neurons, enc_dim)),
        "enc_embed_b": jnp.zeros((1, enc_dim), jnp.float32),
        "enc_pos": w((T, enc_dim)),
        "enc": stack(enc_depth, enc_dim, mlp_ratio),
        "dec_embed_w": w((enc_dim, dec_dim)),
        "dec_embed_b": jnp.zeros((1, dec_dim), jnp.float32),
        "mask_token": w((1, dec_dim)),
        "dec_pos": w((T, dec_dim)),
        "dec": stack(dec_depth, dec_dim, mlp_ratio),
        "proj_w": w((dec_dim, num_neurons)),
        "proj_b": jnp.zeros((1, num_neurons), jnp.float32),
    }


def random_masking_ids(key, B, T, mask_ratio):
    # TODO(synk): argsort-based random shuffling has no clean Pallas tile
    # mapping; id generation stays as tiny plain-JAX glue (everything after it
    # — gather, unshuffle, mask — runs inside the fused kernel).
    len_keep = int(T * (1.0 - mask_ratio))
    noise = jax.random.uniform(key, (B, T))
    ids_shuffle = jnp.argsort(noise, axis=1)
    ids_restore = jnp.argsort(ids_shuffle, axis=1)
    ids_keep = ids_shuffle[:, :len_keep]
    return ids_keep.astype(jnp.int32), ids_restore.astype(jnp.int32), len_keep


@functools.partial(jax.jit, static_argnames=("mask_ratio", "cfg"))
def mae_forward(x, params, mask_key, *, mask_ratio, cfg):
    B, T, N = x.shape
    ids_keep, ids_restore, len_keep = random_masking_ids(mask_key, B, T, mask_ratio)
    return mae_fused(x, ids_keep, ids_restore, params, cfg=cfg, len_keep=len_keep)


# ----------------------------- main -----------------------------

if __name__ == "__main__":
    key = jax.random.PRNGKey(0)
    k_x, k_mask, k_params = jax.random.split(key, 3)

    B, T, N = 2, 16, 137   # batch, time bins, neurons (proj output fixed at 137)
    x = jax.random.poisson(k_x, 2.0, (B, T, N)).astype(jnp.float32)

    cfg = MAEConfig(enc_depth=2, enc_heads=4, dec_depth=1, dec_heads=4)
    params = init_params(k_params, num_neurons=N, T=T,
                         enc_dim=32, enc_depth=cfg.enc_depth,
                         dec_dim=32, dec_depth=cfg.dec_depth, mlp_ratio=4)

    loss = mae_forward(x, params, k_mask, mask_ratio=0.1, cfg=cfg)
    loss = jax.block_until_ready(loss)
    assert jnp.isfinite(loss), "loss is not finite"
    print("KERNEL_OK")
</pallas_src>

<mosaic_0001>
module attributes {stable_mosaic.version = 11 : i64} {
  func.func @_mae_fused_kernel(%arg0: i32, %arg1: memref<1x16x137xf32, #tpu.memory_space<vmem>>, %arg2: memref<1x14x1xi32, #tpu.memory_space<vmem>>, %arg3: memref<1x16x1xi32, #tpu.memory_space<vmem>>, %arg4: memref<137x32xf32, #tpu.memory_space<vmem>>, %arg5: memref<1x32xf32, #tpu.memory_space<vmem>>, %arg6: memref<16x32xf32, #tpu.memory_space<vmem>>, %arg7: memref<2x1x32xf32, #tpu.memory_space<vmem>>, %arg8: memref<2x1x32xf32, #tpu.memory_space<vmem>>, %arg9: memref<2x32x96xf32, #tpu.memory_space<vmem>>, %arg10: memref<2x1x96xf32, #tpu.memory_space<vmem>>, %arg11: memref<2x32x32xf32, #tpu.memory_space<vmem>>, %arg12: memref<2x1x32xf32, #tpu.memory_space<vmem>>, %arg13: memref<2x1x32xf32, #tpu.memory_space<vmem>>, %arg14: memref<2x1x32xf32, #tpu.memory_space<vmem>>, %arg15: memref<2x32x128xf32, #tpu.memory_space<vmem>>, %arg16: memref<2x1x128xf32, #tpu.memory_space<vmem>>, %arg17: memref<2x128x32xf32, #tpu.memory_space<vmem>>, %arg18: memref<2x1x32xf32, #tpu.memory_space<vmem>>, %arg19: memref<1x32xf32, #tpu.memory_space<vmem>>, %arg20: memref<1x32xf32, #tpu.memory_space<vmem>>, %arg21: memref<32x32xf32, #tpu.memory_space<vmem>>, %arg22: memref<1x32xf32, #tpu.memory_space<vmem>>, %arg23: memref<1x32xf32, #tpu.memory_space<vmem>>, %arg24: memref<16x32xf32, #tpu.memory_space<vmem>>, %arg25: memref<1x1x32xf32, #tpu.memory_space<vmem>>, %arg26: memref<1x1x32xf32, #tpu.memory_space<vmem>>, %arg27: memref<1x32x96xf32, #tpu.memory_space<vmem>>, %arg28: memref<1x1x96xf32, #tpu.memory_space<vmem>>, %arg29: memref<1x32x32xf32, #tpu.memory_space<vmem>>, %arg30: memref<1x1x32xf32, #tpu.memory_space<vmem>>, %arg31: memref<1x1x32xf32, #tpu.memory_space<vmem>>, %arg32: memref<1x1x32xf32, #tpu.memory_space<vmem>>, %arg33: memref<1x32x128xf32, #tpu.memory_space<vmem>>, %arg34: memref<1x1x128xf32, #tpu.memory_space<vmem>>, %arg35: memref<1x128x32xf32, #tpu.memory_space<vmem>>, %arg36: memref<1x1x32xf32, #tpu.memory_space<vmem>>, %arg37: memref<1x32xf32, #tpu.memory_space<vmem>>, %arg38: memref<1x32xf32, #tpu.memory_space<vmem>>, %arg39: memref<32x137xf32, #tpu.memory_space<vmem>>, %arg40: memref<1x137xf32, #tpu.memory_space<vmem>>, %arg41: memref<1x1x128xf32, #tpu.memory_space<vmem>>) attributes {dimension_semantics = [#tpu.dimension_semantics<parallel>], iteration_bounds = array<i64: 2>, scalar_prefetch = 0 : i64, scratch_operands = 0 : i64, tpu.core_type = #tpu.core_type<tc>, window_params = [{transform_indices = @transform_0, window_bounds = array<i64: 1, 16, 137>}, {transform_indices = @transform_1, window_bounds = array<i64: 1, 14, 1>}, {transform_indices = @transform_2, window_bounds = array<i64: 1, 16, 1>}, {pipeline_mode = #tpu.pipeline_mode<synchronous>, transform_indices = @transform_3, window_bounds = array<i64: 137, 32>}, {pipeline_mode = #tpu.pipeline_mode<synchronous>, transform_indices = @transform_4, window_bounds = array<i64: 1, 32>}, {pipeline_mode = #tpu.pipeline_mode<synchronous>, transform_indices = @transform_5, window_bounds = array<i64: 16, 32>}, {pipeline_mode = #tpu.pipeline_mode<synchronous>, transform_indices = @transform_6, window_bounds = array<i64: 2, 1, 32>}, {pipeline_mode = #tpu.pipeline_mode<synchronous>, transform_indices = @transform_7, window_bounds = array<i64: 2, 1, 32>}, {pipeline_mode = #tpu.pipeline_mode<synchronous>, transform_indices = @transform_8, window_bounds = array<i64: 2, 32, 96>}, {pipeline_mode = #tpu.pipeline_mode<synchronous>, transform_indices = @transform_9, window_bounds = array<i64: 2, 1, 96>}, {pipeline_mode = #tpu.pipeline_mode<synchronous>, transform_indices = @transform_10, window_bounds = array<i64: 2, 32, 32>}, {pipeline_mode = #tpu.pipeline_mode<synchronous>, transform_indices = @transform_11, window_bounds = array<i64: 2, 1, 32>}, {pipeline_mode = #tpu.pipeline_mode<synchronous>, transform_indices = @transform_12, window_bounds = array<i64: 2, 1, 32>}, {pipeline_mode = #tpu.pipeline_mode<synchronous>, transform_indices = @transform_13, window_bounds = array<i64: 2, 1, 32>}, {pipeline_mode = #tpu.pipeline_mode<synchronous>, transform_indices = @transform_14, window_bounds = array<i64: 2, 32, 128>}, {pipeline_mode = #tpu.pipeline_mode<synchronous>, transform_indices = @transform_15, window_bounds = array<i64: 2, 1, 128>}, {pipeline_mode = #tpu.pipeline_mode<synchronous>, transform_indices = @transform_16, window_bounds = array<i64: 2, 128, 32>}, {pipeline_mode = #tpu.pipeline_mode<synchronous>, transform_indices = @transform_17, window_bounds = array<i64: 2, 1, 32>}, {pipeline_mode = #tpu.pipeline_mode<synchronous>, transform_indices = @transform_18, window_bounds = array<i64: 1, 32>}, {pipeline_mode = #tpu.pipeline_mode<synchronous>, transform_indices = @transform_19, window_bounds = array<i64: 1, 32>}, {pipeline_mode = #tpu.pipeline_mode<synchronous>, transform_indices = @transform_20, window_bounds = array<i64: 32, 32>}, {pipeline_mode = #tpu.pipeline_mode<synchronous>, transform_indices = @transform_21, window_bounds = array<i64: 1, 32>}, {pipeline_mode = #tpu.pipeline_mode<synchronous>, transform_indices = @transform_22, window_bounds = array<i64: 1, 32>}, {pipeline_mode = #tpu.pipeline_mode<synchronous>, transform_indices = @transform_23, window_bounds = array<i64: 16, 32>}, {pipeline_mode = #tpu.pipeline_mode<synchronous>, transform_indices = @transform_24, window_bounds = array<i64: 1, 1, 32>}, {pipeline_mode = #tpu.pipeline_mode<synchronous>, transform_indices = @transform_25, window_bounds = array<i64: 1, 1, 32>}, {pipeline_mode = #tpu.pipeline_mode<synchronous>, transform_indices = @transform_26, window_bounds = array<i64: 1, 32, 96>}, {pipeline_mode = #tpu.pipeline_mode<synchronous>, transform_indices = @transform_27, window_bounds = array<i64: 1, 1, 96>}, {pipeline_mode = #tpu.pipeline_mode<synchronous>, transform_indices = @transform_28, window_bounds = array<i64: 1, 32, 32>}, {pipeline_mode = #tpu.pipeline_mode<synchronous>, transform_indices = @transform_29, window_bounds = array<i64: 1, 1, 32>}, {pipeline_mode = #tpu.pipeline_mode<synchronous>, transform_indices = @transform_30, window_bounds = array<i64: 1, 1, 32>}, {pipeline_mode = #tpu.pipeline_mode<synchronous>, transform_indices = @transform_31, window_bounds = array<i64: 1, 1, 32>}, {pipeline_mode = #tpu.pipeline_mode<synchronous>, transform_indices = @transform_32, window_bounds = array<i64: 1, 32, 128>}, {pipeline_mode = #tpu.pipeline_mode<synchronous>, transform_indices = @transform_33, window_bounds = array<i64: 1, 1, 128>}, {pipeline_mode = #tpu.pipeline_mode<synchronous>, transform_indices = @transform_34, window_bounds = array<i64: 1, 128, 32>}, {pipeline_mode = #tpu.pipeline_mode<synchronous>, transform_indices = @transform_35, window_bounds = array<i64: 1, 1, 32>}, {pipeline_mode = #tpu.pipeline_mode<synchronous>, transform_indices = @transform_36, window_bounds = array<i64: 1, 32>}, {pipeline_mode = #tpu.pipeline_mode<synchronous>, transform_indices = @transform_37, window_bounds = array<i64: 1, 32>}, {pipeline_mode = #tpu.pipeline_mode<synchronous>, transform_indices = @transform_38, window_bounds = array<i64: 32, 137>}, {pipeline_mode = #tpu.pipeline_mode<synchronous>, transform_indices = @transform_39, window_bounds = array<i64: 1, 137>}, {transform_indices = @transform_40, window_bounds = array<i64: 1, 1, 128>}]} {
    %c0 = arith.constant 0 : index
    %c0_0 = arith.constant 0 : index
    %c0_1 = arith.constant 0 : index
    %0 = vector.load %arg1[%c0, %c0_0, %c0_1] : memref<1x16x137xf32, #tpu.memory_space<vmem>>, vector<1x16x137xf32>
    %1 = vector.shape_cast %0 : vector<1x16x137xf32> to vector<16x137xf32>
    %c0_2 = arith.constant 0 : index
    %c0_3 = arith.constant 0 : index
    %c0_4 = arith.constant 0 : index
    %2 = vector.load %arg2[%c0_2, %c0_3, %c0_4] : memref<1x14x1xi32, #tpu.memory_space<vmem>>, vector<1x14x1xi32>
    %3 = vector.shape_cast %2 : vector<1x14x1xi32> to vector<14x1xi32>
    %c0_5 = arith.constant 0 : index
    %c0_6 = arith.constant 0 : index
    %c0_7 = arith.constant 0 : index
    %4 = vector.load %arg3[%c0_5, %c0_6, %c0_7] : memref<1x16x1xi32, #tpu.memory_space<vmem>>, vector<1x16x1xi32>
    %5 = vector.shape_cast %4 : vector<1x16x1xi32> to vector<16x1xi32>
    %6 = tpu.iota {dimensions = array<i32: 1>} : vector<14x16xi32>
    %7 = vector.broadcast %3 : vector<14x1xi32> to vector<14x16xi32>
    %8 = arith.cmpi eq, %7, %6 : vector<14x16xi32>
    %9 = arith.extui %8 : vector<14x16xi1> to vector<14x16xi32>
    %10 = arith.sitofp %9 : vector<14x16xi32> to vector<14x16xf32>
    %cst = arith.constant dense<0.000000e+00> : vector<14x137xf32>
    %11 = tpu.matmul %10, %1, %cst {dimension_numbers = #tpu.dot_dimension_numbers<[1], [0], [0], [1], [0, 0, 1, 1], [], []>} : vector<14x16xf32>, vector<16x137xf32>, vector<14x137xf32> -> vector<14x137xf32>
    %c0_8 = arith.constant 0 : index
    %c0_9 = arith.constant 0 : index
    %12 = vector.load %arg6[%c0_8, %c0_9] : memref<16x32xf32, #tpu.memory_space<vmem>>, vector<16x32xf32>
    %cst_10 = arith.constant dense<0.000000e+00> : vector<14x32xf32>
    %13 = tpu.matmul %10, %12, %cst_10 {dimension_numbers = #tpu.dot_dimension_numbers<[1], [0], [0], [1], [0, 0, 1, 1], [], []>} : vector<14x16xf32>, vector<16x32xf32>, vector<14x32xf32> -> vector<14x32xf32>
    %c0_11 = arith.constant 0 : index
    %c0_12 = arith.constant 0 : index
    %14 = vector.load %arg4[%c0_11, %c0_12] : memref<137x32xf32, #tpu.memory_space<vmem>>, vector<137x32xf32>
    %cst_13 = arith.constant dense<0.000000e+00> : vector<14x32xf32>
    %15 = tpu.matmul %11, %14, %cst_13 {dimension_numbers = #tpu.dot_dimension_numbers<[1], [0], [0], [1], [0, 0, 1, 1], [], []>} : vector<14x137xf32>, vector<137x32xf32>, vector<14x32xf32> -> vector<14x32xf32>
    %c0_14 = arith.constant 0 : index
    %c0_15 = arith.constant 0 : index
    %16 = vector.load %arg5[%c0_14, %c0_15] : memref<1x32xf32, #tpu.memory_space<vmem>>, vector<1x32xf32>
    %17 = vector.broadcast %16 : vector<1x32xf32> to vector<14x32xf32>
    %18 = arith.addf %15, %17 : vector<14x32xf32>
    %19 = arith.addf %18, %13 : vector<14x32xf32>
    %c0_16 = arith.constant 0 : index
    %c0_17 = arith.constant 0 : index
    %c0_18 = arith.constant 0 : index
    %20 = vector.load %arg7[%c0_16, %c0_17, %c0_18] : memref<2x1x32xf32, #tpu.memory_space<vmem>>, vector<1x1x32xf32>
    %21 = vector.shape_cast %20 : vector<1x1x32xf32> to vector<1x32xf32>
    %c0_19 = arith.constant 0 : index
    %c0_20 = arith.constant 0 : index
    %c0_21 = arith.constant 0 : index
    %22 = vector.load %arg8[%c0_19, %c0_20, %c0_21] : memref<2x1x32xf32, #tpu.memory_space<vmem>>, vector<1x1x32xf32>
    %23 = vector.shape_cast %22 : vector<1x1x32xf32> to vector<1x32xf32>
    %cst_22 = arith.constant dense<0.000000e+00> : vector<14xf32>
    %24 = vector.multi_reduction <add>, %19, %cst_22 [1] : vector<14x32xf32> to vector<14xf32>
    %25 = vector.shape_cast %24 : vector<14xf32> to vector<14x1xf32>
    %cst_23 = arith.constant 3.200000e+01 : f32
    %26 = vector.broadcast %cst_23 : f32 to vector<14x1xf32>
    %27 = arith.divf %25, %26 : vector<14x1xf32>
    %28 = vector.broadcast %27 : vector<14x1xf32> to vector<14x32xf32>
    %29 = arith.subf %19, %28 : vector<14x32xf32>
    %30 = arith.mulf %29, %29 : vector<14x32xf32>
    %cst_24 = arith.constant dense<0.000000e+00> : vector<14xf32>
    %31 = vector.multi_reduction <add>, %30, %cst_24 [1] : vector<14x32xf32> to vector<14xf32>
    %32 = vector.shape_cast %31 : vector<14xf32> to vector<14x1xf32>
    %cst_25 = arith.constant 3.200000e+01 : f32
    %33 = vector.broadcast %cst_25 : f32 to vector<14x1xf32>
    %34 = arith.divf %32, %33 : vector<14x1xf32>
    %cst_26 = arith.constant 9.99999974E-6 : f32
    %35 = vector.broadcast %cst_26 : f32 to vector<14x1xf32>
    %36 = arith.addf %34, %35 : vector<14x1xf32>
    %37 = math.rsqrt %36 : vector<14x1xf32>
    %38 = vector.broadcast %37 : vector<14x1xf32> to vector<14x32xf32>
    %39 = arith.mulf %29, %38 : vector<14x32xf32>
    %40 = vector.broadcast %21 : vector<1x32xf32> to vector<14x32xf32>
    %41 = arith.mulf %39, %40 : vector<14x32xf32>
    %42 = vector.broadcast %23 : vector<1x32xf32> to vector<14x32xf32>
    %43 = arith.addf %41, %42 : vector<14x32xf32>
    %c0_27 = arith.constant 0 : index
    %c0_28 = arith.constant 0 : index
    %c0_29 = arith.constant 0 : index
    %44 = vector.load %arg9[%c0_27, %c0_28, %c0_29] : memref<2x32x96xf32, #tpu.memory_space<vmem>>, vector<1x32x96xf32>
    %45 = vector.shape_cast %44 : vector<1x32x96xf32> to vector<32x96xf32>
    %cst_30 = arith.constant dense<0.000000e+00> : vector<14x96xf32>
    %46 = tpu.matmul %43, %45, %cst_30 {dimension_numbers = #tpu.dot_dimension_numbers<[1], [0], [0], [1], [0, 0, 1, 1], [], []>} : vector<14x32xf32>, vector<32x96xf32>, vector<14x96xf32> -> vector<14x96xf32>
    %c0_31 = arith.constant 0 : index
    %c0_32 = arith.constant 0 : index
    %c0_33 = arith.constant 0 : index
    %47 = vector.load %arg10[%c0_31, %c0_32, %c0_33] : memref<2x1x96xf32, #tpu.memory_space<vmem>>, vector<1x1x96xf32>
    %48 = vector.shape_cast %47 : vector<1x1x96xf32> to vector<1x96xf32>
    %49 = vector.broadcast %48 : vector<1x96xf32> to vector<14x96xf32>
    %50 = arith.addf %46, %49 : vector<14x96xf32>
    %51 = vector.extract_strided_slice %50 {offsets = [0, 0], sizes = [14, 8], strides = [1, 1]} : vector<14x96xf32> to vector<14x8xf32>
    %52 = vector.extract_strided_slice %50 {offsets = [0, 32], sizes = [14, 8], strides = [1, 1]} : vector<14x96xf32> to vector<14x8xf32>
    %53 = vector.extract_strided_slice %50 {offsets = [0, 64], sizes = [14, 8], strides = [1, 1]} : vector<14x96xf32> to vector<14x8xf32>
    %cst_34 = arith.constant dense<0.000000e+00> : vector<14x14xf32>
    %54 = tpu.matmul %51, %52, %cst_34 {dimension_numbers = #tpu.dot_dimension_numbers<[1], [1], [0], [0], [0, 0, 1, 0], [], []>} : vector<14x8xf32>, vector<14x8xf32>, vector<14x14xf32> -> vector<14x14xf32>
    %cst_35 = arith.constant 0.353553385 : f32
    %55 = vector.broadcast %cst_35 : f32 to vector<14x14xf32>
    %56 = arith.mulf %54, %55 : vector<14x14xf32>
    %cst_36 = arith.constant dense<0xFF800000> : vector<14xf32>
    %57 = vector.multi_reduction <maximumf>, %56, %cst_36 [1] : vector<14x14xf32> to vector<14xf32>
    %58 = vector.shape_cast %57 : vector<14xf32> to vector<14x1xf32>
    %59 = vector.broadcast %58 : vector<14x1xf32> to vector<14x14xf32>
    %60 = arith.subf %56, %59 : vector<14x14xf32>
    %61 = math.exp %60 : vector<14x14xf32>
    %cst_37 = arith.constant dense<0.000000e+00> : vector<14xf32>
    %62 = vector.multi_reduction <add>, %61, %cst_37 [1] : vector<14x14xf32> to vector<14xf32>
    %63 = vector.shape_cast %62 : vector<14xf32> to vector<14x1xf32>
    %64 = tpu.reciprocal %63 {approx = true} : vector<14x1xf32> -> vector<14x1xf32>
    %65 = vector.broadcast %64 : vector<14x1xf32> to vector<14x14xf32>
    %66 = arith.mulf %61, %65 : vector<14x14xf32>
    %cst_38 = arith.constant dense<0.000000e+00> : vector<14x8xf32>
    %67 = tpu.matmul %66, %53, %cst_38 {dimension_numbers = #tpu.dot_dimension_numbers<[1], [0], [0], [1], [0, 0, 1, 1], [], []>} : vector<14x14xf32>, vector<14x8xf32>, vector<14x8xf32> -> vector<14x8xf32>
    %68 = vector.extract_strided_slice %50 {offsets = [0, 8], sizes = [14, 8], strides = [1, 1]} : vector<14x96xf32> to vector<14x8xf32>
    %69 = vector.extract_strided_slice %50 {offsets = [0, 40], sizes = [14, 8], strides = [1, 1]} : vector<14x96xf32> to vector<14x8xf32>
    %70 = vector.extract_strided_slice %50 {offsets = [0, 72], sizes = [14, 8], strides = [1, 1]} : vector<14x96xf32> to vector<14x8xf32>
    %cst_39 = arith.constant dense<0.000000e+00> : vector<14x14xf32>
    %71 = tpu.matmul %68, %69, %cst_39 {dimension_numbers = #tpu.dot_dimension_numbers<[1], [1], [0], [0], [0, 0, 1, 0], [], []>} : vector<14x8xf32>, vector<14x8xf32>, vector<14x14xf32> -> vector<14x14xf32>
    %cst_40 = arith.constant 0.353553385 : f32
    %72 = vector.broadcast %cst_40 : f32 to vector<14x14xf32>
    %73 = arith.mulf %71, %72 : vector<14x14xf32>
    %cst_41 = arith.constant dense<0xFF800000> : vector<14xf32>
    %74 = vector.multi_reduction <maximumf>, %73, %cst_41 [1] : vector<14x14xf32> to vector<14xf32>
    %75 = vector.shape_cast %74 : vector<14xf32> to vector<14x1xf32>
    %76 = vector.broadcast %75 : vector<14x1xf32> to vector<14x14xf32>
    %77 = arith.subf %73, %76 : vector<14x14xf32>
    %78 = math.exp %77 : vector<14x14xf32>
    %cst_42 = arith.constant dense<0.000000e+00> : vector<14xf32>
    %79 = vector.multi_reduction <add>, %78, %cst_42 [1] : vector<14x14xf32> to vector<14xf32>
    %80 = vector.shape_cast %79 : vector<14xf32> to vector<14x1xf32>
    %81 = tpu.reciprocal %80 {approx = true} : vector<14x1xf32> -> vector<14x1xf32>
    %82 = vector.broadcast %81 : vector<14x1xf32> to vector<14x14xf32>
    %83 = arith.mulf %78, %82 : vector<14x14xf32>
    %cst_43 = arith.constant dense<0.000000e+00> : vector<14x8xf32>
    %84 = tpu.matmul %83, %70, %cst_43 {dimension_numbers = #tpu.dot_dimension_numbers<[1], [0], [0], [1], [0, 0, 1, 1], [], []>} : vector<14x14xf32>, vector<14x8xf32>, vector<14x8xf32> -> vector<14x8xf32>
    %85 = vector.extract_strided_slice %50 {offsets = [0, 16], sizes = [14, 8], strides = [1, 1]} : vector<14x96xf32> to vector<14x8xf32>
    %86 = vector.extract_strided_slice %50 {offsets = [0, 48], sizes = [14, 8], strides = [1, 1]} : vector<14x96xf32> to vector<14x8xf32>
    %87 = vector.extract_strided_slice %50 {offsets = [0, 80], sizes = [14, 8], strides = [1, 1]} : vector<14x96xf32> to vector<14x8xf32>
    %cst_44 = arith.constant dense<0.000000e+00> : vector<14x14xf32>
    %88 = tpu.matmul %85, %86, %cst_44 {dimension_numbers = #tpu.dot_dimension_numbers<[1], [1], [0], [0], [0, 0, 1, 0], [], []>} : vector<14x8xf32>, vector<14x8xf32>, vector<14x14xf32> -> vector<14x14xf32>
    %cst_45 = arith.constant 0.353553385 : f32
    %89 = vector.broadcast %cst_45 : f32 to vector<14x14xf32>
    %90 = arith.mulf %88, %89 : vector<14x14xf32>
    %cst_46 = arith.constant dense<0xFF800000> : vector<14xf32>
    %91 = vector.multi_reduction <maximumf>, %90, %cst_46 [1] : vector<14x14xf32> to vector<14xf32>
    %92 = vector.shape_cast %91 : vector<14xf32> to vector<14x1xf32>
    %93 = vector.broadcast %92 : vector<14x1xf32> to vector<14x14xf32>
    %94 = arith.subf %90, %93 : vector<14x14xf32>
    %95 = math.exp %94 : vector<14x14xf32>
    %cst_47 = arith.constant dense<0.000000e+00> : vector<14xf32>
    %96 = vector.multi_reduction <add>, %95, %cst_47 [1] : vector<14x14xf32> to vector<14xf32>
    %97 = vector.shape_cast %96 : vector<14xf32> to vector<14x1xf32>
    %98 = tpu.reciprocal %97 {approx = true} : vector<14x1xf32> -> vector<14x1xf32>
    %99 = vector.broadcast %98 : vector<14x1xf32> to vector<14x14xf32>
    %100 = arith.mulf %95, %99 : vector<14x14xf32>
    %cst_48 = arith.constant dense<0.000000e+00> : vector<14x8xf32>
    %101 = tpu.matmul %100, %87, %cst_48 {dimension_numbers = #tpu.dot_dimension_numbers<[1], [0], [0], [1], [0, 0, 1, 1], [], []>} : vector<14x14xf32>, vector<14x8xf32>, vector<14x8xf32> -> vector<14x8xf32>
    %102 = vector.extract_strided_slice %50 {offsets = [0, 24], sizes = [14, 8], strides = [1, 1]} : vector<14x96xf32> to vector<14x8xf32>
    %103 = vector.extract_strided_slice %50 {offsets = [0, 56], sizes = [14, 8], strides = [1, 1]} : vector<14x96xf32> to vector<14x8xf32>
    %104 = vector.extract_strided_slice %50 {offsets = [0, 88], sizes = [14, 8], strides = [1, 1]} : vector<14x96xf32> to vector<14x8xf32>
    %cst_49 = arith.constant dense<0.000000e+00> : vector<14x14xf32>
    %105 = tpu.matmul %102, %103, %cst_49 {dimension_numbers = #tpu.dot_dimension_numbers<[1], [1], [0], [0], [0, 0, 1, 0], [], []>} : vector<14x8xf32>, vector<14x8xf32>, vector<14x14xf32> -> vector<14x14xf32>
    %cst_50 = arith.constant 0.353553385 : f32
    %106 = vector.broadcast %cst_50 : f32 to vector<14x14xf32>
    %107 = arith.mulf %105, %106 : vector<14x14xf32>
    %cst_51 = arith.constant dense<0xFF800000> : vector<14xf32>
    %108 = vector.multi_reduction <maximumf>, %107, %cst_51 [1] : vector<14x14xf32> to vector<14xf32>
    %109 = vector.shape_cast %108 : vector<14xf32> to vector<14x1xf32>
    %110 = vector.broadcast %109 : vector<14x1xf32> to vector<14x14xf32>
    %111 = arith.subf %107, %110 : vector<14x14xf32>
    %112 = math.exp %111 : vector<14x14xf32>
    %cst_52 = arith.constant dense<0.000000e+00> : vector<14xf32>
    %113 = vector.multi_reduction <add>, %112, %cst_52 [1] : vector<14x14xf32> to vector<14xf32>
    %114 = vector.shape_cast %113 : vector<14xf32> to vector<14x1xf32>
    %115 = tpu.reciprocal %114 {approx = true} : vector<14x1xf32> -> vector<14x1xf32>
    %116 = vector.broadcast %115 : vector<14x1xf32> to vector<14x14xf32>
    %117 = arith.mulf %112, %116 : vector<14x14xf32>
    %cst_53 = arith.constant dense<0.000000e+00> : vector<14x8xf32>
    %118 = tpu.matmul %117, %104, %cst_53 {dimension_numbers = #tpu.dot_dimension_numbers<[1], [0], [0], [1], [0, 0, 1, 1], [], []>} : vector<14x14xf32>, vector<14x8xf32>, vector<14x8xf32> -> vector<14x8xf32>
    %119 = tpu.concatenate %67, %84, %101, %118 in 1 : vector<14x8xf32>, vector<14x8xf32>, vector<14x8xf32>, vector<14x8xf32> -> vector<14x32xf32>
    %c0_54 = arith.constant 0 : index
    %c0_55 = arith.constant 0 : index
    %c0_56 = arith.constant 0 : index
    %120 = vector.load %arg11[%c0_54, %c0_55, %c0_56] : memref<2x32x32xf32, #tpu.memory_space<vmem>>, vector<1x32x32xf32>
    %121 = vector.shape_cast %120 : vector<1x32x32xf32> to vector<32x32xf32>
    %cst_57 = arith.constant dense<0.000000e+00> : vector<14x32xf32>
    %122 = tpu.matmul %119, %121, %cst_57 {dimension_numbers = #tpu.dot_dimension_numbers<[1], [0], [0], [1], [0, 0, 1, 1], [], []>} : vector<14x32xf32>, vector<32x32xf32>, vector<14x32xf32> -> vector<14x32xf32>
    %123 = arith.addf %19, %122 : vector<14x32xf32>
    %c0_58 = arith.constant 0 : index
    %c0_59 = arith.constant 0 : index
    %c0_60 = arith.constant 0 : index
    %124 = vector.load %arg12[%c0_58, %c0_59, %c0_60] : memref<2x1x32xf32, #tpu.memory_space<vmem>>, vector<1x1x32xf32>
    %125 = vector.shape_cast %124 : vector<1x1x32xf32> to vector<1x32xf32>
    %126 = vector.broadcast %125 : vector<1x32xf32> to vector<14x32xf32>
    %127 = arith.addf %123, %126 : vector<14x32xf32>
    %c0_61 = arith.constant 0 : index
    %c0_62 = arith.constant 0 : index
    %c0_63 = arith.constant 0 : index
    %128 = vector.load %arg13[%c0_61, %c0_62, %c0_63] : memref<2x1x32xf32, #tpu.memory_space<vmem>>, vector<1x1x32xf32>
    %129 = vector.shape_cast %128 : vector<1x1x32xf32> to vector<1x32xf32>
    %c0_64 = arith.constant 0 : index
    %c0_65 = arith.constant 0 : index
    %c0_66 = arith.constant 0 : index
    %130 = vector.load %arg14[%c0_64, %c0_65, %c0_66] : memref<2x1x32xf32, #tpu.memory_space<vmem>>, vector<1x1x32xf32>
    %131 = vector.shape_cast %130 : vector<1x1x32xf32> to vector<1x32xf32>
    %cst_67 = arith.constant dense<0.000000e+00> : vector<14xf32>
    %132 = vector.multi_reduction <add>, %127, %cst_67 [1] : vector<14x32xf32> to vector<14xf32>
    %133 = vector.shape_cast %132 : vector<14xf32> to vector<14x1xf32>
    %cst_68 = arith.constant 3.200000e+01 : f32
    %134 = vector.broadcast %cst_68 : f32 to vector<14x1xf32>
    %135 = arith.divf %133, %134 : vector<14x1xf32>
    %136 = vector.broadcast %135 : vector<14x1xf32> to vector<14x32xf32>
    %137 = arith.subf %127, %136 : vector<14x32xf32>
    %138 = arith.mulf %137, %137 : vector<14x32xf32>
    %cst_69 = arith.constant dense<0.000000e+00> : vector<14xf32>
    %139 = vector.multi_reduction <add>, %138, %cst_69 [1] : vector<14x32xf32> to vector<14xf32>
    %140 = vector.shape_cast %139 : vector<14xf32> to vector<14x1xf32>
    %cst_70 = arith.constant 3.200000e+01 : f32
    %141 = vector.broadcast %cst_70 : f32 to vector<14x1xf32>
    %142 = arith.divf %140, %141 : vector<14x1xf32>
    %cst_71 = arith.constant 9.99999974E-6 : f32
    %143 = vector.broadcast %cst_71 : f32 to vector<14x1xf32>
    %144 = arith.addf %142, %143 : vector<14x1xf32>
    %145 = math.rsqrt %144 : vector<14x1xf32>
    %146 = vector.broadcast %145 : vector<14x1xf32> to vector<14x32xf32>
    %147 = arith.mulf %137, %146 : vector<14x32xf32>
    %148 = vector.broadcast %129 : vector<1x32xf32> to vector<14x32xf32>
    %149 = arith.mulf %147, %148 : vector<14x32xf32>
    %150 = vector.broadcast %131 : vector<1x32xf32> to vector<14x32xf32>
    %151 = arith.addf %149, %150 : vector<14x32xf32>
    %c0_72 = arith.constant 0 : index
    %c0_73 = arith.constant 0 : index
    %c0_74 = arith.constant 0 : index
    %152 = vector.load %arg15[%c0_72, %c0_73, %c0_74] : memref<2x32x128xf32, #tpu.memory_space<vmem>>, vector<1x32x128xf32>
    %153 = vector.shape_cast %152 : vector<1x32x128xf32> to vector<32x128xf32>
    %cst_75 = arith.constant dense<0.000000e+00> : vector<14x128xf32>
    %154 = tpu.matmul %151, %153, %cst_75 {dimension_numbers = #tpu.dot_dimension_numbers<[1], [0], [0], [1], [0, 0, 1, 1], [], []>} : vector<14x32xf32>, vector<32x128xf32>, vector<14x128xf32> -> vector<14x128xf32>
    %c0_76 = arith.constant 0 : index
    %c0_77 = arith.constant 0 : index
    %c0_78 = arith.constant 0 : index
    %155 = vector.load %arg16[%c0_76, %c0_77, %c0_78] : memref<2x1x128xf32, #tpu.memory_space<vmem>>, vector<1x1x128xf32>
    %156 = vector.shape_cast %155 : vector<1x1x128xf32> to vector<1x128xf32>
    %157 = vector.broadcast %156 : vector<1x128xf32> to vector<14x128xf32>
    %158 = arith.addf %154, %157 : vector<14x128xf32>
    %159 = arith.mulf %158, %158 : vector<14x128xf32>
    %160 = arith.mulf %158, %159 : vector<14x128xf32>
    %cst_79 = arith.constant 4.471500e-02 : f32
    %161 = vector.broadcast %cst_79 : f32 to vector<14x128xf32>
    %162 = arith.mulf %161, %160 : vector<14x128xf32>
    %163 = arith.addf %158, %162 : vector<14x128xf32>
    %cst_80 = arith.constant 0.797884583 : f32
    %164 = vector.broadcast %cst_80 : f32 to vector<14x128xf32>
    %165 = arith.mulf %164, %163 : vector<14x128xf32>
    %166 = math.tanh %165 : vector<14x128xf32>
    %cst_81 = arith.constant 1.000000e+00 : f32
    %167 = vector.broadcast %cst_81 : f32 to vector<14x128xf32>
    %168 = arith.addf %167, %166 : vector<14x128xf32>
    %cst_82 = arith.constant 5.000000e-01 : f32
    %169 = vector.broadcast %cst_82 : f32 to vector<14x128xf32>
    %170 = arith.mulf %169, %168 : vector<14x128xf32>
    %171 = arith.mulf %158, %170 : vector<14x128xf32>
    %c0_83 = arith.constant 0 : index
    %c0_84 = arith.constant 0 : index
    %c0_85 = arith.constant 0 : index
    %172 = vector.load %arg17[%c0_83, %c0_84, %c0_85] : memref<2x128x32xf32, #tpu.memory_space<vmem>>, vector<1x128x32xf32>
    %173 = vector.shape_cast %172 : vector<1x128x32xf32> to vector<128x32xf32>
    %cst_86 = arith.constant dense<0.000000e+00> : vector<14x32xf32>
    %174 = tpu.matmul %171, %173, %cst_86 {dimension_numbers = #tpu.dot_dimension_numbers<[1], [0], [0], [1], [0, 0, 1, 1], [], []>} : vector<14x128xf32>, vector<128x32xf32>, vector<14x32xf32> -> vector<14x32xf32>
    %c0_87 = arith.constant 0 : index
    %c0_88 = arith.constant 0 : index
    %c0_89 = arith.constant 0 : index
    %175 = vector.load %arg18[%c0_87, %c0_88, %c0_89] : memref<2x1x32xf32, #tpu.memory_space<vmem>>, vector<1x1x32xf32>
    %176 = vector.shape_cast %175 : vector<1x1x32xf32> to vector<1x32xf32>
    %177 = vector.broadcast %176 : vector<1x32xf32> to vector<14x32xf32>
    %178 = arith.addf %174, %177 : vector<14x32xf32>
    %179 = arith.addf %127, %178 : vector<14x32xf32>
    %c1 = arith.constant 1 : index
    %c0_90 = arith.constant 0 : index
    %c0_91 = arith.constant 0 : index
    %180 = vector.load %arg7[%c1, %c0_90, %c0_91] : memref<2x1x32xf32, #tpu.memory_space<vmem>>, vector<1x1x32xf32>
    %181 = vector.shape_cast %180 : vector<1x1x32xf32> to vector<1x32xf32>
    %c1_92 = arith.constant 1 : index
    %c0_93 = arith.constant 0 : index
    %c0_94 = arith.constant 0 : index
    %182 = vector.load %arg8[%c1_92, %c0_93, %c0_94] : memref<2x1x32xf32, #tpu.memory_space<vmem>>, vector<1x1x32xf32>
    %183 = vector.shape_cast %182 : vector<1x1x32xf32> to vector<1x32xf32>
    %cst_95 = arith.constant dense<0.000000e+00> : vector<14xf32>
    %184 = vector.multi_reduction <add>, %179, %cst_95 [1] : vector<14x32xf32> to vector<14xf32>
    %185 = vector.shape_cast %184 : vector<14xf32> to vector<14x1xf32>
    %cst_96 = arith.constant 3.200000e+01 : f32
    %186 = vector.broadcast %cst_96 : f32 to vector<14x1xf32>
    %187 = arith.divf %185, %186 : vector<14x1xf32>
    %188 = vector.broadcast %187 : vector<14x1xf32> to vector<14x32xf32>
    %189 = arith.subf %179, %188 : vector<14x32xf32>
    %190 = arith.mulf %189, %189 : vector<14x32xf32>
    %cst_97 = arith.constant dense<0.000000e+00> : vector<14xf32>
    %191 = vector.multi_reduction <add>, %190, %cst_97 [1] : vector<14x32xf32> to vector<14xf32>
    %192 = vector.shape_cast %191 : vector<14xf32> to vector<14x1xf32>
    %cst_98 = arith.constant 3.200000e+01 : f32
    %193 = vector.broadcast %cst_98 : f32 to vector<14x1xf32>
    %194 = arith.divf %192, %193 : vector<14x1xf32>
    %cst_99 = arith.constant 9.99999974E-6 : f32
    %195 = vector.broadcast %cst_99 : f32 to vector<14x1xf32>
    %196 = arith.addf %194, %195 : vector<14x1xf32>
    %197 = math.rsqrt %196 : vector<14x1xf32>
    %198 = vector.broadcast %197 : vector<14x1xf32> to vector<14x32xf32>
    %199 = arith.mulf %189, %198 : vector<14x32xf32>
    %200 = vector.broadcast %181 : vector<1x32xf32> to vector<14x32xf32>
    %201 = arith.mulf %199, %200 : vector<14x32xf32>
    %202 = vector.broadcast %183 : vector<1x32xf32> to vector<14x32xf32>
    %203 = arith.addf %201, %202 : vector<14x32xf32>
    %c1_100 = arith.constant 1 : index
    %c0_101 = arith.constant 0 : index
    %c0_102 = arith.constant 0 : index
    %204 = vector.load %arg9[%c1_100, %c0_101, %c0_102] : memref<2x32x96xf32, #tpu.memory_space<vmem>>, vector<1x32x96xf32>
    %205 = vector.shape_cast %204 : vector<1x32x96xf32> to vector<32x96xf32>
    %cst_103 = arith.constant dense<0.000000e+00> : vector<14x96xf32>
    %206 = tpu.matmul %203, %205, %cst_103 {dimension_numbers = #tpu.dot_dimension_numbers<[1], [0], [0], [1], [0, 0, 1, 1], [], []>} : vector<14x32xf32>, vector<32x96xf32>, vector<14x96xf32> -> vector<14x96xf32>
    %c1_104 = arith.constant 1 : index
    %c0_105 = arith.constant 0 : index
    %c0_106 = arith.constant 0 : index
    %207 = vector.load %arg10[%c1_104, %c0_105, %c0_106] : memref<2x1x96xf32, #tpu.memory_space<vmem>>, vector<1x1x96xf32>
    %208 = vector.shape_cast %207 : vector<1x1x96xf32> to vector<1x96xf32>
    %209 = vector.broadcast %208 : vector<1x96xf32> to vector<14x96xf32>
    %210 = arith.addf %206, %209 : vector<14x96xf32>
    %211 = vector.extract_strided_slice %210 {offsets = [0, 0], sizes = [14, 8], strides = [1, 1]} : vector<14x96xf32> to vector<14x8xf32>
    %212 = vector.extract_strided_slice %210 {offsets = [0, 32], sizes = [14, 8], strides = [1, 1]} : vector<14x96xf32> to vector<14x8xf32>
    %213 = vector.extract_strided_slice %210 {offsets = [0, 64], sizes = [14, 8], strides = [1, 1]} : vector<14x96xf32> to vector<14x8xf32>
    %cst_107 = arith.constant dense<0.000000e+00> : vector<14x14xf32>
    %214 = tpu.matmul %211, %212, %cst_107 {dimension_numbers = #tpu.dot_dimension_numbers<[1], [1], [0], [0], [0, 0, 1, 0], [], []>} : vector<14x8xf32>, vector<14x8xf32>, vector<14x14xf32> -> vector<14x14xf32>
    %cst_108 = arith.constant 0.353553385 : f32
    %215 = vector.broadcast %cst_108 : f32 to vector<14x14xf32>
    %216 = arith.mulf %214, %215 : vector<14x14xf32>
    %cst_109 = arith.constant dense<0xFF800000> : vector<14xf32>
    %217 = vector.multi_reduction <maximumf>, %216, %cst_109 [1] : vector<14x14xf32> to vector<14xf32>
    %218 = vector.shape_cast %217 : vector<14xf32> to vector<14x1xf32>
    %219 = vector.broadcast %218 : vector<14x1xf32> to vector<14x14xf32>
    %220 = arith.subf %216, %219 : vector<14x14xf32>
    %221 = math.exp %220 : vector<14x14xf32>
    %cst_110 = arith.constant dense<0.000000e+00> : vector<14xf32>
    %222 = vector.multi_reduction <add>, %221, %cst_110 [1] : vector<14x14xf32> to vector<14xf32>
    %223 = vector.shape_cast %222 : vector<14xf32> to vector<14x1xf32>
    %224 = tpu.reciprocal %223 {approx = true} : vector<14x1xf32> -> vector<14x1xf32>
    %225 = vector.broadcast %224 : vector<14x1xf32> to vector<14x14xf32>
    %226 = arith.mulf %221, %225 : vector<14x14xf32>
    %cst_111 = arith.constant dense<0.000000e+00> : vector<14x8xf32>
    %227 = tpu.matmul %226, %213, %cst_111 {dimension_numbers = #tpu.dot_dimension_numbers<[1], [0], [0], [1], [0, 0, 1, 1], [], []>} : vector<14x14xf32>, vector<14x8xf32>, vector<14x8xf32> -> vector<14x8xf32>
    %228 = vector.extract_strided_slice %210 {offsets = [0, 8], sizes = [14, 8], strides = [1, 1]} : vector<14x96xf32> to vector<14x8xf32>
    %229 = vector.extract_strided_slice %210 {offsets = [0, 40], sizes = [14, 8], strides = [1, 1]} : vector<14x96xf32> to vector<14x8xf32>
    %230 = vector.extract_strided_slice %210 {offsets = [0, 72], sizes = [14, 8], strides = [1, 1]} : vector<14x96xf32> to vector<14x8xf32>
    %cst_112 = arith.constant dense<0.000000e+00> : vector<14x14xf32>
    %231 = tpu.matmul %228, %229, %cst_112 {dimension_numbers = #tpu.dot_dimension_numbers<[1], [1], [0], [0], [0, 0, 1, 0], [], []>} : vector<14x8xf32>, vector<14x8xf32>, vector<14x14xf32> -> vector<14x14xf32>
    %cst_113 = arith.constant 0.353553385 : f32
    %232 = vector.broadcast %cst_113 : f32 to vector<14x14xf32>
    %233 = arith.mulf %231, %232 : vector<14x14xf32>
    %cst_114 = arith.constant dense<0xFF800000> : vector<14xf32>
    %234 = vector.multi_reduction <maximumf>, %233, %cst_114 [1] : vector<14x14xf32> to vector<14xf32>
    %235 = vector.shape_cast %234 : vector<14xf32> to vector<14x1xf32>
    %236 = vector.broadcast %235 : vector<14x1xf32> to vector<14x14xf32>
    %237 = arith.subf %233, %236 : vector<14x14xf32>
    %238 = math.exp %237 : vector<14x14xf32>
    %cst_115 = arith.constant dense<0.000000e+00> : vector<14xf32>
    %239 = vector.multi_reduction <add>, %238, %cst_115 [1] : vector<14x14xf32> to vector<14xf32>
    %240 = vector.shape_cast %239 : vector<14xf32> to vector<14x1xf32>
    %241 = tpu.reciprocal %240 {approx = true} : vector<14x1xf32> -> vector<14x1xf32>
    %242 = vector.broadcast %241 : vector<14x1xf32> to vector<14x14xf32>
    %243 = arith.mulf %238, %242 : vector<14x14xf32>
    %cst_116 = arith.constant dense<0.000000e+00> : vector<14x8xf32>
    %244 = tpu.matmul %243, %230, %cst_116 {dimension_numbers = #tpu.dot_dimension_numbers<[1], [0], [0], [1], [0, 0, 1, 1], [], []>} : vector<14x14xf32>, vector<14x8xf32>, vector<14x8xf32> -> vector<14x8xf32>
    %245 = vector.extract_strided_slice %210 {offsets = [0, 16], sizes = [14, 8], strides = [1, 1]} : vector<14x96xf32> to vector<14x8xf32>
    %246 = vector.extract_strided_slice %210 {offsets = [0, 48], sizes = [14, 8], strides = [1, 1]} : vector<14x96xf32> to vector<14x8xf32>
    %247 = vector.extract_strided_slice %210 {offsets = [0, 80], sizes = [14, 8], strides = [1, 1]} : vector<14x96xf32> to vector<14x8xf32>
    %cst_117 = arith.constant dense<0.000000e+00> : vector<14x14xf32>
    %248 = tpu.matmul %245, %246, %cst_117 {dimension_numbers = #tpu.dot_dimension_numbers<[1], [1], [0], [0], [0, 0, 1, 0], [], []>} : vector<14x8xf32>, vector<14x8xf32>, vector<14x14xf32> -> vector<14x14xf32>
    %cst_118 = arith.constant 0.353553385 : f32
    %249 = vector.broadcast %cst_118 : f32 to vector<14x14xf32>
    %250 = arith.mulf %248, %249 : vector<14x14xf32>
    %cst_119 = arith.constant dense<0xFF800000> : vector<14xf32>
    %251 = vector.multi_reduction <maximumf>, %250, %cst_119 [1] : vector<14x14xf32> to vector<14xf32>
    %252 = vector.shape_cast %251 : vector<14xf32> to vector<14x1xf32>
    %253 = vector.broadcast %252 : vector<14x1xf32> to vector<14x14xf32>
    %254 = arith.subf %250, %253 : vector<14x14xf32>
    %255 = math.exp %254 : vector<14x14xf32>
    %cst_120 = arith.constant dense<0.000000e+00> : vector<14xf32>
    %256 = vector.multi_reduction <add>, %255, %cst_120 [1] : vector<14x14xf32> to vector<14xf32>
    %257 = vector.shape_cast %256 : vector<14xf32> to vector<14x1xf32>
    %258 = tpu.reciprocal %257 {approx = true} : vector<14x1xf32> -> vector<14x1xf32>
    %259 = vector.broadcast %258 : vector<14x1xf32> to vector<14x14xf32>
    %260 = arith.mulf %255, %259 : vector<14x14xf32>
    %cst_121 = arith.constant dense<0.000000e+00> : vector<14x8xf32>
    %261 = tpu.matmul %260, %247, %cst_121 {dimension_numbers = #tpu.dot_dimension_numbers<[1], [0], [0], [1], [0, 0, 1, 1], [], []>} : vector<14x14xf32>, vector<14x8xf32>, vector<14x8xf32> -> vector<14x8xf32>
    %262 = vector.extract_strided_slice %210 {offsets = [0, 24], sizes = [14, 8], strides = [1, 1]} : vector<14x96xf32> to vector<14x8xf32>
    %263 = vector.extract_strided_slice %210 {offsets = [0, 56], sizes = [14, 8], strides = [1, 1]} : vector<14x96xf32> to vector<14x8xf32>
    %264 = vector.extract_strided_slice %210 {offsets = [0, 88], sizes = [14, 8], strides = [1, 1]} : vector<14x96xf32> to vector<14x8xf32>
    %cst_122 = arith.constant dense<0.000000e+00> : vector<14x14xf32>
    %265 = tpu.matmul %262, %263, %cst_122 {dimension_numbers = #tpu.dot_dimension_numbers<[1], [1], [0], [0], [0, 0, 1, 0], [], []>} : vector<14x8xf32>, vector<14x8xf32>, vector<14x14xf32> -> vector<14x14xf32>
    %cst_123 = arith.constant 0.353553385 : f32
    %266 = vector.broadcast %cst_123 : f32 to vector<14x14xf32>
    %267 = arith.mulf %265, %266 : vector<14x14xf32>
    %cst_124 = arith.constant dense<0xFF800000> : vector<14xf32>
    %268 = vector.multi_reduction <maximumf>, %267, %cst_124 [1] : vector<14x14xf32> to vector<14xf32>
    %269 = vector.shape_cast %268 : vector<14xf32> to vector<14x1xf32>
    %270 = vector.broadcast %269 : vector<14x1xf32> to vector<14x14xf32>
    %271 = arith.subf %267, %270 : vector<14x14xf32>
    %272 = math.exp %271 : vector<14x14xf32>
    %cst_125 = arith.constant dense<0.000000e+00> : vector<14xf32>
    %273 = vector.multi_reduction <add>, %272, %cst_125 [1] : vector<14x14xf32> to vector<14xf32>
    %274 = vector.shape_cast %273 : vector<14xf32> to vector<14x1xf32>
    %275 = tpu.reciprocal %274 {approx = true} : vector<14x1xf32> -> vector<14x1xf32>
    %276 = vector.broadcast %275 : vector<14x1xf32> to vector<14x14xf32>
    %277 = arith.mulf %272, %276 : vector<14x14xf32>
    %cst_126 = arith.constant dense<0.000000e+00> : vector<14x8xf32>
    %278 = tpu.matmul %277, %264, %cst_126 {dimension_numbers = #tpu.dot_dimension_numbers<[1], [0], [0], [1], [0, 0, 1, 1], [], []>} : vector<14x14xf32>, vector<14x8xf32>, vector<14x8xf32> -> vector<14x8xf32>
    %279 = tpu.concatenate %227, %244, %261, %278 in 1 : vector<14x8xf32>, vector<14x8xf32>, vector<14x8xf32>, vector<14x8xf32> -> vector<14x32xf32>
    %c1_127 = arith.constant 1 : index
    %c0_128 = arith.constant 0 : index
    %c0_129 = arith.constant 0 : index
    %280 = vector.load %arg11[%c1_127, %c0_128, %c0_129] : memref<2x32x32xf32, #tpu.memory_space<vmem>>, vector<1x32x32xf32>
    %281 = vector.shape_cast %280 : vector<1x32x32xf32> to vector<32x32xf32>
    %cst_130 = arith.constant dense<0.000000e+00> : vector<14x32xf32>
    %282 = tpu.matmul %279, %281, %cst_130 {dimension_numbers = #tpu.dot_dimension_numbers<[1], [0], [0], [1], [0, 0, 1, 1], [], []>} : vector<14x32xf32>, vector<32x32xf32>, vector<14x32xf32> -> vector<14x32xf32>
    %283 = arith.addf %179, %282 : vector<14x32xf32>
    %c1_131 = arith.constant 1 : index
    %c0_132 = arith.constant 0 : index
    %c0_133 = arith.constant 0 : index
    %284 = vector.load %arg12[%c1_131, %c0_132, %c0_133] : memref<2x1x32xf32, #tpu.memory_space<vmem>>, vector<1x1x32xf32>
    %285 = vector.shape_cast %284 : vector<1x1x32xf32> to vector<1x32xf32>
    %286 = vector.broadcast %285 : vector<1x32xf32> to vector<14x32xf32>
    %287 = arith.addf %283, %286 : vector<14x32xf32>
    %c1_134 = arith.constant 1 : index
    %c0_135 = arith.constant 0 : index
    %c0_136 = arith.constant 0 : index
    %288 = vector.load %arg13[%c1_134, %c0_135, %c0_136] : memref<2x1x32xf32, #tpu.memory_space<vmem>>, vector<1x1x32xf32>
    %289 = vector.shape_cast %288 : vector<1x1x32xf32> to vector<1x32xf32>
    %c1_137 = arith.constant 1 : index
    %c0_138 = arith.constant 0 : index
    %c0_139 = arith.constant 0 : index
    %290 = vector.load %arg14[%c1_137, %c0_138, %c0_139] : memref<2x1x32xf32, #tpu.memory_space<vmem>>, vector<1x1x32xf32>
    %291 = vector.shape_cast %290 : vector<1x1x32xf32> to vector<1x32xf32>
    %cst_140 = arith.constant dense<0.000000e+00> : vector<14xf32>
    %292 = vector.multi_reduction <add>, %287, %cst_140 [1] : vector<14x32xf32> to vector<14xf32>
    %293 = vector.shape_cast %292 : vector<14xf32> to vector<14x1xf32>
    %cst_141 = arith.constant 3.200000e+01 : f32
    %294 = vector.broadcast %cst_141 : f32 to vector<14x1xf32>
    %295 = arith.divf %293, %294 : vector<14x1xf32>
    %296 = vector.broadcast %295 : vector<14x1xf32> to vector<14x32xf32>
    %297 = arith.subf %287, %296 : vector<14x32xf32>
    %298 = arith.mulf %297, %297 : vector<14x32xf32>
    %cst_142 = arith.constant dense<0.000000e+00> : vector<14xf32>
    %299 = vector.multi_reduction <add>, %298, %cst_142 [1] : vector<14x32xf32> to vector<14xf32>
    %300 = vector.shape_cast %299 : vector<14xf32> to vector<14x1xf32>
    %cst_143 = arith.constant 3.200000e+01 : f32
    %301 = vector.broadcast %cst_143 : f32 to vector<14x1xf32>
    %302 = arith.divf %300, %301 : vector<14x1xf32>
    %cst_144 = arith.constant 9.99999974E-6 : f32
    %303 = vector.broadcast %cst_144 : f32 to vector<14x1xf32>
    %304 = arith.addf %302, %303 : vector<14x1xf32>
    %305 = math.rsqrt %304 : vector<14x1xf32>
    %306 = vector.broadcast %305 : vector<14x1xf32> to vector<14x32xf32>
    %307 = arith.mulf %297, %306 : vector<14x32xf32>
    %308 = vector.broadcast %289 : vector<1x32xf32> to vector<14x32xf32>
    %309 = arith.mulf %307, %308 : vector<14x32xf32>
    %310 = vector.broadcast %291 : vector<1x32xf32> to vector<14x32xf32>
    %311 = arith.addf %309, %310 : vector<14x32xf32>
    %c1_145 = arith.constant 1 : index
    %c0_146 = arith.constant 0 : index
    %c0_147 = arith.constant 0 : index
    %312 = vector.load %arg15[%c1_145, %c0_146, %c0_147] : memref<2x32x128xf32, #tpu.memory_space<vmem>>, vector<1x32x128xf32>
    %313 = vector.shape_cast %312 : vector<1x32x128xf32> to vector<32x128xf32>
    %cst_148 = arith.constant dense<0.000000e+00> : vector<14x128xf32>
    %314 = tpu.matmul %311, %313, %cst_148 {dimension_numbers = #tpu.dot_dimension_numbers<[1], [0], [0], [1], [0, 0, 1, 1], [], []>} : vector<14x32xf32>, vector<32x128xf32>, vector<14x128xf32> -> vector<14x128xf32>
    %c1_149 = arith.constant 1 : index
    %c0_150 = arith.constant 0 : index
    %c0_151 = arith.constant 0 : index
    %315 = vector.load %arg16[%c1_149, %c0_150, %c0_151] : memref<2x1x128xf32, #tpu.memory_space<vmem>>, vector<1x1x128xf32>
    %316 = vector.shape_cast %315 : vector<1x1x128xf32> to vector<1x128xf32>
    %317 = vector.broadcast %316 : vector<1x128xf32> to vector<14x128xf32>
    %318 = arith.addf %314, %317 : vector<14x128xf32>
    %319 = arith.mulf %318, %318 : vector<14x128xf32>
    %320 = arith.mulf %318, %319 : vector<14x128xf32>
    %cst_152 = arith.constant 4.471500e-02 : f32
    %321 = vector.broadcast %cst_152 : f32 to vector<14x128xf32>
    %322 = arith.mulf %321, %320 : vector<14x128xf32>
    %323 = arith.addf %318, %322 : vector<14x128xf32>
    %cst_153 = arith.constant 0.797884583 : f32
    %324 = vector.broadcast %cst_153 : f32 to vector<14x128xf32>
    %325 = arith.mulf %324, %323 : vector<14x128xf32>
    %326 = math.tanh %325 : vector<14x128xf32>
    %cst_154 = arith.constant 1.000000e+00 : f32
    %327 = vector.broadcast %cst_154 : f32 to vector<14x128xf32>
    %328 = arith.addf %327, %326 : vector<14x128xf32>
    %cst_155 = arith.constant 5.000000e-01 : f32
    %329 = vector.broadcast %cst_155 : f32 to vector<14x128xf32>
    %330 = arith.mulf %329, %328 : vector<14x128xf32>
    %331 = arith.mulf %318, %330 : vector<14x128xf32>
    %c1_156 = arith.constant 1 : index
    %c0_157 = arith.constant 0 : index
    %c0_158 = arith.constant 0 : index
    %332 = vector.load %arg17[%c1_156, %c0_157, %c0_158] : memref<2x128x32xf32, #tpu.memory_space<vmem>>, vector<1x128x32xf32>
    %333 = vector.shape_cast %332 : vector<1x128x32xf32> to vector<128x32xf32>
    %cst_159 = arith.constant dense<0.000000e+00> : vector<14x32xf32>
    %334 = tpu.matmul %331, %333, %cst_159 {dimension_numbers = #tpu.dot_dimension_numbers<[1], [0], [0], [1], [0, 0, 1, 1], [], []>} : vector<14x128xf32>, vector<128x32xf32>, vector<14x32xf32> -> vector<14x32xf32>
    %c1_160 = arith.constant 1 : index
    %c0_161 = arith.constant 0 : index
    %c0_162 = arith.constant 0 : index
    %335 = vector.load %arg18[%c1_160, %c0_161, %c0_162] : memref<2x1x32xf32, #tpu.memory_space<vmem>>, vector<1x1x32xf32>
    %336 = vector.shape_cast %335 : vector<1x1x32xf32> to vector<1x32xf32>
    %337 = vector.broadcast %336 : vector<1x32xf32> to vector<14x32xf32>
    %338 = arith.addf %334, %337 : vector<14x32xf32>
    %339 = arith.addf %287, %338 : vector<14x32xf32>
    %c0_163 = arith.constant 0 : index
    %c0_164 = arith.constant 0 : index
    %340 = vector.load %arg19[%c0_163, %c0_164] : memref<1x32xf32, #tpu.memory_space<vmem>>, vector<1x32xf32>
    %c0_165 = arith.constant 0 : index
    %c0_166 = arith.constant 0 : index
    %341 = vector.load %arg20[%c0_165, %c0_166] : memref<1x32xf32, #tpu.memory_space<vmem>>, vector<1x32xf32>
    %cst_167 = arith.constant dense<0.000000e+00> : vector<14xf32>
    %342 = vector.multi_reduction <add>, %339, %cst_167 [1] : vector<14x32xf32> to vector<14xf32>
    %343 = vector.shape_cast %342 : vector<14xf32> to vector<14x1xf32>
    %cst_168 = arith.constant 3.200000e+01 : f32
    %344 = vector.broadcast %cst_168 : f32 to vector<14x1xf32>
    %345 = arith.divf %343, %344 : vector<14x1xf32>
    %346 = vector.broadcast %345 : vector<14x1xf32> to vector<14x32xf32>
    %347 = arith.subf %339, %346 : vector<14x32xf32>
    %348 = arith.mulf %347, %347 : vector<14x32xf32>
    %cst_169 = arith.constant dense<0.000000e+00> : vector<14xf32>
    %349 = vector.multi_reduction <add>, %348, %cst_169 [1] : vector<14x32xf32> to vector<14xf32>
    %350 = vector.shape_cast %349 : vector<14xf32> to vector<14x1xf32>
    %cst_170 = arith.constant 3.200000e+01 : f32
    %351 = vector.broadcast %cst_170 : f32 to vector<14x1xf32>
    %352 = arith.divf %350, %351 : vector<14x1xf32>
    %cst_171 = arith.constant 9.99999974E-6 : f32
    %353 = vector.broadcast %cst_171 : f32 to vector<14x1xf32>
    %354 = arith.addf %352, %353 : vector<14x1xf32>
    %355 = math.rsqrt %354 : vector<14x1xf32>
    %356 = vector.broadcast %355 : vector<14x1xf32> to vector<14x32xf32>
    %357 = arith.mulf %347, %356 : vector<14x32xf32>
    %358 = vector.broadcast %340 : vector<1x32xf32> to vector<14x32xf32>
    %359 = arith.mulf %357, %358 : vector<14x32xf32>
    %360 = vector.broadcast %341 : vector<1x32xf32> to vector<14x32xf32>
    %361 = arith.addf %359, %360 : vector<14x32xf32>
    %c0_172 = arith.constant 0 : index
    %c0_173 = arith.constant 0 : index
    %362 = vector.load %arg21[%c0_172, %c0_173] : memref<32x32xf32, #tpu.memory_space<vmem>>, vector<32x32xf32>
    %cst_174 = arith.constant dense<0.000000e+00> : vector<14x32xf32>
    %363 = tpu.matmul %361, %362, %cst_174 {dimension_numbers = #tpu.dot_dimension_numbers<[1], [0], [0], [1], [0, 0, 1, 1], [], []>} : vector<14x32xf32>, vector<32x32xf32>, vector<14x32xf32> -> vector<14x32xf32>
    %c0_175 = arith.constant 0 : index
    %c0_176 = arith.constant 0 : index
    %364 = vector.load %arg22[%c0_175, %c0_176] : memref<1x32xf32, #tpu.memory_space<vmem>>, vector<1x32xf32>
    %365 = vector.broadcast %364 : vector<1x32xf32> to vector<14x32xf32>
    %366 = arith.addf %363, %365 : vector<14x32xf32>
    %367 = tpu.iota {dimensions = array<i32: 1>} : vector<16x14xi32>
    %368 = vector.broadcast %5 : vector<16x1xi32> to vector<16x14xi32>
    %369 = arith.cmpi eq, %368, %367 : vector<16x14xi32>
    %370 = arith.extui %369 : vector<16x14xi1> to vector<16x14xi32>
    %371 = arith.sitofp %370 : vector<16x14xi32> to vector<16x14xf32>
    %c14_i32 = arith.constant 14 : i32
    %372 = vector.broadcast %c14_i32 : i32 to vector<16x1xi32>
    %373 = arith.cmpi slt, %5, %372 : vector<16x1xi32>
    %374 = arith.extui %373 : vector<16x1xi1> to vector<16x1xi32>
    %375 = arith.sitofp %374 : vector<16x1xi32> to vector<16x1xf32>
    %cst_177 = arith.constant dense<0.000000e+00> : vector<16x32xf32>
    %376 = tpu.matmul %371, %366, %cst_177 {dimension_numbers = #tpu.dot_dimension_numbers<[1], [0], [0], [1], [0, 0, 1, 1], [], []>} : vector<16x14xf32>, vector<14x32xf32>, vector<16x32xf32> -> vector<16x32xf32>
    %cst_178 = arith.constant 1.000000e+00 : f32
    %377 = vector.broadcast %cst_178 : f32 to vector<16x1xf32>
    %378 = arith.subf %377, %375 : vector<16x1xf32>
    %c0_179 = arith.constant 0 : index
    %c0_180 = arith.constant 0 : index
    %379 = vector.load %arg23[%c0_179, %c0_180] : memref<1x32xf32, #tpu.memory_space<vmem>>, vector<1x32xf32>
    %380 = vector.broadcast %378 : vector<16x1xf32> to vector<16x32xf32>
    %381 = vector.broadcast %379 : vector<1x32xf32> to vector<16x32xf32>
    %382 = arith.mulf %380, %381 : vector<16x32xf32>
    %383 = arith.addf %376, %382 : vector<16x32xf32>
    %c0_181 = arith.constant 0 : index
    %c0_182 = arith.constant 0 : index
    %384 = vector.load %arg24[%c0_181, %c0_182] : memref<16x32xf32, #tpu.memory_space<vmem>>, vector<16x32xf32>
    %385 = arith.addf %383, %384 : vector<16x32xf32>
    %c0_183 = arith.constant 0 : index
    %c0_184 = arith.constant 0 : index
    %c0_185 = arith.constant 0 : index
    %386 = vector.load %arg25[%c0_183, %c0_184, %c0_185] : memref<1x1x32xf32, #tpu.memory_space<vmem>>, vector<1x1x32xf32>
    %387 = vector.shape_cast %386 : vector<1x1x32xf32> to vector<1x32xf32>
    %c0_186 = arith.constant 0 : index
    %c0_187 = arith.constant 0 : index
    %c0_188 = arith.constant 0 : index
    %388 = vector.load %arg26[%c0_186, %c0_187, %c0_188] : memref<1x1x32xf32, #tpu.memory_space<vmem>>, vector<1x1x32xf32>
    %389 = vector.shape_cast %388 : vector<1x1x32xf32> to vector<1x32xf32>
    %cst_189 = arith.constant dense<0.000000e+00> : vector<16xf32>
    %390 = vector.multi_reduction <add>, %385, %cst_189 [1] : vector<16x32xf32> to vector<16xf32>
    %391 = vector.shape_cast %390 : vector<16xf32> to vector<16x1xf32>
    %cst_190 = arith.constant 3.200000e+01 : f32
    %392 = vector.broadcast %cst_190 : f32 to vector<16x1xf32>
    %393 = arith.divf %391, %392 : vector<16x1xf32>
    %394 = vector.broadcast %393 : vector<16x1xf32> to vector<16x32xf32>
    %395 = arith.subf %385, %394 : vector<16x32xf32>
    %396 = arith.mulf %395, %395 : vector<16x32xf32>
    %cst_191 = arith.constant dense<0.000000e+00> : vector<16xf32>
    %397 = vector.multi_reduction <add>, %396, %cst_191 [1] : vector<16x32xf32> to vector<16xf32>
    %398 = vector.shape_cast %397 : vector<16xf32> to vector<16x1xf32>
    %cst_192 = arith.constant 3.200000e+01 : f32
    %399 = vector.broadcast %cst_192 : f32 to vector<16x1xf32>
    %400 = arith.divf %398, %399 : vector<16x1xf32>
    %cst_193 = arith.constant 9.99999974E-6 : f32
    %401 = vector.broadcast %cst_193 : f32 to vector<16x1xf32>
    %402 = arith.addf %400, %401 : vector<16x1xf32>
    %403 = math.rsqrt %402 : vector<16x1xf32>
    %404 = vector.broadcast %403 : vector<16x1xf32> to vector<16x32xf32>
    %405 = arith.mulf %395, %404 : vector<16x32xf32>
    %406 = vector.broadcast %387 : vector<1x32xf32> to vector<16x32xf32>
    %407 = arith.mulf %405, %406 : vector<16x32xf32>
    %408 = vector.broadcast %389 : vector<1x32xf32> to vector<16x32xf32>
    %409 = arith.addf %407, %408 : vector<16x32xf32>
    %c0_194 = arith.constant 0 : index
    %c0_195 = arith.constant 0 : index
    %c0_196 = arith.constant 0 : index
    %410 = vector.load %arg27[%c0_194, %c0_195, %c0_196] : memref<1x32x96xf32, #tpu.memory_space<vmem>>, vector<1x32x96xf32>
    %411 = vector.shape_cast %410 : vector<1x32x96xf32> to vector<32x96xf32>
    %cst_197 = arith.constant dense<0.000000e+00> : vector<16x96xf32>
    %412 = tpu.matmul %409, %411, %cst_197 {dimension_numbers = #tpu.dot_dimension_numbers<[1], [0], [0], [1], [0, 0, 1, 1], [], []>} : vector<16x32xf32>, vector<32x96xf32>, vector<16x96xf32> -> vector<16x96xf32>
    %c0_198 = arith.constant 0 : index
    %c0_199 = arith.constant 0 : index
    %c0_200 = arith.constant 0 : index
    %413 = vector.load %arg28[%c0_198, %c0_199, %c0_200] : memref<1x1x96xf32, #tpu.memory_space<vmem>>, vector<1x1x96xf32>
    %414 = vector.shape_cast %413 : vector<1x1x96xf32> to vector<1x96xf32>
    %415 = vector.broadcast %414 : vector<1x96xf32> to vector<16x96xf32>
    %416 = arith.addf %412, %415 : vector<16x96xf32>
    %417 = vector.extract_strided_slice %416 {offsets = [0, 0], sizes = [16, 8], strides = [1, 1]} : vector<16x96xf32> to vector<16x8xf32>
    %418 = vector.extract_strided_slice %416 {offsets = [0, 32], sizes = [16, 8], strides = [1, 1]} : vector<16x96xf32> to vector<16x8xf32>
    %419 = vector.extract_strided_slice %416 {offsets = [0, 64], sizes = [16, 8], strides = [1, 1]} : vector<16x96xf32> to vector<16x8xf32>
    %cst_201 = arith.constant dense<0.000000e+00> : vector<16x16xf32>
    %420 = tpu.matmul %417, %418, %cst_201 {dimension_numbers = #tpu.dot_dimension_numbers<[1], [1], [0], [0], [0, 0, 1, 0], [], []>} : vector<16x8xf32>, vector<16x8xf32>, vector<16x16xf32> -> vector<16x16xf32>
    %cst_202 = arith.constant 0.353553385 : f32
    %421 = vector.broadcast %cst_202 : f32 to vector<16x16xf32>
    %422 = arith.mulf %420, %421 : vector<16x16xf32>
    %cst_203 = arith.constant dense<0xFF800000> : vector<16xf32>
    %423 = vector.multi_reduction <maximumf>, %422, %cst_203 [1] : vector<16x16xf32> to vector<16xf32>
    %424 = vector.shape_cast %423 : vector<16xf32> to vector<16x1xf32>
    %425 = vector.broadcast %424 : vector<16x1xf32> to vector<16x16xf32>
    %426 = arith.subf %422, %425 : vector<16x16xf32>
    %427 = math.exp %426 : vector<16x16xf32>
    %cst_204 = arith.constant dense<0.000000e+00> : vector<16xf32>
    %428 = vector.multi_reduction <add>, %427, %cst_204 [1] : vector<16x16xf32> to vector<16xf32>
    %429 = vector.shape_cast %428 : vector<16xf32> to vector<16x1xf32>
    %430 = tpu.reciprocal %429 {approx = true} : vector<16x1xf32> -> vector<16x1xf32>
    %431 = vector.broadcast %430 : vector<16x1xf32> to vector<16x16xf32>
    %432 = arith.mulf %427, %431 : vector<16x16xf32>
    %cst_205 = arith.constant dense<0.000000e+00> : vector<16x8xf32>
    %433 = tpu.matmul %432, %419, %cst_205 {dimension_numbers = #tpu.dot_dimension_numbers<[1], [0], [0], [1], [0, 0, 1, 1], [], []>} : vector<16x16xf32>, vector<16x8xf32>, vector<16x8xf32> -> vector<16x8xf32>
    %434 = vector.extract_strided_slice %416 {offsets = [0, 8], sizes = [16, 8], strides = [1, 1]} : vector<16x96xf32> to vector<16x8xf32>
    %435 = vector.extract_strided_slice %416 {offsets = [0, 40], sizes = [16, 8], strides = [1, 1]} : vector<16x96xf32> to vector<16x8xf32>
    %436 = vector.extract_strided_slice %416 {offsets = [0, 72], sizes = [16, 8], strides = [1, 1]} : vector<16x96xf32> to vector<16x8xf32>
    %cst_206 = arith.constant dense<0.000000e+00> : vector<16x16xf32>
    %437 = tpu.matmul %434, %435, %cst_206 {dimension_numbers = #tpu.dot_dimension_numbers<[1], [1], [0], [0], [0, 0, 1, 0], [], []>} : vector<16x8xf32>, vector<16x8xf32>, vector<16x16xf32> -> vector<16x16xf32>
    %cst_207 = arith.constant 0.353553385 : f32
    %438 = vector.broadcast %cst_207 : f32 to vector<16x16xf32>
    %439 = arith.mulf %437, %438 : vector<16x16xf32>
    %cst_208 = arith.constant dense<0xFF800000> : vector<16xf32>
    %440 = vector.multi_reduction <maximumf>, %439, %cst_208 [1] : vector<16x16xf32> to vector<16xf32>
    %441 = vector.shape_cast %440 : vector<16xf32> to vector<16x1xf32>
    %442 = vector.broadcast %441 : vector<16x1xf32> to vector<16x16xf32>
    %443 = arith.subf %439, %442 : vector<16x16xf32>
    %444 = math.exp %443 : vector<16x16xf32>
    %cst_209 = arith.constant dense<0.000000e+00> : vector<16xf32>
    %445 = vector.multi_reduction <add>, %444, %cst_209 [1] : vector<16x16xf32> to vector<16xf32>
    %446 = vector.shape_cast %445 : vector<16xf32> to vector<16x1xf32>
    %447 = tpu.reciprocal %446 {approx = true} : vector<16x1xf32> -> vector<16x1xf32>
    %448 = vector.broadcast %447 : vector<16x1xf32> to vector<16x16xf32>
    %449 = arith.mulf %444, %448 : vector<16x16xf32>
    %cst_210 = arith.constant dense<0.000000e+00> : vector<16x8xf32>
    %450 = tpu.matmul %449, %436, %cst_210 {dimension_numbers = #tpu.dot_dimension_numbers<[1], [0], [0], [1], [0, 0, 1, 1], [], []>} : vector<16x16xf32>, vector<16x8xf32>, vector<16x8xf32> -> vector<16x8xf32>
    %451 = vector.extract_strided_slice %416 {offsets = [0, 16], sizes = [16, 8], strides = [1, 1]} : vector<16x96xf32> to vector<16x8xf32>
    %452 = vector.extract_strided_slice %416 {offsets = [0, 48], sizes = [16, 8], strides = [1, 1]} : vector<16x96xf32> to vector<16x8xf32>
    %453 = vector.extract_strided_slice %416 {offsets = [0, 80], sizes = [16, 8], strides = [1, 1]} : vector<16x96xf32> to vector<16x8xf32>
    %cst_211 = arith.constant dense<0.000000e+00> : vector<16x16xf32>
    %454 = tpu.matmul %451, %452, %cst_211 {dimension_numbers = #tpu.dot_dimension_numbers<[1], [1], [0], [0], [0, 0, 1, 0], [], []>} : vector<16x8xf32>, vector<16x8xf32>, vector<16x16xf32> -> vector<16x16xf32>
    %cst_212 = arith.constant 0.353553385 : f32
    %455 = vector.broadcast %cst_212 : f32 to vector<16x16xf32>
    %456 = arith.mulf %454, %455 : vector<16x16xf32>
    %cst_213 = arith.constant dense<0xFF800000> : vector<16xf32>
    %457 = vector.multi_reduction <maximumf>, %456, %cst_213 [1] : vector<16x16xf32> to vector<16xf32>
    %458 = vector.shape_cast %457 : vector<16xf32> to vector<16x1xf32>
    %459 = vector.broadcast %458 : vector<16x1xf32> to vector<16x16xf32>
    %460 = arith.subf %456, %459 : vector<16x16xf32>
    %461 = math.exp %460 : vector<16x16xf32>
    %cst_214 = arith.constant dense<0.000000e+00> : vector<16xf32>
    %462 = vector.multi_reduction <add>, %461, %cst_214 [1] : vector<16x16xf32> to vector<16xf32>
    %463 = vector.shape_cast %462 : vector<16xf32> to vector<16x1xf32>
    %464 = tpu.reciprocal %463 {approx = true} : vector<16x1xf32> -> vector<16x1xf32>
    %465 = vector.broadcast %464 : vector<16x1xf32> to vector<16x16xf32>
    %466 = arith.mulf %461, %465 : vector<16x16xf32>
    %cst_215 = arith.constant dense<0.000000e+00> : vector<16x8xf32>
    %467 = tpu.matmul %466, %453, %cst_215 {dimension_numbers = #tpu.dot_dimension_numbers<[1], [0], [0], [1], [0, 0, 1, 1], [], []>} : vector<16x16xf32>, vector<16x8xf32>, vector<16x8xf32> -> vector<16x8xf32>
    %468 = vector.extract_strided_slice %416 {offsets = [0, 24], sizes = [16, 8], strides = [1, 1]} : vector<16x96xf32> to vector<16x8xf32>
    %469 = vector.extract_strided_slice %416 {offsets = [0, 56], sizes = [16, 8], strides = [1, 1]} : vector<16x96xf32> to vector<16x8xf32>
    %470 = vector.extract_strided_slice %416 {offsets = [0, 88], sizes = [16, 8], strides = [1, 1]} : vector<16x96xf32> to vector<16x8xf32>
    %cst_216 = arith.constant dense<0.000000e+00> : vector<16x16xf32>
    %471 = tpu.matmul %468, %469, %cst_216 {dimension_numbers = #tpu.dot_dimension_numbers<[1], [1], [0], [0], [0, 0, 1, 0], [], []>} : vector<16x8xf32>, vector<16x8xf32>, vector<16x16xf32> -> vector<16x16xf32>
    %cst_217 = arith.constant 0.353553385 : f32
    %472 = vector.broadcast %cst_217 : f32 to vector<16x16xf32>
    %473 = arith.mulf %471, %472 : vector<16x16xf32>
    %cst_218 = arith.constant dense<0xFF800000> : vector<16xf32>
    %474 = vector.multi_reduction <maximumf>, %473, %cst_218 [1] : vector<16x16xf32> to vector<16xf32>
    %475 = vector.shape_cast %474 : vector<16xf32> to vector<16x1xf32>
    %476 = vector.broadcast %475 : vector<16x1xf32> to vector<16x16xf32>
    %477 = arith.subf %473, %476 : vector<16x16xf32>
    %478 = math.exp %477 : vector<16x16xf32>
    %cst_219 = arith.constant dense<0.000000e+00> : vector<16xf32>
    %479 = vector.multi_reduction <add>, %478, %cst_219 [1] : vector<16x16xf32> to vector<16xf32>
    %480 = vector.shape_cast %479 : vector<16xf32> to vector<16x1xf32>
    %481 = tpu.reciprocal %480 {approx = true} : vector<16x1xf32> -> vector<16x1xf32>
    %482 = vector.broadcast %481 : vector<16x1xf32> to vector<16x16xf32>
    %483 = arith.mulf %478, %482 : vector<16x16xf32>
    %cst_220 = arith.constant dense<0.000000e+00> : vector<16x8xf32>
    %484 = tpu.matmul %483, %470, %cst_220 {dimension_numbers = #tpu.dot_dimension_numbers<[1], [0], [0], [1], [0, 0, 1, 1], [], []>} : vector<16x16xf32>, vector<16x8xf32>, vector<16x8xf32> -> vector<16x8xf32>
    %485 = tpu.concatenate %433, %450, %467, %484 in 1 : vector<16x8xf32>, vector<16x8xf32>, vector<16x8xf32>, vector<16x8xf32> -> vector<16x32xf32>
    %c0_221 = arith.constant 0 : index
    %c0_222 = arith.constant 0 : index
    %c0_223 = arith.constant 0 : index
    %486 = vector.load %arg29[%c0_221, %c0_222, %c0_223] : memref<1x32x32xf32, #tpu.memory_space<vmem>>, vector<1x32x32xf32>
    %487 = vector.shape_cast %486 : vector<1x32x32xf32> to vector<32x32xf32>
    %cst_224 = arith.constant dense<0.000000e+00> : vector<16x32xf32>
    %488 = tpu.matmul %485, %487, %cst_224 {dimension_numbers = #tpu.dot_dimension_numbers<[1], [0], [0], [1], [0, 0, 1, 1], [], []>} : vector<16x32xf32>, vector<32x32xf32>, vector<16x32xf32> -> vector<16x32xf32>
    %489 = arith.addf %385, %488 : vector<16x32xf32>
    %c0_225 = arith.constant 0 : index
    %c0_226 = arith.constant 0 : index
    %c0_227 = arith.constant 0 : index
    %490 = vector.load %arg30[%c0_225, %c0_226, %c0_227] : memref<1x1x32xf32, #tpu.memory_space<vmem>>, vector<1x1x32xf32>
    %491 = vector.shape_cast %490 : vector<1x1x32xf32> to vector<1x32xf32>
    %492 = vector.broadcast %491 : vector<1x32xf32> to vector<16x32xf32>
    %493 = arith.addf %489, %492 : vector<16x32xf32>
    %c0_228 = arith.constant 0 : index
    %c0_229 = arith.constant 0 : index
    %c0_230 = arith.constant 0 : index
    %494 = vector.load %arg31[%c0_228, %c0_229, %c0_230] : memref<1x1x32xf32, #tpu.memory_space<vmem>>, vector<1x1x32xf32>
    %495 = vector.shape_cast %494 : vector<1x1x32xf32> to vector<1x32xf32>
    %c0_231 = arith.constant 0 : index
    %c0_232 = arith.constant 0 : index
    %c0_233 = arith.constant 0 : index
    %496 = vector.load %arg32[%c0_231, %c0_232, %c0_233] : memref<1x1x32xf32, #tpu.memory_space<vmem>>, vector<1x1x32xf32>
    %497 = vector.shape_cast %496 : vector<1x1x32xf32> to vector<1x32xf32>
    %cst_234 = arith.constant dense<0.000000e+00> : vector<16xf32>
    %498 = vector.multi_reduction <add>, %493, %cst_234 [1] : vector<16x32xf32> to vector<16xf32>
    %499 = vector.shape_cast %498 : vector<16xf32> to vector<16x1xf32>
    %cst_235 = arith.constant 3.200000e+01 : f32
    %500 = vector.broadcast %cst_235 : f32 to vector<16x1xf32>
    %501 = arith.divf %499, %500 : vector<16x1xf32>
    %502 = vector.broadcast %501 : vector<16x1xf32> to vector<16x32xf32>
    %503 = arith.subf %493, %502 : vector<16x32xf32>
    %504 = arith.mulf %503, %503 : vector<16x32xf32>
    %cst_236 = arith.constant dense<0.000000e+00> : vector<16xf32>
    %505 = vector.multi_reduction <add>, %504, %cst_236 [1] : vector<16x32xf32> to vector<16xf32>
    %506 = vector.shape_cast %505 : vector<16xf32> to vector<16x1xf32>
    %cst_237 = arith.constant 3.200000e+01 : f32
    %507 = vector.broadcast %cst_237 : f32 to vector<16x1xf32>
    %508 = arith.divf %506, %507 : vector<16x1xf32>
    %cst_238 = arith.constant 9.99999974E-6 : f32
    %509 = vector.broadcast %cst_238 : f32 to vector<16x1xf32>
    %510 = arith.addf %508, %509 : vector<16x1xf32>
    %511 = math.rsqrt %510 : vector<16x1xf32>
    %512 = vector.broadcast %511 : vector<16x1xf32> to vector<16x32xf32>
    %513 = arith.mulf %503, %512 : vector<16x32xf32>
    %514 = vector.broadcast %495 : vector<1x32xf32> to vector<16x32xf32>
    %515 = arith.mulf %513, %514 : vector<16x32xf32>
    %516 = vector.broadcast %497 : vector<1x32xf32> to vector<16x32xf32>
    %517 = arith.addf %515, %516 : vector<16x32xf32>
    %c0_239 = arith.constant 0 : index
    %c0_240 = arith.constant 0 : index
    %c0_241 = arith.constant 0 : index
    %518 = vector.load %arg33[%c0_239, %c0_240, %c0_241] : memref<1x32x128xf32, #tpu.memory_space<vmem>>, vector<1x32x128xf32>
    %519 = vector.shape_cast %518 : vector<1x32x128xf32> to vector<32x128xf32>
    %cst_242 = arith.constant dense<0.000000e+00> : vector<16x128xf32>
    %520 = tpu.matmul %517, %519, %cst_242 {dimension_numbers = #tpu.dot_dimension_numbers<[1], [0], [0], [1], [0, 0, 1, 1], [], []>} : vector<16x32xf32>, vector<32x128xf32>, vector<16x128xf32> -> vector<16x128xf32>
    %c0_243 = arith.constant 0 : index
    %c0_244 = arith.constant 0 : index
    %c0_245 = arith.constant 0 : index
    %521 = vector.load %arg34[%c0_243, %c0_244, %c0_245] : memref<1x1x128xf32, #tpu.memory_space<vmem>>, vector<1x1x128xf32>
    %522 = vector.shape_cast %521 : vector<1x1x128xf32> to vector<1x128xf32>
    %523 = vector.broadcast %522 : vector<1x128xf32> to vector<16x128xf32>
    %524 = arith.addf %520, %523 : vector<16x128xf32>
    %525 = arith.mulf %524, %524 : vector<16x128xf32>
    %526 = arith.mulf %524, %525 : vector<16x128xf32>
    %cst_246 = arith.constant 4.471500e-02 : f32
    %527 = vector.broadcast %cst_246 : f32 to vector<16x128xf32>
    %528 = arith.mulf %527, %526 : vector<16x128xf32>
    %529 = arith.addf %524, %528 : vector<16x128xf32>
    %cst_247 = arith.constant 0.797884583 : f32
    %530 = vector.broadcast %cst_247 : f32 to vector<16x128xf32>
    %531 = arith.mulf %530, %529 : vector<16x128xf32>
    %532 = math.tanh %531 : vector<16x128xf32>
    %cst_248 = arith.constant 1.000000e+00 : f32
    %533 = vector.broadcast %cst_248 : f32 to vector<16x128xf32>
    %534 = arith.addf %533, %532 : vector<16x128xf32>
    %cst_249 = arith.constant 5.000000e-01 : f32
    %535 = vector.broadcast %cst_249 : f32 to vector<16x128xf32>
    %536 = arith.mulf %535, %534 : vector<16x128xf32>
    %537 = arith.mulf %524, %536 : vector<16x128xf32>
    %c0_250 = arith.constant 0 : index
    %c0_251 = arith.constant 0 : index
    %c0_252 = arith.constant 0 : index
    %538 = vector.load %arg35[%c0_250, %c0_251, %c0_252] : memref<1x128x32xf32, #tpu.memory_space<vmem>>, vector<1x128x32xf32>
    %539 = vector.shape_cast %538 : vector<1x128x32xf32> to vector<128x32xf32>
    %cst_253 = arith.constant dense<0.000000e+00> : vector<16x32xf32>
    %540 = tpu.matmul %537, %539, %cst_253 {dimension_numbers = #tpu.dot_dimension_numbers<[1], [0], [0], [1], [0, 0, 1, 1], [], []>} : vector<16x128xf32>, vector<128x32xf32>, vector<16x32xf32> -> vector<16x32xf32>
    %c0_254 = arith.constant 0 : index
    %c0_255 = arith.constant 0 : index
    %c0_256 = arith.constant 0 : index
    %541 = vector.load %arg36[%c0_254, %c0_255, %c0_256] : memref<1x1x32xf32, #tpu.memory_space<vmem>>, vector<1x1x32xf32>
    %542 = vector.shape_cast %541 : vector<1x1x32xf32> to vector<1x32xf32>
    %543 = vector.broadcast %542 : vector<1x32xf32> to vector<16x32xf32>
    %544 = arith.addf %540, %543 : vector<16x32xf32>
    %545 = arith.addf %493, %544 : vector<16x32xf32>
    %c0_257 = arith.constant 0 : index
    %c0_258 = arith.constant 0 : index
    %546 = vector.load %arg37[%c0_257, %c0_258] : memref<1x32xf32, #tpu.memory_space<vmem>>, vector<1x32xf32>
    %c0_259 = arith.constant 0 : index
    %c0_260 = arith.constant 0 : index
    %547 = vector.load %arg38[%c0_259, %c0_260] : memref<1x32xf32, #tpu.memory_space<vmem>>, vector<1x32xf32>
    %cst_261 = arith.constant dense<0.000000e+00> : vector<16xf32>
    %548 = vector.multi_reduction <add>, %545, %cst_261 [1] : vector<16x32xf32> to vector<16xf32>
    %549 = vector.shape_cast %548 : vector<16xf32> to vector<16x1xf32>
    %cst_262 = arith.constant 3.200000e+01 : f32
    %550 = vector.broadcast %cst_262 : f32 to vector<16x1xf32>
    %551 = arith.divf %549, %550 : vector<16x1xf32>
    %552 = vector.broadcast %551 : vector<16x1xf32> to vector<16x32xf32>
    %553 = arith.subf %545, %552 : vector<16x32xf32>
    %554 = arith.mulf %553, %553 : vector<16x32xf32>
    %cst_263 = arith.constant dense<0.000000e+00> : vector<16xf32>
    %555 = vector.multi_reduction <add>, %554, %cst_263 [1] : vector<16x32xf32> to vector<16xf32>
    %556 = vector.shape_cast %555 : vector<16xf32> to vector<16x1xf32>
    %cst_264 = arith.constant 3.200000e+01 : f32
    %557 = vector.broadcast %cst_264 : f32 to vector<16x1xf32>
    %558 = arith.divf %556, %557 : vector<16x1xf32>
    %cst_265 = arith.constant 9.99999974E-6 : f32
    %559 = vector.broadcast %cst_265 : f32 to vector<16x1xf32>
    %560 = arith.addf %558, %559 : vector<16x1xf32>
    %561 = math.rsqrt %560 : vector<16x1xf32>
    %562 = vector.broadcast %561 : vector<16x1xf32> to vector<16x32xf32>
    %563 = arith.mulf %553, %562 : vector<16x32xf32>
    %564 = vector.broadcast %546 : vector<1x32xf32> to vector<16x32xf32>
    %565 = arith.mulf %563, %564 : vector<16x32xf32>
    %566 = vector.broadcast %547 : vector<1x32xf32> to vector<16x32xf32>
    %567 = arith.addf %565, %566 : vector<16x32xf32>
    %c0_266 = arith.constant 0 : index
    %c0_267 = arith.constant 0 : index
    %568 = vector.load %arg39[%c0_266, %c0_267] : memref<32x137xf32, #tpu.memory_space<vmem>>, vector<32x137xf32>
    %cst_268 = arith.constant dense<0.000000e+00> : vector<16x137xf32>
    %569 = tpu.matmul %567, %568, %cst_268 {dimension_numbers = #tpu.dot_dimension_numbers<[1], [0], [0], [1], [0, 0, 1, 1], [], []>} : vector<16x32xf32>, vector<32x137xf32>, vector<16x137xf32> -> vector<16x137xf32>
    %c0_269 = arith.constant 0 : index
    %c0_270 = arith.constant 0 : index
    %570 = vector.load %arg40[%c0_269, %c0_270] : memref<1x137xf32, #tpu.memory_space<vmem>>, vector<1x137xf32>
    %571 = vector.broadcast %570 : vector<1x137xf32> to vector<16x137xf32>
    %572 = arith.addf %569, %571 : vector<16x137xf32>
    %cst_271 = arith.constant 1.000000e+00 : f32
    %573 = vector.broadcast %cst_271 : f32 to vector<16x1xf32>
    %574 = arith.subf %573, %375 : vector<16x1xf32>
    %575 = math.exp %572 : vector<16x137xf32>
    %576 = arith.mulf %1, %572 : vector<16x137xf32>
    %577 = arith.subf %575, %576 : vector<16x137xf32>
    %578 = vector.broadcast %574 : vector<16x1xf32> to vector<16x137xf32>
    %579 = arith.mulf %577, %578 : vector<16x137xf32>
    %580 = vector.shape_cast %579 : vector<16x137xf32> to vector<1x16x137xf32>
    %cst_272 = arith.constant dense<0.000000e+00> : vector<1xf32>
    %581 = vector.multi_reduction <add>, %580, %cst_272 [1, 2] : vector<1x16x137xf32> to vector<1xf32>
    %582 = vector.shape_cast %581 : vector<1xf32> to vector<1x1x1xf32>
    %583 = vector.extract %582[0, 0, 0] : f32 from vector<1x1x1xf32>
    %584 = vector.shape_cast %574 : vector<16x1xf32> to vector<1x16x1xf32>
    %cst_273 = arith.constant dense<0.000000e+00> : vector<1xf32>
    %585 = vector.multi_reduction <add>, %584, %cst_273 [1, 2] : vector<1x16x1xf32> to vector<1xf32>
    %586 = vector.shape_cast %585 : vector<1xf32> to vector<1x1x1xf32>
    %587 = vector.extract %586[0, 0, 0] : f32 from vector<1x1x1xf32>
    %588 = tpu.iota {dimensions = array<i32: 1>} : vector<1x128xi32>
    %c0_i32 = arith.constant 0 : i32
    %589 = vector.broadcast %c0_i32 : i32 to vector<1x128xi32>
    %590 = arith.cmpi eq, %588, %589 : vector<1x128xi32>
    %c1_i32 = arith.constant 1 : i32
    %591 = vector.broadcast %c1_i32 : i32 to vector<1x128xi32>
    %592 = arith.cmpi eq, %588, %591 : vector<1x128xi32>
    %cst_274 = arith.constant 0.000000e+00 : f32
    %593 = vector.broadcast %587 : f32 to vector<1x128xf32>
    %594 = vector.broadcast %cst_274 : f32 to vector<1x128xf32>
    %595 = arith.select %592, %593, %594 : vector<1x128xi1>, vector<1x128xf32>
    %596 = vector.broadcast %583 : f32 to vector<1x128xf32>
    %597 = arith.select %590, %596, %595 : vector<1x128xi1>, vector<1x128xf32>
    %c0_275 = arith.constant 0 : index
    %c0_276 = arith.constant 0 : index
    %c0_277 = arith.constant 0 : index
    %598 = vector.load %arg41[%c0_275, %c0_276, %c0_277] : memref<1x1x128xf32, #tpu.memory_space<vmem>>, vector<1x1x128xf32>
    %599 = vector.shape_cast %598 : vector<1x1x128xf32> to vector<1x128xf32>
    %600 = vector.shape_cast %597 : vector<1x128xf32> to vector<1x1x128xf32>
    tpu.vector_store %arg41[%c0_275, %c0_276, %c0_277], %600 {strides = array<i32>} : memref<1x1x128xf32, #tpu.memory_space<vmem>>, vector<1x1x128xf32>,
    return
  }
  func.func @transform_0(%arg0: i32) -> (i32, i32, i32) {
    %c0_i32 = arith.constant 0 : i32
    %c0_i32_0 = arith.constant 0 : i32
    %c0_i32_1 = arith.constant 0 : i32
    return %arg0, %c0_i32, %c0_i32_0 : i32, i32, i32
  }
  func.func @transform_1(%arg0: i32) -> (i32, i32, i32) {
    %c0_i32 = arith.constant 0 : i32
    %c0_i32_0 = arith.constant 0 : i32
    %c0_i32_1 = arith.constant 0 : i32
    return %arg0, %c0_i32, %c0_i32_0 : i32, i32, i32
  }
  func.func @transform_2(%arg0: i32) -> (i32, i32, i32) {
    %c0_i32 = arith.constant 0 : i32
    %c0_i32_0 = arith.constant 0 : i32
    %c0_i32_1 = arith.constant 0 : i32
    return %arg0, %c0_i32, %c0_i32_0 : i32, i32, i32
  }
  func.func @transform_3(%arg0: i32) -> (i32, i32) {
    %c0_i32 = arith.constant 0 : i32
    %c0_i32_0 = arith.constant 0 : i32
    %c0_i32_1 = arith.constant 0 : i32
    return %c0_i32, %c0_i32_0 : i32, i32
  }
  func.func @transform_4(%arg0: i32) -> (i32, i32) {
    %c0_i32 = arith.constant 0 : i32
    %c0_i32_0 = arith.constant 0 : i32
    %c0_i32_1 = arith.constant 0 : i32
    return %c0_i32, %c0_i32_0 : i32, i32
  }
  func.func @transform_5(%arg0: i32) -> (i32, i32) {
    %c0_i32 = arith.constant 0 : i32
    %c0_i32_0 = arith.constant 0 : i32
    %c0_i32_1 = arith.constant 0 : i32
    return %c0_i32, %c0_i32_0 : i32, i32
  }
  func.func @transform_6(%arg0: i32) -> (i32, i32, i32) {
    %c0_i32 = arith.constant 0 : i32
    %c0_i32_0 = arith.constant 0 : i32
    %c0_i32_1 = arith.constant 0 : i32
    %c0_i32_2 = arith.constant 0 : i32
    return %c0_i32, %c0_i32_0, %c0_i32_1 : i32, i32, i32
  }
  func.func @transform_7(%arg0: i32) -> (i32, i32, i32) {
    %c0_i32 = arith.constant 0 : i32
    %c0_i32_0 = arith.constant 0 : i32
    %c0_i32_1 = arith.constant 0 : i32
    %c0_i32_2 = arith.constant 0 : i32
    return %c0_i32, %c0_i32_0, %c0_i32_1 : i32, i32, i32
  }
  func.func @transform_8(%arg0: i32) -> (i32, i32, i32) {
    %c0_i32 = arith.constant 0 : i32
    %c0_i32_0 = arith.constant 0 : i32
    %c0_i32_1 = arith.constant 0 : i32
    %c0_i32_2 = arith.constant 0 : i32
    return %c0_i32, %c0_i32_0, %c0_i32_1 : i32, i32, i32
  }
  func.func @transform_9(%arg0: i32) -> (i32, i32, i32) {
    %c0_i32 = arith.constant 0 : i32
    %c0_i32_0 = arith.constant 0 : i32
    %c0_i32_1 = arith.constant 0 : i32
    %c0_i32_2 = arith.constant 0 : i32
    return %c0_i32, %c0_i32_0, %c0_i32_1 : i32, i32, i32
  }
  func.func @transform_10(%arg0: i32) -> (i32, i32, i32) {
    %c0_i32 = arith.constant 0 : i32
    %c0_i32_0 = arith.constant 0 : i32
    %c0_i32_1 = arith.constant 0 : i32
    %c0_i32_2 = arith.constant 0 : i32
    return %c0_i32, %c0_i32_0, %c0_i32_1 : i32, i32, i32
  }
  func.func @transform_11(%arg0: i32) -> (i32, i32, i32) {
    %c0_i32 = arith.constant 0 : i32
    %c0_i32_0 = arith.constant 0 : i32
    %c0_i32_1 = arith.constant 0 : i32
    %c0_i32_2 = arith.constant 0 : i32
    return %c0_i32, %c0_i32_0, %c0_i32_1 : i32, i32, i32
  }
  func.func @transform_12(%arg0: i32) -> (i32, i32, i32) {
    %c0_i32 = arith.constant 0 : i32
    %c0_i32_0 = arith.constant 0 : i32
    %c0_i32_1 = arith.constant 0 : i32
    %c0_i32_2 = arith.constant 0 : i32
    return %c0_i32, %c0_i32_0, %c0_i32_1 : i32, i32, i32
  }
  func.func @transform_13(%arg0: i32) -> (i32, i32, i32) {
    %c0_i32 = arith.constant 0 : i32
    %c0_i32_0 = arith.constant 0 : i32
    %c0_i32_1 = arith.constant 0 : i32
    %c0_i32_2 = arith.constant 0 : i32
    return %c0_i32, %c0_i32_0, %c0_i32_1 : i32, i32, i32
  }
  func.func @transform_14(%arg0: i32) -> (i32, i32, i32) {
    %c0_i32 = arith.constant 0 : i32
    %c0_i32_0 = arith.constant 0 : i32
    %c0_i32_1 = arith.constant 0 : i32
    %c0_i32_2 = arith.constant 0 : i32
    return %c0_i32, %c0_i32_0, %c0_i32_1 : i32, i32, i32
  }
  func.func @transform_15(%arg0: i32) -> (i32, i32, i32) {
    %c0_i32 = arith.constant 0 : i32
    %c0_i32_0 = arith.constant 0 : i32
    %c0_i32_1 = arith.constant 0 : i32
    %c0_i32_2 = arith.constant 0 : i32
    return %c0_i32, %c0_i32_0, %c0_i32_1 : i32, i32, i32
  }
  func.func @transform_16(%arg0: i32) -> (i32, i32, i32) {
    %c0_i32 = arith.constant 0 : i32
    %c0_i32_0 = arith.constant 0 : i32
    %c0_i32_1 = arith.constant 0 : i32
    %c0_i32_2 = arith.constant 0 : i32
    return %c0_i32, %c0_i32_0, %c0_i32_1 : i32, i32, i32
  }
  func.func @transform_17(%arg0: i32) -> (i32, i32, i32) {
    %c0_i32 = arith.constant 0 : i32
    %c0_i32_0 = arith.constant 0 : i32
    %c0_i32_1 = arith.constant 0 : i32
    %c0_i32_2 = arith.constant 0 : i32
    return %c0_i32, %c0_i32_0, %c0_i32_1 : i32, i32, i32
  }
  func.func @transform_18(%arg0: i32) -> (i32, i32) {
    %c0_i32 = arith.constant 0 : i32
    %c0_i32_0 = arith.constant 0 : i32
    %c0_i32_1 = arith.constant 0 : i32
    return %c0_i32, %c0_i32_0 : i32, i32
  }
  func.func @transform_19(%arg0: i32) -> (i32, i32) {
    %c0_i32 = arith.constant 0 : i32
    %c0_i32_0 = arith.constant 0 : i32
    %c0_i32_1 = arith.constant 0 : i32
    return %c0_i32, %c0_i32_0 : i32, i32
  }
  func.func @transform_20(%arg0: i32) -> (i32, i32) {
    %c0_i32 = arith.constant 0 : i32
    %c0_i32_0 = arith.constant 0 : i32
    %c0_i32_1 = arith.constant 0 : i32
    return %c0_i32, %c0_i32_0 : i32, i32
  }
  func.func @transform_21(%arg0: i32) -> (i32, i32) {
    %c0_i32 = arith.constant 0 : i32
    %c0_i32_0 = arith.constant 0 : i32
    %c0_i32_1 = arith.constant 0 : i32
    return %c0_i32, %c0_i32_0 : i32, i32
  }
  func.func @transform_22(%arg0: i32) -> (i32, i32) {
    %c0_i32 = arith.constant 0 : i32
    %c0_i32_0 = arith.constant 0 : i32
    %c0_i32_1 = arith.constant 0 : i32
    return %c0_i32, %c0_i32_0 : i32, i32
  }
  func.func @transform_23(%arg0: i32) -> (i32, i32) {
    %c0_i32 = arith.constant 0 : i32
    %c0_i32_0 = arith.constant 0 : i32
    %c0_i32_1 = arith.constant 0 : i32
    return %c0_i32, %c0_i32_0 : i32, i32
  }
  func.func @transform_24(%arg0: i32) -> (i32, i32, i32) {
    %c0_i32 = arith.constant 0 : i32
    %c0_i32_0 = arith.constant 0 : i32
    %c0_i32_1 = arith.constant 0 : i32
    %c0_i32_2 = arith.constant 0 : i32
    return %c0_i32, %c0_i32_0, %c0_i32_1 : i32, i32, i32
  }
  func.func @transform_25(%arg0: i32) -> (i32, i32, i32) {
    %c0_i32 = arith.constant 0 : i32
    %c0_i32_0 = arith.constant 0 : i32
    %c0_i32_1 = arith.constant 0 : i32
    %c0_i32_2 = arith.constant 0 : i32
    return %c0_i32, %c0_i32_0, %c0_i32_1 : i32, i32, i32
  }
  func.func @transform_26(%arg0: i32) -> (i32, i32, i32) {
    %c0_i32 = arith.constant 0 : i32
    %c0_i32_0 = arith.constant 0 : i32
    %c0_i32_1 = arith.constant 0 : i32
    %c0_i32_2 = arith.constant 0 : i32
    return %c0_i32, %c0_i32_0, %c0_i32_1 : i32, i32, i32
  }
  func.func @transform_27(%arg0: i32) -> (i32, i32, i32) {
    %c0_i32 = arith.constant 0 : i32
    %c0_i32_0 = arith.constant 0 : i32
    %c0_i32_1 = arith.constant 0 : i32
    %c0_i32_2 = arith.constant 0 : i32
    return %c0_i32, %c0_i32_0, %c0_i32_1 : i32, i32, i32
  }
  func.func @transform_28(%arg0: i32) -> (i32, i32, i32) {
    %c0_i32 = arith.constant 0 : i32
    %c0_i32_0 = arith.constant 0 : i32
    %c0_i32_1 = arith.constant 0 : i32
    %c0_i32_2 = arith.constant 0 : i32
    return %c0_i32, %c0_i32_0, %c0_i32_1 : i32, i32, i32
  }
  func.func @transform_29(%arg0: i32) -> (i32, i32, i32) {
    %c0_i32 = arith.constant 0 : i32
    %c0_i32_0 = arith.constant 0 : i32
    %c0_i32_1 = arith.constant 0 : i32
    %c0_i32_2 = arith.constant 0 : i32
    return %c0_i32, %c0_i32_0, %c0_i32_1 : i32, i32, i32
  }
  func.func @transform_30(%arg0: i32) -> (i32, i32, i32) {
    %c0_i32 = arith.constant 0 : i32
    %c0_i32_0 = arith.constant 0 : i32
    %c0_i32_1 = arith.constant 0 : i32
    %c0_i32_2 = arith.constant 0 : i32
    return %c0_i32, %c0_i32_0, %c0_i32_1 : i32, i32, i32
  }
  func.func @transform_31(%arg0: i32) -> (i32, i32, i32) {
    %c0_i32 = arith.constant 0 : i32
    %c0_i32_0 = arith.constant 0 : i32
    %c0_i32_1 = arith.constant 0 : i32
    %c0_i32_2 = arith.constant 0 : i32
    return %c0_i32, %c0_i32_0, %c0_i32_1 : i32, i32, i32
  }
  func.func @transform_32(%arg0: i32) -> (i32, i32, i32) {
    %c0_i32 = arith.constant 0 : i32
    %c0_i32_0 = arith.constant 0 : i32
    %c0_i32_1 = arith.constant 0 : i32
    %c0_i32_2 = arith.constant 0 : i32
    return %c0_i32, %c0_i32_0, %c0_i32_1 : i32, i32, i32
  }
  func.func @transform_33(%arg0: i32) -> (i32, i32, i32) {
    %c0_i32 = arith.constant 0 : i32
    %c0_i32_0 = arith.constant 0 : i32
    %c0_i32_1 = arith.constant 0 : i32
    %c0_i32_2 = arith.constant 0 : i32
    return %c0_i32, %c0_i32_0, %c0_i32_1 : i32, i32, i32
  }
  func.func @transform_34(%arg0: i32) -> (i32, i32, i32) {
    %c0_i32 = arith.constant 0 : i32
    %c0_i32_0 = arith.constant 0 : i32
    %c0_i32_1 = arith.constant 0 : i32
    %c0_i32_2 = arith.constant 0 : i32
    return %c0_i32, %c0_i32_0, %c0_i32_1 : i32, i32, i32
  }
  func.func @transform_35(%arg0: i32) -> (i32, i32, i32) {
    %c0_i32 = arith.constant 0 : i32
    %c0_i32_0 = arith.constant 0 : i32
    %c0_i32_1 = arith.constant 0 : i32
    %c0_i32_2 = arith.constant 0 : i32
    return %c0_i32, %c0_i32_0, %c0_i32_1 : i32, i32, i32
  }
  func.func @transform_36(%arg0: i32) -> (i32, i32) {
    %c0_i32 = arith.constant 0 : i32
    %c0_i32_0 = arith.constant 0 : i32
    %c0_i32_1 = arith.constant 0 : i32
    return %c0_i32, %c0_i32_0 : i32, i32
  }
  func.func @transform_37(%arg0: i32) -> (i32, i32) {
    %c0_i32 = arith.constant 0 : i32
    %c0_i32_0 = arith.constant 0 : i32
    %c0_i32_1 = arith.constant 0 : i32
    return %c0_i32, %c0_i32_0 : i32, i32
  }
  func.func @transform_38(%arg0: i32) -> (i32, i32) {
    %c0_i32 = arith.constant 0 : i32
    %c0_i32_0 = arith.constant 0 : i32
    %c0_i32_1 = arith.constant 0 : i32
    return %c0_i32, %c0_i32_0 : i32, i32
  }
  func.func @transform_39(%arg0: i32) -> (i32, i32) {
    %c0_i32 = arith.constant 0 : i32
    %c0_i32_0 = arith.constant 0 : i32
    %c0_i32_1 = arith.constant 0 : i32
    return %c0_i32, %c0_i32_0 : i32, i32
  }
  func.func @transform_40(%arg0: i32) -> (i32, i32, i32) {
    %c0_i32 = arith.constant 0 : i32
    %c0_i32_0 = arith.constant 0 : i32
    %c0_i32_1 = arith.constant 0 : i32
    return %arg0, %c0_i32, %c0_i32_0 : i32, i32, i32
  }
}

</mosaic_0001>

<bundles_post_ra>
// kernel: mae_forward.1
= control target key start
LH: loop header
LB: loop body
LE: loop exit
PB: predicated region body
PF: predicated region fallthrough
CT: control target
= control target key end

     0   :  { %s7158_s6 = smov 1   ;;  %s7159_s10 = smov 2   ;;  %s8166_s0 = inlined_call_operand.smem [shape: u32[41], index: -1, kind: input, shape index: {}] }
   0x1   :  { %s7222_s5 = sld [smem:[%s8166_s0]]   ;;  %s7160_s14 = smov 3  }
   0x2   :  { %s7227_s9 = sld [smem:[%s8166_s0 + %s7158_s6]]   ;;  %s7161_s18 = smov 4  }
   0x3   :  { %s7232_s13 = sld [smem:[%s8166_s0 + %s7159_s10]]   ;;  %s7162_s22 = smov 5  }
   0x4   :  { %s7237_s17 = sld [smem:[%s8166_s0 + %s7160_s14]]   ;;  %s7163_s26 = smov 6  }
   0x5   :  { %s7242_s21 = sld [smem:[%s8166_s0 + %s7161_s18]]   ;;  %s7164_s30 = smov 7  }
   0x6   :  { %s7247_s25 = sld [smem:[%s8166_s0 + %s7162_s22]]   ;;  %s7165_s4 = smov 8  }
   0x7   :  { %8210 = sst [smem:[#allocation2_spill]] %s7222_s5  ;;  %s7166_s10 = smov 9  }
   0x8   :  { %s7252_s29 = sld [smem:[%s8166_s0 + %s7163_s26]]   ;;  %s7167_s15 = smov 10  }
   0x9   :  { %8211 = sst [smem:[#allocation3_spill]] %s7232_s13  ;;  %s7168_s20 = smov 11  }
   0xa   :  { %s7257_s3 = sld [smem:[%s8166_s0 + %s7164_s30]]   ;;  %s7169_s26 = smov 12  }
   0xb   :  { %s7262_s8 = sld [smem:[%s8166_s0 + %s7165_s4]]   ;;  %s7170_s1 = smov 13  }
   0xc   :  { %s7267_s14 = sld [smem:[%s8166_s0 + %s7166_s10]]   ;;  %s7171_s7 = smov 14  }
   0xd   :  { %s7272_s19 = sld [smem:[%s8166_s0 + %s7167_s15]]   ;;  %s7172_s15 = smov 15  }
   0xe   :  { %s7277_s24 = sld [smem:[%s8166_s0 + %s7168_s20]]   ;;  %s7173_s22 = smov 16  }
   0xf   :  { %s7282_s30 = sld [smem:[%s8166_s0 + %s7169_s26]]   ;;  %s7174_s28 = smov 17  }
  0x10   :  { %8212 = sst [smem:[#allocation4_spill]] %s7257_s3 }
  0x11   :  { %s7287_s6 = sld [smem:[%s8166_s0 + %s7170_s1]]  }
  0x12   :  { %s7292_s12 = sld [smem:[%s8166_s0 + %s7171_s7]]   ;;  %s7175_s7 = smov 18  }
  0x13   :  { %s7297_s20 = sld [smem:[%s8166_s0 + %s7172_s15]]   ;;  %s7176_s15 = smov 19  }
  0x14   :  { %s7302_s27 = sld [smem:[%s8166_s0 + %s7173_s22]]   ;;  %s7177_s22 = smov 20  }
  0x15   :  { %s7307_s4 = sld [smem:[%s8166_s0 + %s7174_s28]]   ;;  %s7178_s28 = smov 21  }
  0x16   :  { %s7312_s13 = sld [smem:[%s8166_s0 + %s7175_s7]]   ;;  %s7179_s7 = smov 22  }
  0x19   :  { %8213 = sst [smem:[#allocation5_spill]] %s7297_s20 }
  0x1a   :  { %8214 = sst [smem:[#allocation6_spill]] %s7302_s27 }
  0x1b   :  { %8215 = sst [smem:[#allocation7_spill]] %s7307_s4 }
  0x1c   :  { %8216 = sst [smem:[#allocation8_spill]] %s7312_s13 }
  0x1d   :  { %s7317_s20 = sld [smem:[%s8166_s0 + %s7176_s15]]   ;;  %s7180_s15 = smov 23  }
  0x1e   :  { %s7322_s27 = sld [smem:[%s8166_s0 + %s7177_s22]]   ;;  %s7181_s22 = smov 24  }
  0x1f   :  { %s7327_s4 = sld [smem:[%s8166_s0 + %s7178_s28]]   ;;  %s7182_s28 = smov 25  }
  0x20   :  { %s7332_s13 = sld [smem:[%s8166_s0 + %s7179_s7]]   ;;  %s7183_s7 = smov 26  }
  0x23   :  { %8217 = sst [smem:[#allocation9_spill]] %s7317_s20 }
  0x24   :  { %8218 = sst [smem:[#allocation10_spill]] %s7322_s27 }
  0x25   :  { %8219 = sst [smem:[#allocation11_spill]] %s7327_s4 }
  0x26   :  { %8220 = sst [smem:[#allocation12_spill]] %s7332_s13 }
  0x27   :  { %s7337_s20 = sld [smem:[%s8166_s0 + %s7180_s15]]   ;;  %s7184_s15 = smov 27  }
  0x28   :  { %s7342_s27 = sld [smem:[%s8166_s0 + %s7181_s22]]   ;;  %s7185_s22 = smov 28  }
  0x29   :  { %s7347_s4 = sld [smem:[%s8166_s0 + %s7182_s28]]   ;;  %s7186_s28 = smov 29  }
  0x2a   :  { %s7352_s13 = sld [smem:[%s8166_s0 + %s7183_s7]]   ;;  %s7187_s7 = smov 30  }
  0x2d   :  { %8221 = sst [smem:[#allocation13_spill]] %s7337_s20 }
  0x2e   :  { %8222 = sst [smem:[#allocation14_spill]] %s7342_s27 }
  0x2f   :  { %8223 = sst [smem:[#allocation15_spill]] %s7347_s4 }
  0x30   :  { %8224 = sst [smem:[#allocation16_spill]] %s7352_s13 }
  0x31   :  { %s7357_s20 = sld [smem:[%s8166_s0 + %s7184_s15]]   ;;  %s7188_s15 = smov 31  }
  0x32   :  { %s7362_s27 = sld [smem:[%s8166_s0 + %s7185_s22]]   ;;  %s7189_s22 = smov 32  }
  0x33   :  { %s7367_s4 = sld [smem:[%s8166_s0 + %s7186_s28]]   ;;  %s7190_s28 = smov 33  }
  0x34   :  { %s7372_s13 = sld [smem:[%s8166_s0 + %s7187_s7]]   ;;  %s7191_s7 = smov 34  }
  0x37   :  { %8225 = sst [smem:[#allocation17_spill]] %s7357_s20 }
  0x38   :  { %8226 = sst [smem:[#allocation18_spill]] %s7362_s27 }
  0x39   :  { %8227 = sst [smem:[#allocation19_spill]] %s7367_s4 }
  0x3a   :  { %8228 = sst [smem:[#allocation20_spill]] %s7372_s13 }
  0x3b   :  { %s7377_s20 = sld [smem:[%s8166_s0 + %s7188_s15]]   ;;  %s7192_s15 = smov 35  }
  0x3c   :  { %s7382_s27 = sld [smem:[%s8166_s0 + %s7189_s22]]   ;;  %s7193_s22 = smov 36  }
  0x3d   :  { %s7387_s4 = sld [smem:[%s8166_s0 + %s7190_s28]]   ;;  %s7194_s28 = smov 37  }
  0x3e   :  { %s7392_s13 = sld [smem:[%s8166_s0 + %s7191_s7]]   ;;  %s7195_s7 = smov 38  }
  0x41   :  { %8229 = sst [smem:[#allocation21_spill]] %s7377_s20 }
  0x42   :  { %8230 = sst [smem:[#allocation22_spill]] %s7382_s27 }
  0x43   :  { %8231 = sst [smem:[#allocation23_spill]] %s7387_s4 }
  0x44   :  { %8232 = sst [smem:[#allocation24_spill]] %s7392_s13 }
  0x45   :  { %s7397_s20 = sld [smem:[%s8166_s0 + %s7192_s15]]   ;;  %s7196_s15 = smov 39  }
  0x46   :  { %s7402_s27 = sld [smem:[%s8166_s0 + %s7193_s22]]   ;;  %s7197_s22 = smov 40  }
  0x47   :  { %s7407_s4 = sld [smem:[%s8166_s0 + %s7194_s28]]   ;;  %s7424_s28 = smov 0  }
  0x48   :  { %s7412_s13 = sld [smem:[%s8166_s0 + %s7195_s7]]  }
  0x4b   :  { %8233 = sst [smem:[#allocation25_spill]] %s7397_s20 }
  0x4c   :  { %8234 = sst [smem:[#allocation26_spill]] %s7402_s27 }
  0x4d   :  { %s7417_s20 = sld [smem:[%s8166_s0 + %s7196_s15]]  }
  0x4e   :  { %s7422_s27 = sld [smem:[%s8166_s0 + %s7197_s22]]  }
  0x4f LB: > { %s8235_s3 = sld [smem:[#allocation4_spill]]  ;;  %s6112_s1 = sadd.s32 4294967295, %s7156_s28   ;;  %s7156_s28 = sphi %s7424_s28, %s91_s28  }
  0x50   : > { %p6116_p0 = scmp.ge.s32.totalorder %s7156_s28, 1  ;;  %p1123_p1 = scmp.lt.s32.totalorder %s7156_s28, 3 }
  0x52   : > { %p1124_p2 = pnand %p6116_p0, %p1123_p1 }
  0x53   : > { %p1229_p3 = scmp.lt.s32.totalorder (!%p1124_p2), %s6112_s1, 1  ;;  %s8236_s5 = sld [smem:[#allocation2_spill]] (!%p1124_p2) }
  0x54   : > { %1127 = sbr.rel (%p1124_p2) target bundleno = 12399 (0x306f), region = 180  ;;  %s8203_s11 = smov (!%p1124_p2), 96  }
  0x55   : > { %s8197_s15 = smov (!%p1124_p2), 64   ;;  %s8201_s16 = smov (!%p1124_p2), 88  }
  0x56   : > { %s8199_s18 = smov (!%p1124_p2), 120   ;;  %s8195_s22 = smov (!%p1124_p2), 56  }
  0x57   : > { %s8193_s23 = smov (!%p1124_p2), 80   ;;  %s8191_s26 = smov (!%p1124_p2), 112  }
  0x59   : > { %v7198_v0 = vmov 0   ;;  %v7199_v1 = vmov 0.0   ;;  %s8276_s1 = smov (!%p1229_p3, %s6112_s1), 1  ;;  %v1354_v2 = vld [vmem:[%s7247_s25 + $0x8] sm:$0xff]  ;;  %v1353_v9 = vld [vmem:[%s7247_s25] sm:$0xff]  ;;  %v1255_v10 = vlaneseq  ;;  %vm1269_vm0 = vcmask 130048  }
  0x5a   : > { %6996 = vset.pattern.permute.xlu0 %v7198_v0  ;;  %1340 = vmatprep.mubr.f32.mxu0 %v7199_v1  ;;  %s8176_s0 = sshll.u32 %s8276_s1, 4  ;;  %s6310_s2 = sshll.u32 %s8276_s1, 5  ;;  %v1445_v13 = vld [vmem:[%s7237_s17 + $0x78] sm:$0xff]  ;;  %v1444_v15 = vld [vmem:[%s7237_s17 + $0x70] sm:$0xff]  ;;  %v1443_v18 = vld [vmem:[%s7237_s17 + $0x68] sm:$0xff]  ;;  %vm1462_vm3 = vcmask 1040384  }
  0x5b   : > { %6997 = vset.pattern.permute.xlu1 %v7198_v0  ;;  %s1238_s7 = scalar_lea.vmem %s7227_s9, %s8176_s0  ;;  %6531 = vmatprep.subr.mxu1 %v1354_v2  ;;  %s7442_s10 = scalar_lea.vmem %s8236_s5, %s6310_s2  ;;  %v7451_v11 = vand.u32 127, %v1255_v10  ;;  %v1442_v19 = vld [vmem:[%s7237_s17 + $0x60] sm:$0xff]  ;;  %v1441_v20 = vld [vmem:[%s7237_s17 + $0x58] sm:$0xff]  ;;  %v1440_v21 = vld [vmem:[%s7237_s17 + $0x50] sm:$0xff]  ;;  %vm1455_vm4 = vcmask 72704   ;;  %vm1545_vm5 = vcmask 261120  }
  0x5c   : > { %v1251_v3 = vld [vmem:[%s1238_s7] sm:$0xff]  ;;  %6532 = vmatpush3.msra.mxu1 %v1354_v2  ;;  %v1250_v4 = vld [vmem:[%s7442_s10 + $0x18] sm:$0xff]  ;;  %v1249_v5 = vld [vmem:[%s7442_s10 + $0x10] sm:$0xff]  ;;  %vm1549_vm6 = vcmask 259072   ;;  %vm1688_vm7 = vcmask 64512   ;;  %vm1778_vm8 = vcmask 111616  }
  0x5d   : > { %1258 = vperm.xlu0 %6996, %v1251_v3   ;;  %v1248_v6 = vld [vmem:[%s7442_s10 + $0x8] sm:$0xff]  ;;  %1304 = vmatprep.subr.mxu0 %v1250_v4  ;;  %v1247_v8 = vld [vmem:[%s7442_s10] sm:$0xff]  ;;  %v1437_v24 = vld [vmem:[%s7237_s17 + $0x38] sm:$0xff]  ;;  %vm1774_vm9 = vcmask 113664   ;;  %vm1809_vm10 = vcmask 1045504   ;;  %s8179_s2 = smov 72  }
  0x5e   : > { %v1252_v7 = vld [vmem:[%s1238_s7 + $0x8] sm:$0x3f]  ;;  %1305 = vmatpush1.msra.mxu0 %v1249_v5  ;;  %6533 = vmatprep.subr.mxu1 %v1353_v9  ;;  %v1438_v23 = vld [vmem:[%s7237_s17 + $0x40] sm:$0xff]  ;;  %v1436_v25 = vld [vmem:[%s7237_s17 + $0x30] sm:$0xff]  ;;  %s8177_s7 = smov 104   ;;  %s8189_s0 = smov 48  }
  0x5f   : > { %1306 = vmatprep.subr.mxu0 %v1248_v6  ;;  %6534 = vmatpush3.msra.mxu1 %v1353_v9  ;;  %v1439_v22 = vld [vmem:[%s7237_s17 + $0x48] sm:$0xff]  ;;  %v1434_v27 = vld [vmem:[%s7237_s17 + $0x20] sm:$0xff]  ;;  %v1433_v28 = vld [vmem:[%s7237_s17 + $0x18] sm:$0xff]  ;;  %vm2524_vm11 = vcmask 195584  }
  0x60   : > { %1307 = vmatpush1.msra.mxu0 %v1247_v8  ;;  %v1435_v26 = vld [vmem:[%s7237_s17 + $0x28] sm:$0xff]  ;;  %v1432_v29 = vld [vmem:[%s7237_s17 + $0x10] sm:$0xff]  ;;  %v1430_v31 = vld [vmem:[%s7237_s17] sm:$0xff] }
  0x61   : > { %1261 = vperm.xlu0 %6996, %v1252_v7   ;;  %1466 = vmatprep.subr.mxu0 %v7199_v1  ;;  %v1431_v30 = vld [vmem:[%s7237_s17 + $0x8] sm:$0xff]  ;;  %v1446_v33 = vld [vmem:[%s7237_s17 + $0x80] sm:$0xff]  ;;  %v1593_v61 = vld [vmem:[%s7262_s8 + $0x18] sm:$0xff] }
  0x62   : > { %v1447_v32 = vld [vmem:[%s7237_s17 + $0x88] sm:$0x1]  ;;  %v6129_v39 = vld [vmem:[%s7242_s21] ss:$0 sm:$0xff]  ;;  %v1592_v62 = vld [vmem:[%s7262_s8 + $0x10] sm:$0xff] }
  0x63   : > { %v1591_v63 = vld [vmem:[%s7262_s8 + $0x8] sm:$0xff]  ;;  %v1590_v0 = vld [vmem:[%s7262_s8] sm:$0xff] }
  0x64   : > { %v6133_v9 = vld [vmem:[%s7252_s29] ss:$0 sm:$0xff] }
  0xd8   : > { %v1259_v12 = vpop.permute.xlu0 %1258 }
  0xd9   : > { %vm1263_vm1 = vcmp.eq.s32.totalorder %v1259_v12, %v7451_v11 }
  0xda   : > { %v6123_v14 = vsel %vm1263_vm1, 1.0, %v7199_v1  ;;  %vm5995_vm1 = vcmp.eq.s32.totalorder %v7451_v11, 1 }
  0xdb   : > { %6125 = vmatmul.mubr.msk.f32.vlgmr.msra.gmra.mxu0 %vm1269_vm0, %v6123_v14  ;;  %6535 = vmatprep.mubr.msk.f32.mxu1 %vm1269_vm0, %v6123_v14 }
  0xdc   : > { %v1262_v16 = vpop.permute.xlu0 %1261  ;;  %1346 = vmatprep.mubr.f32.mxu0 %v7199_v1  ;;  %1467 = vmatpush1.msra.mxu0 %v1445_v13  ;;  %v6134_v13 = vld [vmem:[%s8235_s3] ss:$0 sm:$0xff] }
  0xdd   : > { %vm1264_vm2 = vcmp.eq.s32.totalorder %v1262_v16, %v7451_v11  ;;  %1468 = vmatprep.subr.mxu0 %v7199_v1 }
  0xde   : > { %v6124_v17 = vsel %vm1264_vm2, 1.0, %v7199_v1  ;;  %1469 = vmatpush1.msra.mxu0 %v1444_v15  ;;  %vm5994_vm2 = vcmp.eq.s32.totalorder %v7451_v11, 0 }
  0xdf   : > { %6126 = vmatmul.mubr.msk.f32.gmra.mxu0 %vm1269_vm0, %v6124_v17  ;;  %6536 = vmatmul.mubr.msk.f32.vlgmr.msra.gmra.mxu1 %vm1269_vm0, %v6124_v17 }
  0xe0   : > { %1470 = vmatprep.subr.mxu0 %v7199_v1 }
  0xe1   : > { %1471 = vmatpush1.msra.mxu0 %v1443_v18 }
  0xe2   : > { %1472 = vmatprep.subr.mxu0 %v7199_v1 }
  0xe3   : > { %1473 = vmatpush1.msra.mxu0 %v1442_v19 }
  0xe4   : > { %1474 = vmatprep.subr.mxu0 %v7199_v1 }
  0xe5   : > { %1475 = vmatpush1.msra.mxu0 %v1441_v20  ;;  %v6135_v20 = vld [vmem:[%s7267_s14] ss:$0 sm:$0xff] }
  0xe6   : > { %1476 = vmatprep.subr.mxu0 %v7199_v1 }
  0xe7   : > { %1477 = vmatpush1.msra.mxu0 %v1440_v21 }
  0xe8   : > { %1478 = vmatprep.subr.mxu0 %v7199_v1 }
  0xe9   : > { %1479 = vmatpush1.msra.mxu0 %v1439_v22 }
  0xea   : > { %1480 = vmatprep.subr.mxu0 %v7199_v1 }
  0xeb   : > { %1481 = vmatpush1.msra.mxu0 %v1438_v23 }
  0xec   : > { %1482 = vmatprep.subr.mxu0 %v7199_v1 }
  0xed   : > { %1483 = vmatpush1.msra.mxu0 %v1437_v24 }
  0xee   : > { %1484 = vmatprep.subr.mxu0 %v7199_v1 }
  0xef   : > { %1485 = vmatpush1.msra.mxu0 %v1436_v25 }
  0xf0   : > { %1486 = vmatprep.subr.mxu0 %v7199_v1 }
  0xf1   : > { %1487 = vmatpush1.msra.mxu0 %v1435_v26 }
  0xf2   : > { %1488 = vmatprep.subr.mxu0 %v7199_v1 }
  0xf3   : > { %1489 = vmatpush1.msra.mxu0 %v1434_v27 }
  0xf4   : > { %1490 = vmatprep.subr.mxu0 %v7199_v1 }
  0xf5   : > { %1491 = vmatpush1.msra.mxu0 %v1433_v28 }
  0xf6   : > { %1492 = vmatprep.subr.mxu0 %v7199_v1 }
  0xf7   : > { %1493 = vmatpush1.msra.mxu0 %v1432_v29 }
  0xf8   : > { %1494 = vmatprep.subr.mxu0 %v7199_v1 }
  0xf9   : > { %1495 = vmatpush1.msra.mxu0 %v1431_v30 }
  0xfa   : > { %1496 = vmatprep.subr.mxu0 %v7199_v1 }
  0xfb   : > { %1497 = vmatpush1.msra.mxu0 %v1430_v31 }
  0xfc   : > { %1526 = vmatprep.subr.mxu0 %v7199_v1 }
  0xfd   : > { %6130 = vmatpush2.msk.msra.mxu0 %vm1462_vm3, %v1447_v32 }
  0xfe   : > { %1528 = vmatprep.subr.mxu0 %v7199_v1 }
  0xff   : > { %1529 = vmatpush2.msra.mxu0 %v1446_v33 }
 0x100   : > { %6538 = vmatprep.subr.mxu0 %v1593_v61 }
 0x19b   : > { %v1342_v34 = vpop.f32.mrf.mxu0 }
 0x19d   : > { %v1344_v35 = vpop.f32.mrf.mxu0 }
 0x19e   : > { %6131 = vmatprep.mubr.msk.f32.mxu0 %vm1455_vm4, %v1344_v35 }
 0x19f   : > { %v1348_v36 = vpop.f32.mrf.mxu0  ;;  %1531 = vmatmul.mubr.f32.vlgmr.msra.gmra.mxu0 %v1342_v34  ;;  %v6537_v38 = vpop.f32.mrf.mxu1 }
 0x1a0   : > { %6539 = vmatpush3.msra.mxu0 %v1593_v61 }
 0x1a1   : > { %v1350_v37 = vpop.f32.mrf.mxu0  ;;  %v1421_v42 = vpop.f32.mrf.mxu1  ;;  %6540 = vmatprep.subr.mxu0 %v1592_v62 }
 0x1a2   : > { %6132 = vmatprep.mubr.msk.f32.mxu0 %vm1455_vm4, %v1350_v37  ;;  %6541 = vmatpush3.msra.mxu0 %v1592_v62 }
 0x1a3   : > { %1536 = vmatmul.mubr.f32.gmra.mxu0 %v1348_v36  ;;  %6542 = vmatprep.subr.mxu0 %v1591_v63 }
 0x1a4   : > { %6543 = vmatpush3.msra.mxu0 %v1591_v63 }
 0x1a5   : > { %6544 = vmatprep.subr.mxu0 %v1590_v0 }
 0x1a6   : > { %6545 = vmatpush3.msra.mxu0 %v1590_v0 }
 0x25f   : > { %v1532_v40 = vpop.f32.mrf.mxu0 }
 0x260   : > { %v1533_v41 = vadd.f32 %v6129_v39, %v1532_v40 }
 0x261   : > { %v1534_v43 = vpop.f32.mrf.mxu0 }
 0x262   : > { %v7500_v44 = vadd.f32 %v1533_v41, %v1421_v42 }
 0x263   : > { %v1537_v45 = vpop.f32.mrf.mxu0 }
 0x264   : > { %v1538_v46 = vadd.f32 %v6129_v39, %v1537_v45  ;;  %v1546_v47 = vsel %vm1545_vm5, %v7500_v44, 0.0 }
 0x265   : > { %v1539_v48 = vpop.f32.mrf.mxu0  ;;  %1547 = vadd.xlane.f32.xlu1 %v1546_v47 }
 0x266   : > { %v7504_v49 = vadd.f32 %v6537_v38, %v1538_v46 }
 0x268   : > { %v1550_v50 = vsel %vm1549_vm6, %v7504_v49, 0.0 }
 0x269   : > { %1551 = vadd.xlane.f32.xlu1 %v1550_v50 }
 0x2ee   : > { %v1548_v51 = vpop.xlane.xlu1 %1547 }
 0x2ef   : > { %v1554_v52 = vmul.f32 0.03125, %v1548_v51 }
 0x2f1   : > { %v1556_v53 = vsub.f32 %v7500_v44, %v1554_v52 }
 0x2f2   : > { %v1552_v54 = vpop.xlane.xlu1 %1551 }
 0x2f3   : > { %v1555_v55 = vmul.f32 0.03125, %v1552_v54  ;;  %v1558_v56 = vmul.f32 %v1556_v53, %v1556_v53 }
 0x2f5   : > { %v1557_v57 = vsub.f32 %v7504_v49, %v1555_v55  ;;  %v1560_v58 = vsel %vm1545_vm5, %v1558_v56, 0.0 }
 0x2f6   : > { %1561 = vadd.xlane.f32.xlu0 %v1560_v58 }
 0x2f7   : > { %v1559_v59 = vmul.f32 %v1557_v57, %v1557_v57 }
 0x2f9   : > { %v1563_v60 = vsel %vm1549_vm6, %v1559_v59, 0.0 }
 0x2fa   : > { %1564 = vadd.xlane.f32.xlu1 %v1563_v60 }
 0x37f   : > { %v1562_v2 = vpop.xlane.xlu0 %1561 }
 0x380   : > { %v1566_v3 = vmul.f32 0.03125, %v1562_v2 }
 0x382   : > { %v1568_v4 = vadd.f32 1e-05, %v1566_v3 }
 0x383   : > { %v1565_v5 = vpop.xlane.xlu1 %1564 }
 0x384   : > { %6998 = vrsqrt.f32 %v1568_v4  ;;  %v1567_v6 = vmul.f32 0.03125, %v1565_v5 }
 0x386   : > { %v1569_v7 = vadd.f32 1e-05, %v1567_v6 }
 0x388   : > { %7000 = vrsqrt.f32 %v1569_v7 }
 0x391   : > { %v6999_v8 = vpop.eup %6998 }
 0x392   : > { %v1572_v12 = vmul.f32 %v6999_v8, %v1556_v53 }
 0x394   : > { %v1580_v14 = vmul.f32 %v6133_v9, %v1572_v12 }
 0x395   : > { %v7001_v15 = vpop.eup %7000 }
 0x396   : > { %v1573_v16 = vmul.f32 %v7001_v15, %v1557_v57  ;;  %v1588_v17 = vadd.f32 %v6134_v13, %v1580_v14 }
 0x398   : > { %v1581_v18 = vmul.f32 %v6133_v9, %v1573_v16  ;;  %6546 = vmatprep.mubr.msk.f32.mxu0 %vm1545_vm5, %v1588_v17 }
 0x39a   : > { %v1589_v19 = vadd.f32 %v6134_v13, %v1581_v18 }
 0x39c   : > { %6547 = vmatmul.mubr.msk.f32.vlgmr.msra.gmra.mxu0 %vm1545_vm5, %v1589_v19 }
 0x45c   : > { %v6548_v21 = vpop.f32.mrf.mxu0 }
 0x45d   : > { %v7521_v22 = vadd.f32 %v6548_v21, %v6135_v20 }
 0x45e   : > { %v1673_v23 = vpop.f32.mrf.mxu0 }
 0x45f   : > { %v7523_v24 = vadd.f32 %v6135_v20, %v1673_v23  ;;  %1686 = vrot.lane.b32.xlu1 %v7521_v22, %s8203_s11 }
 0x461   : > { %6553 = vmatprep.mubr.msk.f32.mxu1 %vm1688_vm7, %v7523_v24 }
 0x463   : > { %1684 = vrot.lane.b32.xlu1 %v7523_v24, %s8203_s11 }
 0x4d1   : > { %v1687_v25 = vpop.permute.xlu1 %1686 }
 0x4d2   : > { %6549 = vmatprep.subr.msk.mxu1 %vm1688_vm7, %v1687_v25 }
 0x4d3   : > { %6550 = vmatpush3.xpose.msk.msra.mxu1 %vm1688_vm7, %v1687_v25 }
 0x4d5   : > { %v1685_v26 = vpop.permute.xlu1 %1684 }
 0x4d6   : > { %6551 = vmatprep.subr.msk.mxu1 %vm1688_vm7, %v1685_v26 }
 0x4d7   : > { %6552 = vmatpush3.xpose.msk.msra.mxu1 %vm1688_vm7, %v1685_v26 }
 0x4da   : > { %6554 = vmatmul.mubr.msk.f32.vlgmr.msra.gmra.mxu1 %vm1688_vm7, %v7521_v22 }
 0x59a   : > { %v6555_v27 = vpop.f32.mrf.mxu1 }
 0x59b   : > { %v1773_v28 = vmul.f32 0.35355338, %v6555_v27 }
 0x59c   : > { %v1763_v29 = vpop.f32.mrf.mxu1 }
 0x59d   : > { %v1772_v30 = vmul.f32 0.35355338, %v1763_v29  ;;  %v1779_v31 = vsel %vm1778_vm8, %v1773_v28, -inf }
 0x59e   : > { %1780 = vmax.xlane.f32.xlu0 %v1779_v31 }
 0x59f   : > { %v1775_v32 = vsel %vm1774_vm9, %v1772_v30, -inf }
 0x5a0   : > { %1776 = vmax.xlane.f32.xlu1 %v1775_v32 }
 0x5b1   : > { %1798 = vrot.lane.b32.xlu1 %v7523_v24, %s8197_s15 }
 0x5b4   : > { %1800 = vrot.lane.b32.xlu0 %v7521_v22, %s8197_s15 }
 0x5b8   : > { %1893 = vrot.lane.b32.xlu0 %v7521_v22, %s8201_s16 }
 0x627   : > { %v1781_v33 = vpop.xlane.xlu0 %1780 }
 0x628   : > { %v1783_v34 = vsub.f32 %v1773_v28, %v1781_v33 }
 0x629   : > { %v1777_v35 = vpop.xlane.xlu1 %1776 }
 0x62a   : > { %v1786_v36 = vmul.f32 1.442695, %v1783_v34  ;;  %v1782_v37 = vsub.f32 %v1772_v30, %v1777_v35 }
 0x62b   : > { %v1801_v38 = vpop.permute.xlu0 %1800 }
 0x62c   : > { %7002 = vpow2.f32 %v1786_v36  ;;  %v1784_v39 = vmul.f32 1.442695, %v1782_v37  ;;  %6556 = vmatprep.subr.msk.mxu1 %vm1809_vm10, %v1801_v38 }
 0x62d   : > { %6557 = vmatpush3.msk.msra.mxu1 %vm1809_vm10, %v1801_v38  ;;  %v1799_v40 = vpop.permute.xlu1 %1798 }
 0x62e   : > { %7004 = vpow2.f32 %v1784_v39  ;;  %6558 = vmatprep.subr.mxu1 %v1799_v40 }
 0x62f   : > { %v1894_v41 = vpop.permute.xlu0 %1893  ;;  %6559 = vmatpush3.msra.mxu1 %v1799_v40 }
 0x630   : > { %6563 = vmatprep.subr.msk.mxu1 %vm1688_vm7, %v1894_v41 }
 0x639   : > { %v7003_v42 = vpop.eup %7002 }
 0x63a   : > { %v1791_v43 = vsel %vm1778_vm8, %v7003_v42, 0.0 }
 0x63b   : > { %v7005_v45 = vpop.eup %7004  ;;  %1792 = vadd.xlane.f32.xlu0 %v1791_v43 }
 0x63c   : > { %v1788_v46 = vsel %vm1774_vm9, %v7005_v45, 0.0 }
 0x63f   : > { %1789 = vadd.xlane.f32.xlu0 %v1788_v46 }
 0x655   : > { %1891 = vrot.lane.b32.xlu0 %v7523_v24, %s8201_s16 }
 0x659   : > { %1887 = vrot.lane.b32.xlu0 %v7523_v24, %s8199_s18 }
 0x65d   : > { %1889 = vrot.lane.b32.xlu0 %v7521_v22, %s8199_s18 }
 0x6c4   : > { %v1793_v47 = vpop.xlane.xlu0 %1792 }
 0x6c5   : > { %7006 = vrcp.f32 %v1793_v47 }
 0x6c8   : > { %v1790_v48 = vpop.xlane.xlu0 %1789 }
 0x6c9   : > { %7008 = vrcp.f32 %v1790_v48 }
 0x6cc   : > { %v1892_v50 = vpop.permute.xlu0 %1891 }
 0x6d0   : > { %v1888_v55 = vpop.permute.xlu0 %1887 }
 0x6d2   : > { %v7007_v51 = vpop.eup %7006 }
 0x6d3   : > { %v1797_v54 = vmul.f32 %v7007_v51, %v7003_v42 }
 0x6d4   : > { %v1890_v56 = vpop.permute.xlu0 %1889 }
 0x6d6   : > { %v7009_v52 = vpop.eup %7008 }
 0x6d7   : > { %v1796_v53 = vmul.f32 %v7009_v52, %v7005_v45 }
 0x6d9   : > { %6560 = vmatprep.mubr.msk.f32.mxu1 %vm1774_vm9, %v1796_v53 }
 0x6da   : > { %6561 = vmatmul.mubr.msk.f32.vlgmr.msra.gmra.mxu1 %vm1774_vm9, %v1797_v54 }
 0x6db   : > { %6564 = vmatpush3.xpose.msk.msra.mxu1 %vm1688_vm7, %v1894_v41  ;;  %6567 = vmatprep.mubr.msk.f32.mxu1 %vm1688_vm7, %v1888_v55 }
 0x6dc   : > { %6565 = vmatprep.subr.msk.mxu1 %vm1688_vm7, %v1892_v50 }
 0x6df   : > { %6566 = vmatpush3.xpose.msk.msra.mxu1 %vm1688_vm7, %v1892_v50 }
 0x6e2   : > { %6568 = vmatmul.mubr.msk.f32.vlgmr.msra.gmra.mxu1 %vm1688_vm7, %v1890_v56 }
 0x79a   : > { %v7563_v57 = vpop.f32.mrf.mxu1 }
 0x79c   : > { %v7565_v58 = vpop.f32.mrf.mxu1 }
 0x7a2   : > { %v6569_v59 = vpop.f32.mrf.mxu1 }
 0x7a3   : > { %v1979_v60 = vmul.f32 0.35355338, %v6569_v59 }
 0x7a4   : > { %v1969_v61 = vpop.f32.mrf.mxu1 }
 0x7a5   : > { %v1978_v62 = vmul.f32 0.35355338, %v1969_v61  ;;  %v1983_v63 = vsel %vm1778_vm8, %v1979_v60, -inf }
 0x7a6   : > { %1984 = vmax.xlane.f32.xlu0 %v1983_v63 }
 0x7a7   : > { %v1980_v0 = vsel %vm1774_vm9, %v1978_v62, -inf }
 0x7a8   : > { %1981 = vmax.xlane.f32.xlu1 %v1980_v0 }
 0x82f   : > { %v1985_v2 = vpop.xlane.xlu0 %1984 }
 0x830   : > { %v1987_v3 = vsub.f32 %v1979_v60, %v1985_v2 }
 0x831   : > { %v1982_v4 = vpop.xlane.xlu1 %1981 }
 0x832   : > { %v1990_v5 = vmul.f32 1.442695, %v1987_v3  ;;  %v1986_v6 = vsub.f32 %v1978_v62, %v1982_v4 }
 0x834   : > { %7010 = vpow2.f32 %v1990_v5  ;;  %v1988_v7 = vmul.f32 1.442695, %v1986_v6 }
 0x836   : > { %7012 = vpow2.f32 %v1988_v7 }
 0x841   : > { %v7011_v8 = vpop.eup %7010 }
 0x842   : > { %v1995_v9 = vsel %vm1778_vm8, %v7011_v8, 0.0 }
 0x843   : > { %v7013_v12 = vpop.eup %7012  ;;  %1996 = vadd.xlane.f32.xlu1 %v1995_v9 }
 0x844   : > { %v1992_v13 = vsel %vm1774_vm9, %v7013_v12, 0.0 }
 0x845   : > { %1993 = vadd.xlane.f32.xlu0 %v1992_v13 }
 0x854   : > { %2002 = vrot.lane.b32.xlu1 %v7523_v24, %s8195_s22 }
 0x858   : > { %2096 = vrot.lane.b32.xlu1 %v7521_v22, %s8193_s23 }
 0x85b   : > { %2004 = vrot.lane.b32.xlu0 %v7521_v22, %s8195_s22 }
 0x85c   : > { %2090 = vrot.lane.b32.xlu1 %v7523_v24, %s8191_s26 }
 0x85f   : > { %2094 = vrot.lane.b32.xlu0 %v7523_v24, %s8193_s23 }
 0x860   : > { %2092 = vrot.lane.b32.xlu1 %v7521_v22, %s8191_s26 }
 0x863   : > { %2299 = vrot.lane.b32.xlu0 %v7521_v22, %s8179_s2 }
 0x864   : > { %2293 = vrot.lane.b32.xlu1 %v7523_v24, %s8177_s7 }
 0x867   : > { %2297 = vrot.lane.b32.xlu0 %v7523_v24, %s8179_s2  ;;  %s8181_s2 = smov 8  }
 0x86b   : > { %2295 = vrot.lane.b32.xlu0 %v7521_v22, %s8177_s7  ;;  %s8183_s7 = smov 40  }
 0x8cc   : > { %v1997_v14 = vpop.xlane.xlu1 %1996 }
 0x8cd   : > { %7014 = vrcp.f32 %v1997_v14 }
 0x8ce   : > { %v1994_v15 = vpop.xlane.xlu0 %1993 }
 0x8cf   : > { %7016 = vrcp.f32 %v1994_v15 }
 0x8d0   : > { %v2003_v16 = vpop.permute.xlu1 %2002 }
 0x8d2   : > { %v2005_v17 = vpop.permute.xlu0 %2004 }
 0x8d3   : > { %6570 = vmatprep.subr.msk.mxu1 %vm1809_vm10, %v2005_v17 }
 0x8d4   : > { %6571 = vmatpush3.msk.msra.mxu1 %vm1809_vm10, %v2005_v17  ;;  %v2097_v18 = vpop.permute.xlu1 %2096 }
 0x8d5   : > { %6572 = vmatprep.subr.mxu1 %v2003_v16 }
 0x8d6   : > { %6573 = vmatpush3.msra.mxu1 %v2003_v16  ;;  %v2095_v23 = vpop.permute.xlu0 %2094 }
 0x8d7   : > { %6577 = vmatprep.subr.msk.mxu1 %vm1688_vm7, %v2097_v18 }
 0x8d8   : > { %v2091_v21 = vpop.permute.xlu1 %2090 }
 0x8da   : > { %v7015_v19 = vpop.eup %7014  ;;  %v2300_v28 = vpop.permute.xlu0 %2299 }
 0x8db   : > { %v2001_v26 = vmul.f32 %v7015_v19, %v7011_v8 }
 0x8dc   : > { %v7017_v20 = vpop.eup %7016  ;;  %v2093_v27 = vpop.permute.xlu1 %2092 }
 0x8dd   : > { %v2000_v25 = vmul.f32 %v7017_v20, %v7013_v12 }
 0x8de   : > { %v2298_v30 = vpop.permute.xlu0 %2297 }
 0x8df   : > { %6574 = vmatprep.mubr.msk.f32.mxu1 %vm1774_vm9, %v2000_v25  ;;  %v2530_v25 = vld [vmem:[%s7272_s19 + $0x18] sm:$0xff] }
 0x8e0   : > { %6575 = vmatmul.mubr.msk.f32.vlgmr.msra.gmra.mxu1 %vm1774_vm9, %v2001_v26  ;;  %v2294_v29 = vpop.permute.xlu1 %2293  ;;  %v2529_v26 = vld [vmem:[%s7272_s19 + $0x10] sm:$0xff] }
 0x8e1   : > { %6578 = vmatpush3.xpose.msk.msra.mxu1 %vm1688_vm7, %v2097_v18  ;;  %6581 = vmatprep.mubr.msk.f32.mxu1 %vm1688_vm7, %v2091_v21 }
 0x8e2   : > { %6579 = vmatprep.subr.msk.mxu1 %vm1688_vm7, %v2095_v23  ;;  %v2296_v31 = vpop.permute.xlu0 %2295 }
 0x8e5   : > { %6580 = vmatpush3.xpose.msk.msra.mxu1 %vm1688_vm7, %v2095_v23 }
 0x8e6   : > { %6591 = vmatprep.subr.msk.mxu1 %vm1688_vm7, %v2300_v28 }
 0x8e8   : > { %6582 = vmatmul.mubr.msk.f32.vlgmr.msra.gmra.mxu1 %vm1688_vm7, %v2093_v27  ;;  %v2528_v27 = vld [vmem:[%s7272_s19 + $0x8] sm:$0xff] }
 0x8e9   : > { %6592 = vmatpush3.xpose.msk.msra.mxu1 %vm1688_vm7, %v2300_v28  ;;  %6595 = vmatprep.mubr.msk.f32.mxu1 %vm1688_vm7, %v2294_v29  ;;  %v2527_v28 = vld [vmem:[%s7272_s19] sm:$0xff] }
 0x8ea   : > { %6593 = vmatprep.subr.msk.mxu1 %vm1688_vm7, %v2298_v30 }
 0x8ed   : > { %6594 = vmatpush3.xpose.msk.msra.mxu1 %vm1688_vm7, %v2298_v30 }
 0x8f0   : > { %6596 = vmatmul.mubr.msk.f32.vlgmr.msra.gmra.mxu1 %vm1688_vm7, %v2296_v31 }
 0x9a0   : > { %v6576_v32 = vpop.f32.mrf.mxu1 }
 0x9a2   : > { %v2081_v33 = vpop.f32.mrf.mxu1 }
 0x9a8   : > { %v6583_v34 = vpop.f32.mrf.mxu1 }
 0x9a9   : > { %v2182_v35 = vmul.f32 0.35355338, %v6583_v34 }
 0x9aa   : > { %v2172_v36 = vpop.f32.mrf.mxu1 }
 0x9ab   : > { %v2181_v37 = vmul.f32 0.35355338, %v2172_v36  ;;  %v2186_v38 = vsel %vm1778_vm8, %v2182_v35, -inf }
 0x9ac   : > { %2187 = vmax.xlane.f32.xlu0 %v2186_v38 }
 0x9ad   : > { %v2183_v39 = vsel %vm1774_vm9, %v2181_v37, -inf }
 0x9ae   : > { %2184 = vmax.xlane.f32.xlu1 %v2183_v39 }
 0x9b0   : > { %v6597_v40 = vpop.f32.mrf.mxu1 }
 0x9b1   : > { %v2385_v41 = vmul.f32 0.35355338, %v6597_v40 }
 0x9b2   : > { %v2375_v42 = vpop.f32.mrf.mxu1 }
 0x9b3   : > { %v2384_v43 = vmul.f32 0.35355338, %v2375_v42  ;;  %v2389_v45 = vsel %vm1778_vm8, %v2385_v41, -inf }
 0x9b4   : > { %2390 = vmax.xlane.f32.xlu1 %v2389_v45 }
 0x9b5   : > { %v2386_v46 = vsel %vm1774_vm9, %v2384_v43, -inf }
 0x9b6   : > { %2387 = vmax.xlane.f32.xlu0 %v2386_v46 }
 0x9c5   : > { %2205 = vrot.lane.b32.xlu1 %v7523_v24, %s8189_s0 }
 0x9cc   : > { %2207 = vrot.lane.b32.xlu0 %v7521_v22, %s8189_s0  ;;  %s8239_s0 = sld [smem:[#allocation7_spill]] }
 0xa35   : > { %v2188_v47 = vpop.xlane.xlu0 %2187 }
 0xa36   : > { %v2190_v48 = vsub.f32 %v2182_v35, %v2188_v47 }
 0xa37   : > { %v2185_v50 = vpop.xlane.xlu1 %2184 }
 0xa38   : > { %v2193_v51 = vmul.f32 1.442695, %v2190_v48  ;;  %v2189_v52 = vsub.f32 %v2181_v37, %v2185_v50 }
 0xa3a   : > { %7018 = vpow2.f32 %v2193_v51  ;;  %v2191_v53 = vmul.f32 1.442695, %v2189_v52 }
 0xa3c   : > { %7020 = vpow2.f32 %v2191_v53 }
 0xa3d   : > { %v2391_v54 = vpop.xlane.xlu1 %2390 }
 0xa3e   : > { %v2393_v55 = vsub.f32 %v2385_v41, %v2391_v54 }
 0xa3f   : > { %v2388_v56 = vpop.xlane.xlu0 %2387 }
 0xa40   : > { %v2396_v59 = vmul.f32 1.442695, %v2393_v55  ;;  %v2392_v60 = vsub.f32 %v2384_v43, %v2388_v56 }
 0xa41   : > { %v2206_v63 = vpop.permute.xlu1 %2205 }
 0xa42   : > { %7022 = vpow2.f32 %v2396_v59  ;;  %v2394_v61 = vmul.f32 1.442695, %v2392_v60 }
 0xa43   : > { %v2208_v62 = vpop.permute.xlu0 %2207 }
 0xa44   : > { %7024 = vpow2.f32 %v2394_v61  ;;  %6584 = vmatprep.subr.msk.mxu0 %vm1809_vm10, %v2208_v62 }
 0xa45   : > { %6585 = vmatpush3.msk.msra.mxu0 %vm1809_vm10, %v2208_v62 }
 0xa46   : > { %6586 = vmatprep.subr.mxu0 %v2206_v63 }
 0xa47   : > { %v7019_v0 = vpop.eup %7018  ;;  %6587 = vmatpush3.msra.mxu0 %v2206_v63 }
 0xa48   : > { %v2198_v2 = vsel %vm1778_vm8, %v7019_v0, 0.0 }
 0xa49   : > { %v7021_v3 = vpop.eup %7020  ;;  %2199 = vadd.xlane.f32.xlu1 %v2198_v2  ;;  %v2669_v2 = vld [vmem:[%s7292_s12 + $0x10] sm:$0xff] }
 0xa4a   : > { %v2195_v4 = vsel %vm1774_vm9, %v7021_v3, 0.0 }
 0xa4b   : > { %2196 = vadd.xlane.f32.xlu0 %v2195_v4  ;;  %v2667_v4 = vld [vmem:[%s7292_s12] sm:$0xff] }
 0xa4f   : > { %v7023_v5 = vpop.eup %7022 }
 0xa50   : > { %v2401_v6 = vsel %vm1778_vm8, %v7023_v5, 0.0 }
 0xa51   : > { %v7025_v7 = vpop.eup %7024  ;;  %2402 = vadd.xlane.f32.xlu1 %v2401_v6 }
 0xa52   : > { %v2398_v8 = vsel %vm1774_vm9, %v7025_v7, 0.0 }
 0xa53   : > { %2399 = vadd.xlane.f32.xlu0 %v2398_v8 }
 0xa62   : > { %2410 = vrot.lane.b32.xlu1 %v7521_v22, %s8183_s7 }
 0xa66   : > { %2498 = vrot.lane.b32.xlu1 %v2081_v33, %s8181_s2 }
 0xa69   : > { %2408 = vrot.lane.b32.xlu0 %v7523_v24, %s8183_s7  ;;  %s8185_s7 = smov 24  }
 0xa6d   : > { %2500 = vrot.lane.b32.xlu0 %v6576_v32, %s8181_s2  ;;  %s8187_s2 = smov 16  }
 0xad2   : > { %v2200_v9 = vpop.xlane.xlu1 %2199 }
 0xad3   : > { %7026 = vrcp.f32 %v2200_v9 }
 0xad4   : > { %v2197_v12 = vpop.xlane.xlu0 %2196 }
 0xad5   : > { %7028 = vrcp.f32 %v2197_v12 }
 0xada   : > { %v2403_v13 = vpop.xlane.xlu1 %2402 }
 0xadb   : > { %7030 = vrcp.f32 %v2403_v13 }
 0xadc   : > { %v2400_v14 = vpop.xlane.xlu0 %2399 }
 0xadd   : > { %7032 = vrcp.f32 %v2400_v14  ;;  %v6169_v14 = vld [vmem:[%s7282_s30] ss:$0 sm:$0xff] }
 0xade   : > { %v2411_v15 = vpop.permute.xlu1 %2410 }
 0xadf   : > { %6598 = vmatprep.subr.msk.mxu0 %vm1809_vm10, %v2411_v15 }
 0xae0   : > { %v7027_v22 = vpop.eup %7026  ;;  %v2409_v24 = vpop.permute.xlu0 %2408 }
 0xae1   : > { %v2204_v18 = vmul.f32 %v7027_v22, %v7019_v0  ;;  %v2670_v0 = vld [vmem:[%s7292_s12 + $0x18] sm:$0xff] }
 0xae2   : > { %v7029_v16 = vpop.eup %7028  ;;  %v2499_v34 = vpop.permute.xlu1 %2498  ;;  %6616 = vmatprep.subr.mxu1 %v2670_v0 }
 0xae3   : > { %v2203_v17 = vmul.f32 %v7029_v16, %v7021_v3  ;;  %v2520_v37 = vsel %vm1688_vm7, %v7565_v58, %v2499_v34  ;;  %v6168_v58 = vld [vmem:[%s7277_s24] ss:$0 sm:$0xff]  ;;  %6617 = vmatpush3.msra.mxu1 %v2670_v0  ;;  %v2668_v3 = vld [vmem:[%s7292_s12 + $0x8] sm:$0xff] }
 0xae4   : > { %v2501_v33 = vpop.permute.xlu0 %2500  ;;  %6618 = vmatprep.subr.mxu1 %v2669_v2  ;;  %v6174_v0 = vld [vmem:[%s8239_s0] ss:$0 sm:$0xff] }
 0xae5   : > { %6588 = vmatprep.mubr.msk.f32.mxu0 %vm1774_vm9, %v2203_v17  ;;  %v2521_v39 = vsel %vm1688_vm7, %v7563_v57, %v2501_v33  ;;  %6619 = vmatpush3.msra.mxu1 %v2669_v2 }
 0xae6   : > { %6589 = vmatmul.mubr.msk.f32.vlgmr.msra.gmra.mxu0 %vm1774_vm9, %v2204_v18  ;;  %6620 = vmatprep.subr.mxu1 %v2668_v3  ;;  %v6170_v18 = vld [vmem:[%s7287_s6] ss:$0 sm:$0xff] }
 0xae7   : > { %6599 = vmatpush3.msk.msra.mxu0 %vm1809_vm10, %v2411_v15  ;;  %6621 = vmatpush3.msra.mxu1 %v2668_v3 }
 0xae8   : > { %6600 = vmatprep.subr.mxu0 %v2409_v24  ;;  %v7031_v19 = vpop.eup %7030  ;;  %6622 = vmatprep.subr.mxu1 %v2667_v4 }
 0xae9   : > { %6601 = vmatpush3.msra.mxu0 %v2409_v24  ;;  %v2407_v23 = vmul.f32 %v7031_v19, %v7023_v5  ;;  %6623 = vmatpush3.msra.mxu1 %v2667_v4 }
 0xaea   : > { %v7033_v20 = vpop.eup %7032  ;;  %6605 = vmatprep.subr.mxu0 %v2530_v25 }
 0xaeb   : > { %v2406_v21 = vmul.f32 %v7033_v20, %v7025_v7 }
 0xaed   : > { %6602 = vmatprep.mubr.msk.f32.mxu0 %vm1774_vm9, %v2406_v21 }
 0xaee   : > { %6603 = vmatmul.mubr.msk.f32.vlgmr.msra.gmra.mxu0 %vm1774_vm9, %v2407_v23 }
 0xaef   : > { %6606 = vmatpush3.msra.mxu0 %v2530_v25 }
 0xaf0   : > { %6607 = vmatprep.subr.mxu0 %v2529_v26 }
 0xaf1   : > { %6608 = vmatpush3.msra.mxu0 %v2529_v26 }
 0xaf2   : > { %6609 = vmatprep.subr.mxu0 %v2528_v27 }
 0xaf3   : > { %6610 = vmatpush3.msra.mxu0 %v2528_v27 }
 0xaf4   : > { %6611 = vmatprep.subr.mxu0 %v2527_v28 }
 0xaf5   : > { %6612 = vmatpush3.msra.mxu0 %v2527_v28 }
 0xba6   : > { %v6590_v29 = vpop.f32.mrf.mxu0 }
 0xba7   : > { %2508 = vrot.lane.b32.xlu0 %v6590_v29, %s8187_s2 }
 0xba8   : > { %v2284_v30 = vpop.f32.mrf.mxu0 }
 0xba9   : > { %2506 = vrot.lane.b32.xlu1 %v2284_v30, %s8187_s2  ;;  %s8238_s2 = sld [smem:[#allocation5_spill]] }
 0xbae   : > { %v6604_v31 = vpop.f32.mrf.mxu0 }
 0xbaf   : > { %2516 = vrot.lane.b32.xlu0 %v6604_v31, %s8185_s7 }
 0xbb0   : > { %v2487_v32 = vpop.f32.mrf.mxu0 }
 0xbb1   : > { %2514 = vrot.lane.b32.xlu1 %v2487_v32, %s8185_s7  ;;  %s8237_s7 = sld [smem:[#allocation6_spill]] }
 0xbb7   : > { %v2792_v21 = vld [vmem:[%s8237_s7 + $0x78] sm:$0xff]  ;;  %v2791_v23 = vld [vmem:[%s8237_s7 + $0x70] sm:$0xff]  ;;  %v2790_v25 = vld [vmem:[%s8237_s7 + $0x68] sm:$0xff] }
 0xbb8   : > { %6627 = vmatprep.subr.mxu0 %v2792_v21  ;;  %v2789_v26 = vld [vmem:[%s8237_s7 + $0x60] sm:$0xff]  ;;  %v2788_v27 = vld [vmem:[%s8237_s7 + $0x58] sm:$0xff]  ;;  %v2787_v28 = vld [vmem:[%s8237_s7 + $0x50] sm:$0xff] }
 0xbb9   : > { %v2786_v29 = vld [vmem:[%s8237_s7 + $0x48] sm:$0xff]  ;;  %v2785_v30 = vld [vmem:[%s8237_s7 + $0x40] sm:$0xff]  ;;  %v2784_v31 = vld [vmem:[%s8237_s7 + $0x38] sm:$0xff] }
 0xbba   : > { %v2783_v32 = vld [vmem:[%s8237_s7 + $0x30] sm:$0xff]  ;;  %v2782_v33 = vld [vmem:[%s8237_s7 + $0x28] sm:$0xff]  ;;  %v2781_v34 = vld [vmem:[%s8237_s7 + $0x20] sm:$0xff] }
 0xc19   : > { %v2509_v35 = vpop.permute.xlu0 %2508 }
 0xc1a   : > { %v2523_v42 = vsel %vm1269_vm0, %v2521_v39, %v2509_v35  ;;  %v2780_v35 = vld [vmem:[%s8237_s7 + $0x18] sm:$0xff]  ;;  %v6171_v39 = vld [vmem:[%s8238_s2] ss:$0 sm:$0xff] }
 0xc1b   : > { %v2507_v36 = vpop.permute.xlu1 %2506 }
 0xc1c   : > { %v2522_v40 = vsel %vm1269_vm0, %v2520_v37, %v2507_v36  ;;  %v2779_v36 = vld [vmem:[%s8237_s7 + $0x10] sm:$0xff]  ;;  %v2778_v37 = vld [vmem:[%s8237_s7 + $0x8] sm:$0xff] }
 0xc21   : > { %v2517_v38 = vpop.permute.xlu0 %2516 }
 0xc22   : > { %v2526_v45 = vsel %vm2524_vm11, %v2523_v42, %v2517_v38  ;;  %v2777_v38 = vld [vmem:[%s8237_s7] sm:$0xff] }
 0xc23   : > { %v2515_v41 = vpop.permute.xlu1 %2514 }
 0xc24   : > { %v2525_v43 = vsel %vm2524_vm11, %v2522_v40, %v2515_v41 }
 0xc25   : > { %6613 = vmatprep.mubr.msk.f32.mxu0 %vm1545_vm5, %v2525_v43 }
 0xc26   : > { %6614 = vmatmul.mubr.msk.f32.vlgmr.msra.gmra.mxu0 %vm1545_vm5, %v2526_v45 }
 0xc27   : > { %6628 = vmatpush3.msra.mxu0 %v2792_v21  ;;  %v6179_v21 = vld [vmem:[%s7262_s8 + $0x20] sm:$0xff] }
 0xc28   : > { %6629 = vmatprep.subr.mxu0 %v2791_v23 }
 0xc29   : > { %6630 = vmatpush3.msra.mxu0 %v2791_v23 }
 0xc2a   : > { %6631 = vmatprep.subr.mxu0 %v2790_v25 }
 0xc2b   : > { %6632 = vmatpush3.msra.mxu0 %v2790_v25 }
 0xc2c   : > { %6633 = vmatprep.subr.mxu0 %v2789_v26 }
 0xc2d   : > { %6634 = vmatpush3.msra.mxu0 %v2789_v26 }
 0xc2e   : > { %6635 = vmatprep.subr.mxu0 %v2788_v27 }
 0xc2f   : > { %6636 = vmatpush3.msra.mxu0 %v2788_v27 }
 0xc30   : > { %6637 = vmatprep.subr.mxu0 %v2787_v28 }
 0xc31   : > { %6638 = vmatpush3.msra.mxu0 %v2787_v28 }
 0xc32   : > { %6639 = vmatprep.subr.mxu0 %v2786_v29 }
 0xc33   : > { %6640 = vmatpush3.msra.mxu0 %v2786_v29 }
 0xc34   : > { %6641 = vmatprep.subr.mxu0 %v2785_v30 }
 0xc35   : > { %6642 = vmatpush3.msra.mxu0 %v2785_v30 }
 0xc36   : > { %6643 = vmatprep.subr.mxu0 %v2784_v31 }
 0xc37   : > { %6644 = vmatpush3.msra.mxu0 %v2784_v31  ;;  %v6177_v31 = vld [vmem:[%s7252_s29 + $0x1] ss:$0 sm:$0xff] }
 0xc38   : > { %6645 = vmatprep.subr.mxu0 %v2783_v32 }
 0xc39   : > { %6646 = vmatpush3.msra.mxu0 %v2783_v32 }
 0xc3a   : > { %6647 = vmatprep.subr.mxu0 %v2782_v33 }
 0xc3b   : > { %6648 = vmatpush3.msra.mxu0 %v2782_v33 }
 0xc3c   : > { %6649 = vmatprep.subr.mxu0 %v2781_v34 }
 0xc3d   : > { %6650 = vmatpush3.msra.mxu0 %v2781_v34 }
 0xc3e   : > { %6651 = vmatprep.subr.mxu0 %v2780_v35 }
 0xc3f   : > { %6652 = vmatpush3.msra.mxu0 %v2780_v35 }
 0xc40   : > { %6653 = vmatprep.subr.mxu0 %v2779_v36 }
 0xc41   : > { %6654 = vmatpush3.msra.mxu0 %v2779_v36  ;;  %v6178_v36 = vld [vmem:[%s8235_s3 + $0x1] ss:$0 sm:$0xff]  ;;  %s8249_s3 = sshll.u32 %s8276_s1, 4 }
 0xc42   : > { %6655 = vmatprep.subr.mxu0 %v2778_v37 }
 0xc43   : > { %6656 = vmatpush3.msra.mxu0 %v2778_v37 }
 0xc44   : > { %6657 = vmatprep.subr.mxu0 %v2777_v38 }
 0xc45   : > { %6658 = vmatpush3.msra.mxu0 %v2777_v38 }
 0xce6   : > { %v6615_v46 = vpop.f32.mrf.mxu0 }
 0xce7   : > { %v2613_v47 = vadd.f32 %v6615_v46, %v7504_v49 }
 0xce8   : > { %v2603_v48 = vpop.f32.mrf.mxu0 }
 0xce9   : > { %v7653_v50 = vadd.f32 %v6168_v58, %v2613_v47  ;;  %v2612_v57 = vadd.f32 %v2603_v48, %v7500_v44 }
 0xceb   : > { %v7656_v51 = vadd.f32 %v6168_v58, %v2612_v57  ;;  %v2628_v52 = vsel %vm1549_vm6, %v7653_v50, 0.0 }
 0xcec   : > { %2629 = vadd.xlane.f32.xlu0 %v2628_v52 }
 0xced   : > { %v2625_v53 = vsel %vm1545_vm5, %v7656_v51, 0.0 }
 0xcee   : > { %2626 = vadd.xlane.f32.xlu1 %v2625_v53 }
 0xd75   : > { %v2630_v54 = vpop.xlane.xlu0 %2629 }
 0xd76   : > { %v2632_v49 = vmul.f32 0.03125, %v2630_v54 }
 0xd77   : > { %v2627_v55 = vpop.xlane.xlu1 %2626 }
 0xd78   : > { %v2634_v56 = vsub.f32 %v7653_v50, %v2632_v49  ;;  %v2631_v44 = vmul.f32 0.03125, %v2627_v55 }
 0xd7a   : > { %v2633_v59 = vsub.f32 %v7656_v51, %v2631_v44  ;;  %v2636_v60 = vmul.f32 %v2634_v56, %v2634_v56 }
 0xd7c   : > { %v2640_v61 = vsel %vm1549_vm6, %v2636_v60, 0.0  ;;  %v2635_v62 = vmul.f32 %v2633_v59, %v2633_v59 }
 0xd7d   : > { %2641 = vadd.xlane.f32.xlu1 %v2640_v61 }
 0xd7e   : > { %v2637_v63 = vsel %vm1545_vm5, %v2635_v62, 0.0 }
 0xd7f   : > { %2638 = vadd.xlane.f32.xlu0 %v2637_v63 }
 0xe06   : > { %v2642_v5 = vpop.xlane.xlu1 %2641 }
 0xe07   : > { %v2644_v6 = vmul.f32 0.03125, %v2642_v5 }
 0xe08   : > { %v2639_v7 = vpop.xlane.xlu0 %2638 }
 0xe09   : > { %v2646_v8 = vadd.f32 1e-05, %v2644_v6  ;;  %v2643_v9 = vmul.f32 0.03125, %v2639_v7 }
 0xe0b   : > { %7034 = vrsqrt.f32 %v2646_v8  ;;  %v2645_v12 = vadd.f32 1e-05, %v2643_v9 }
 0xe0d   : > { %7036 = vrsqrt.f32 %v2645_v12 }
 0xe18   : > { %v7035_v13 = vpop.eup %7034 }
 0xe19   : > { %v2650_v15 = vmul.f32 %v7035_v13, %v2634_v56 }
 0xe1a   : > { %v7037_v22 = vpop.eup %7036 }
 0xe1b   : > { %v2649_v16 = vmul.f32 %v7037_v22, %v2633_v59  ;;  %v2658_v17 = vmul.f32 %v6169_v14, %v2650_v15 }
 0xe1d   : > { %v2657_v24 = vmul.f32 %v6169_v14, %v2649_v16  ;;  %v2666_v20 = vadd.f32 %v6170_v18, %v2658_v17 }
 0xe1f   : > { %v2665_v19 = vadd.f32 %v6170_v18, %v2657_v24  ;;  %v6182_v24 = vld [vmem:[%s7262_s8 + $0x38] sm:$0xff] }
 0xe20   : > { %6662 = vmatprep.subr.mxu1 %v6182_v24 }
 0xe21   : > { %6624 = vmatprep.mubr.msk.f32.mxu1 %vm1545_vm5, %v2665_v19  ;;  %v6181_v19 = vld [vmem:[%s7262_s8 + $0x30] sm:$0xff] }
 0xe22   : > { %6625 = vmatmul.mubr.msk.f32.vlgmr.msra.gmra.mxu1 %vm1545_vm5, %v2666_v20  ;;  %v6180_v20 = vld [vmem:[%s7262_s8 + $0x28] sm:$0xff] }
 0xe23   : > { %6663 = vmatpush3.msra.mxu1 %v6182_v24 }
 0xe24   : > { %6664 = vmatprep.subr.mxu1 %v6181_v19 }
 0xe25   : > { %6665 = vmatpush3.msra.mxu1 %v6181_v19 }
 0xe26   : > { %6666 = vmatprep.subr.mxu1 %v6180_v20 }
 0xe27   : > { %6667 = vmatpush3.msra.mxu1 %v6180_v20 }
 0xe28   : > { %6668 = vmatprep.subr.mxu1 %v6179_v21 }
 0xe29   : > { %6669 = vmatpush3.msra.mxu1 %v6179_v21 }
 0xee2   : > { %v6626_v40 = vpop.f32.mrf.mxu1 }
 0xee3   : > { %v2756_v41 = vadd.f32 %v6626_v40, %v6171_v39  ;;  %v6184_v40 = vld [vmem:[%s7267_s14 + $0x1] ss:$0 sm:$0xff] }
 0xee4   : > { %v2750_v42 = vpop.f32.mrf.mxu1 }
 0xee5   : > { %v2760_v43 = vmul.f32 %v2756_v41, %v2756_v41  ;;  %v2751_v45 = vadd.f32 %v6171_v39, %v2750_v42 }
 0xee7   : > { %v2762_v46 = vmul.f32 %v2760_v43, %v2756_v41  ;;  %v2759_v58 = vmul.f32 %v2751_v45, %v2751_v45 }
 0xee9   : > { %v2764_v47 = vmul.f32 0.044715, %v2762_v46  ;;  %v2761_v48 = vmul.f32 %v2759_v58, %v2751_v45 }
 0xeeb   : > { %v2766_v57 = vadd.f32 %v2764_v47, %v2756_v41  ;;  %v2763_v52 = vmul.f32 0.044715, %v2761_v48 }
 0xeed   : > { %v2768_v53 = vmul.f32 0.7978846, %v2766_v57  ;;  %v2765_v54 = vadd.f32 %v2763_v52, %v2751_v45 }
 0xeef   : > { %7038 = vtanh.f32 %v2768_v53  ;;  %v2767_v49 = vmul.f32 0.7978846, %v2765_v54 }
 0xef1   : > { %7040 = vtanh.f32 %v2767_v49 }
 0xefc   : > { %v7039_v55 = vpop.eup %7038 }
 0xefd   : > { %v2772_v56 = vadd.f32 1.0, %v7039_v55 }
 0xefe   : > { %v7041_v44 = vpop.eup %7040 }
 0xeff   : > { %v2771_v59 = vadd.f32 1.0, %v7041_v44  ;;  %v2774_v60 = vmul.f32 0.5, %v2772_v56 }
 0xf01   : > { %v2773_v61 = vmul.f32 0.5, %v2771_v59  ;;  %v2776_v63 = vmul.f32 %v2774_v60, %v2756_v41 }
 0xf03   : > { %v2775_v62 = vmul.f32 %v2773_v61, %v2751_v45 }
 0xf05   : > { %6659 = vmatprep.mubr.f32.mxu0 %v2775_v62 }
 0xf06   : > { %6660 = vmatmul.mubr.f32.vlgmr.msra.gmra.mxu0 %v2776_v63 }
 0xfc6   : > { %v6661_v2 = vpop.f32.mrf.mxu0 }
 0xfc7   : > { %v2872_v3 = vadd.f32 %v6661_v2, %v6174_v0 }
 0xfc8   : > { %v2866_v4 = vpop.f32.mrf.mxu0 }
 0xfc9   : > { %v7693_v5 = vadd.f32 %v2872_v3, %v7653_v50  ;;  %v2867_v6 = vadd.f32 %v6174_v0, %v2866_v4 }
 0xfcb   : > { %v7696_v7 = vadd.f32 %v2867_v6, %v7656_v51  ;;  %v2884_v8 = vsel %vm1549_vm6, %v7693_v5, 0.0 }
 0xfcc   : > { %2885 = vadd.xlane.f32.xlu1 %v2884_v8 }
 0xfcd   : > { %v2881_v9 = vsel %vm1545_vm5, %v7696_v7, 0.0 }
 0xfce   : > { %2882 = vadd.xlane.f32.xlu0 %v2881_v9 }
0x1055   : > { %v2886_v12 = vpop.xlane.xlu1 %2885 }
0x1056   : > { %v2888_v13 = vmul.f32 0.03125, %v2886_v12 }
0x1057   : > { %v2883_v14 = vpop.xlane.xlu0 %2882 }
0x1058   : > { %v2890_v50 = vsub.f32 %v7693_v5, %v2888_v13  ;;  %v2887_v15 = vmul.f32 0.03125, %v2883_v14 }
0x105a   : > { %v2889_v51 = vsub.f32 %v7696_v7, %v2887_v15  ;;  %v2892_v22 = vmul.f32 %v2890_v50, %v2890_v50 }
0x105c   : > { %v2896_v16 = vsel %vm1549_vm6, %v2892_v22, 0.0  ;;  %v2891_v17 = vmul.f32 %v2889_v51, %v2889_v51 }
0x105d   : > { %2897 = vadd.xlane.f32.xlu1 %v2896_v16 }
0x105e   : > { %v2893_v18 = vsel %vm1545_vm5, %v2891_v17, 0.0 }
0x105f   : > { %2894 = vadd.xlane.f32.xlu0 %v2893_v18 }
0x10e6   : > { %v2898_v23 = vpop.xlane.xlu1 %2897 }
0x10e7   : > { %v2900_v25 = vmul.f32 0.03125, %v2898_v23 }
0x10e8   : > { %v2895_v26 = vpop.xlane.xlu0 %2894 }
0x10e9   : > { %v2902_v27 = vadd.f32 1e-05, %v2900_v25  ;;  %v2899_v28 = vmul.f32 0.03125, %v2895_v26 }
0x10eb   : > { %7042 = vrsqrt.f32 %v2902_v27  ;;  %v2901_v29 = vadd.f32 1e-05, %v2899_v28 }
0x10ed   : > { %7044 = vrsqrt.f32 %v2901_v29 }
0x10f8   : > { %v7043_v30 = vpop.eup %7042 }
0x10f9   : > { %v2906_v32 = vmul.f32 %v7043_v30, %v2890_v50 }
0x10fa   : > { %v7045_v33 = vpop.eup %7044 }
0x10fb   : > { %v2905_v34 = vmul.f32 %v7045_v33, %v2889_v51  ;;  %v2914_v35 = vmul.f32 %v6177_v31, %v2906_v32 }
0x10fd   : > { %v2913_v37 = vmul.f32 %v6177_v31, %v2905_v34  ;;  %v2922_v39 = vadd.f32 %v6178_v36, %v2914_v35 }
0x10ff   : > { %v2921_v38 = vadd.f32 %v6178_v36, %v2913_v37 }
0x1101   : > { %6670 = vmatprep.mubr.msk.f32.mxu1 %vm1545_vm5, %v2921_v38 }
0x1102   : > { %6671 = vmatmul.mubr.msk.f32.vlgmr.msra.gmra.mxu1 %vm1545_vm5, %v2922_v39 }
0x11c2   : > { %v6672_v41 = vpop.f32.mrf.mxu1 }
0x11c3   : > { %v7715_v42 = vadd.f32 %v6672_v41, %v6184_v40 }
0x11c4   : > { %v3008_v43 = vpop.f32.mrf.mxu1 }
0x11c5   : > { %v7717_v45 = vadd.f32 %v6184_v40, %v3008_v43  ;;  %3021 = vrot.lane.b32.xlu0 %v7715_v42, %s8203_s11 }
0x11c7   : > { %3019 = vrot.lane.b32.xlu1 %v7717_v45, %s8203_s11  ;;  %6677 = vmatprep.mubr.msk.f32.mxu1 %vm1688_vm7, %v7717_v45  ;;  %s8246_s11 = smov 24  }
0x1237   : > { %v3022_v46 = vpop.permute.xlu0 %3021 }
0x1238   : > { %6673 = vmatprep.subr.msk.mxu1 %vm1688_vm7, %v3022_v46 }
0x1239   : > { %6674 = vmatpush3.xpose.msk.msra.mxu1 %vm1688_vm7, %v3022_v46  ;;  %v3020_v58 = vpop.permute.xlu1 %3019 }
0x123a   : > { %6675 = vmatprep.subr.msk.mxu1 %vm1688_vm7, %v3020_v58 }
0x123d   : > { %6676 = vmatpush3.xpose.msk.msra.mxu1 %vm1688_vm7, %v3020_v58 }
0x1240   : > { %6678 = vmatmul.mubr.msk.f32.vlgmr.msra.gmra.mxu1 %vm1688_vm7, %v7715_v42 }
0x1300   : > { %v6679_v47 = vpop.f32.mrf.mxu1 }
0x1301   : > { %v3107_v48 = vmul.f32 0.35355338, %v6679_v47 }
0x1302   : > { %v3097_v57 = vpop.f32.mrf.mxu1 }
0x1303   : > { %v3106_v52 = vmul.f32 0.35355338, %v3097_v57  ;;  %v3111_v53 = vsel %vm1778_vm8, %v3107_v48, -inf }
0x1304   : > { %3112 = vmax.xlane.f32.xlu0 %v3111_v53 }
0x1305   : > { %v3108_v54 = vsel %vm1774_vm9, %v3106_v52, -inf }
0x1306   : > { %3109 = vmax.xlane.f32.xlu1 %v3108_v54 }
0x1317   : > { %3130 = vrot.lane.b32.xlu1 %v7717_v45, %s8197_s15 }
0x131a   : > { %3132 = vrot.lane.b32.xlu0 %v7715_v42, %s8197_s15  ;;  %s8243_s15 = smov 40  }
0x131b   : > { %3224 = vrot.lane.b32.xlu1 %v7715_v42, %s8201_s16 }
0x138d   : > { %v3113_v49 = vpop.xlane.xlu0 %3112 }
0x138e   : > { %v3115_v55 = vsub.f32 %v3107_v48, %v3113_v49 }
0x138f   : > { %v3110_v56 = vpop.xlane.xlu1 %3109 }
0x1390   : > { %v3118_v44 = vmul.f32 1.442695, %v3115_v55  ;;  %v3114_v59 = vsub.f32 %v3106_v52, %v3110_v56 }
0x1391   : > { %v3133_v60 = vpop.permute.xlu0 %3132 }
0x1392   : > { %7046 = vpow2.f32 %v3118_v44  ;;  %v3116_v61 = vmul.f32 1.442695, %v3114_v59  ;;  %6680 = vmatprep.subr.msk.mxu1 %vm1809_vm10, %v3133_v60 }
0x1393   : > { %6681 = vmatpush3.msk.msra.mxu1 %vm1809_vm10, %v3133_v60  ;;  %v3131_v62 = vpop.permute.xlu1 %3130 }
0x1394   : > { %7048 = vpow2.f32 %v3116_v61  ;;  %6682 = vmatprep.subr.mxu1 %v3131_v62 }
0x1395   : > { %6683 = vmatpush3.msra.mxu1 %v3131_v62 }
0x1397   : > { %v3225_v63 = vpop.permute.xlu1 %3224 }
0x1398   : > { %6687 = vmatprep.subr.msk.mxu1 %vm1688_vm7, %v3225_v63 }
0x139f   : > { %v7047_v0 = vpop.eup %7046 }
0x13a0   : > { %v3123_v2 = vsel %vm1778_vm8, %v7047_v0, 0.0 }
0x13a1   : > { %v7049_v3 = vpop.eup %7048  ;;  %3124 = vadd.xlane.f32.xlu1 %v3123_v2 }
0x13a2   : > { %v3120_v4 = vsel %vm1774_vm9, %v7049_v3, 0.0 }
0x13a3   : > { %3121 = vadd.xlane.f32.xlu0 %v3120_v4 }
0x13b2   : > { %3427 = vrot.lane.b32.xlu1 %v7715_v42, %s8193_s23 }
0x13b6   : > { %3220 = vrot.lane.b32.xlu1 %v7715_v42, %s8199_s18 }
0x13b9   : > { %3222 = vrot.lane.b32.xlu0 %v7717_v45, %s8201_s16  ;;  %s8245_s16 = smov 16  }
0x13ba   : > { %3421 = vrot.lane.b32.xlu1 %v7717_v45, %s8191_s26 }
0x13bd   : > { %3218 = vrot.lane.b32.xlu0 %v7717_v45, %s8199_s18  ;;  %s8244_s18 = smov 8  }
0x13c1   : > { %3425 = vrot.lane.b32.xlu0 %v7717_v45, %s8193_s23  ;;  %s8241_s23 = smov 72  }
0x13c5   : > { %3423 = vrot.lane.b32.xlu0 %v7715_v42, %s8191_s26  ;;  %s8240_s26 = smov 48  }
0x142a   : > { %v3125_v6 = vpop.xlane.xlu1 %3124 }
0x142b   : > { %7050 = vrcp.f32 %v3125_v6 }
0x142c   : > { %v3122_v8 = vpop.xlane.xlu0 %3121 }
0x142d   : > { %7052 = vrcp.f32 %v3122_v8 }
0x142e   : > { %v3428_v9 = vpop.permute.xlu1 %3427 }
0x142f   : > { %6701 = vmatprep.subr.msk.mxu0 %vm1688_vm7, %v3428_v9 }
0x1430   : > { %v3223_v12 = vpop.permute.xlu0 %3222  ;;  %6702 = vmatpush3.xpose.msk.msra.mxu0 %vm1688_vm7, %v3428_v9 }
0x1432   : > { %v3221_v13 = vpop.permute.xlu1 %3220 }
0x1434   : > { %v3219_v14 = vpop.permute.xlu0 %3218 }
0x1436   : > { %v3422_v50 = vpop.permute.xlu1 %3421 }
0x1437   : > { %6705 = vmatprep.mubr.msk.f32.mxu0 %vm1688_vm7, %v3422_v50 }
0x1438   : > { %v3426_v15 = vpop.permute.xlu0 %3425  ;;  %v7051_v51 = vpop.eup %7050 }
0x1439   : > { %6703 = vmatprep.subr.msk.mxu0 %vm1688_vm7, %v3426_v15  ;;  %v3129_v18 = vmul.f32 %v7051_v51, %v7047_v0 }
0x143a   : > { %v7053_v22 = vpop.eup %7052  ;;  %6704 = vmatpush3.xpose.msk.msra.mxu0 %vm1688_vm7, %v3426_v15 }
0x143b   : > { %v3128_v16 = vmul.f32 %v7053_v22, %v7049_v3 }
0x143c   : > { %v3424_v17 = vpop.permute.xlu0 %3423 }
0x143d   : > { %6684 = vmatprep.mubr.msk.f32.mxu1 %vm1774_vm9, %v3128_v16  ;;  %6706 = vmatmul.mubr.msk.f32.vlgmr.msra.gmra.mxu0 %vm1688_vm7, %v3424_v17 }
0x143e   : > { %6685 = vmatmul.mubr.msk.f32.vlgmr.msra.gmra.mxu1 %vm1774_vm9, %v3129_v18 }
0x143f   : > { %6688 = vmatpush3.xpose.msk.msra.mxu1 %vm1688_vm7, %v3225_v63  ;;  %6691 = vmatprep.mubr.msk.f32.mxu1 %vm1688_vm7, %v3219_v14 }
0x1440   : > { %6689 = vmatprep.subr.msk.mxu1 %vm1688_vm7, %v3223_v12 }
0x1443   : > { %6690 = vmatpush3.xpose.msk.msra.mxu1 %vm1688_vm7, %v3223_v12 }
0x1446   : > { %6692 = vmatmul.mubr.msk.f32.vlgmr.msra.gmra.mxu1 %vm1688_vm7, %v3221_v13 }
0x14fd   : > { %v6707_v19 = vpop.f32.mrf.mxu0 }
0x14fe   : > { %v7771_v24 = vpop.f32.mrf.mxu1  ;;  %v3513_v30 = vmul.f32 0.35355338, %v6707_v19 }
0x14ff   : > { %v3503_v21 = vpop.f32.mrf.mxu0 }
0x1500   : > { %v7773_v20 = vpop.f32.mrf.mxu1  ;;  %v3512_v27 = vmul.f32 0.35355338, %v3503_v21  ;;  %v3517_v33 = vsel %vm1778_vm8, %v3513_v30, -inf }
0x1502   : > { %v3514_v32 = vsel %vm1774_vm9, %v3512_v27, -inf }
0x1506   : > { %v6693_v23 = vpop.f32.mrf.mxu1 }
0x1507   : > { %v3310_v25 = vmul.f32 0.35355338, %v6693_v23 }
0x1508   : > { %v3300_v26 = vpop.f32.mrf.mxu1 }
0x1509   : > { %v3309_v28 = vmul.f32 0.35355338, %v3300_v26  ;;  %v3314_v29 = vsel %vm1778_vm8, %v3310_v25, -inf }
0x150a   : > { %3315 = vmax.xlane.f32.xlu0 %v3314_v29 }
0x150b   : > { %v3311_v31 = vsel %vm1774_vm9, %v3309_v28, -inf }
0x150c   : > { %3312 = vmax.xlane.f32.xlu1 %v3311_v31 }
0x150e   : > { %3515 = vmax.xlane.f32.xlu0 %v3514_v32 }
0x1510   : > { %3518 = vmax.xlane.f32.xlu1 %v3517_v33 }
0x1593   : > { %v3316_v34 = vpop.xlane.xlu0 %3315 }
0x1594   : > { %v3318_v52 = vsub.f32 %v3310_v25, %v3316_v34 }
0x1595   : > { %v3313_v35 = vpop.xlane.xlu1 %3312 }
0x1596   : > { %v3317_v48 = vsub.f32 %v3309_v28, %v3313_v35  ;;  %v3321_v53 = vmul.f32 1.442695, %v3318_v52  ;;  %v6215_v52 = vld [vmem:[%s7272_s19 + $0x20] sm:$0xff] }
0x1597   : > { %v3516_v36 = vpop.xlane.xlu0 %3515 }
0x1598   : > { %v3520_v37 = vsub.f32 %v3512_v27, %v3516_v36  ;;  %v3319_v57 = vmul.f32 1.442695, %v3317_v48  ;;  %v6217_v48 = vld [vmem:[%s7272_s19 + $0x30] sm:$0xff] }
0x1599   : > { %v3519_v38 = vpop.xlane.xlu1 %3518 }
0x159a   : > { %v3522_v39 = vmul.f32 1.442695, %v3520_v37  ;;  %v3521_v40 = vsub.f32 %v3513_v30, %v3519_v38 }
0x159c   : > { %7054 = vpow2.f32 %v3522_v39  ;;  %v3524_v41 = vmul.f32 1.442695, %v3521_v40 }
0x159e   : > { %7056 = vpow2.f32 %v3524_v41 }
0x159f   : > { %7058 = vpow2.f32 %v3319_v57  ;;  %v6216_v57 = vld [vmem:[%s7272_s19 + $0x28] sm:$0xff] }
0x15a0   : > { %7060 = vpow2.f32 %v3321_v53 }
0x15a9   : > { %v7055_v43 = vpop.eup %7054 }
0x15aa   : > { %v3526_v46 = vsel %vm1774_vm9, %v7055_v43, 0.0 }
0x15ab   : > { %v7057_v58 = vpop.eup %7056  ;;  %3527 = vadd.xlane.f32.xlu0 %v3526_v46 }
0x15ac   : > { %v3529_v47 = vsel %vm1778_vm8, %v7057_v58, 0.0  ;;  %v7059_v54 = vpop.eup %7058 }
0x15ad   : > { %3530 = vadd.xlane.f32.xlu1 %v3529_v47  ;;  %v3323_v49 = vsel %vm1774_vm9, %v7059_v54, 0.0  ;;  %v7061_v55 = vpop.eup %7060  ;;  %v6218_v47 = vld [vmem:[%s7272_s19 + $0x38] sm:$0xff] }
0x15ae   : > { %v3326_v56 = vsel %vm1778_vm8, %v7061_v55, 0.0 }
0x15be   : > { %3333 = vrot.lane.b32.xlu1 %v7717_v45, %s8195_s22 }
0x15c1   : > { %3335 = vrot.lane.b32.xlu0 %v7715_v42, %s8195_s22  ;;  %s8242_s22 = smov 104  }
0x15c2   : > { %3538 = vrot.lane.b32.xlu1 %v7715_v42, %s8240_s26 }
0x15e0   : > { %3324 = vadd.xlane.f32.xlu0 %v3323_v49 }
0x15e6   : > { %3327 = vadd.xlane.f32.xlu1 %v3326_v56 }
0x15f6   : > { %3536 = vrot.lane.b32.xlu0 %v7717_v45, %s8240_s26 }
0x15f7   : > { %3630 = vrot.lane.b32.xlu1 %v7715_v42, %s8241_s23 }
0x15fa   : > { %3628 = vrot.lane.b32.xlu0 %v7717_v45, %s8241_s23 }
0x15fb   : > { %3624 = vrot.lane.b32.xlu1 %v7717_v45, %s8242_s22 }
0x15fe   : > { %3626 = vrot.lane.b32.xlu0 %v7715_v42, %s8242_s22 }
0x1634   : > { %v3528_v44 = vpop.xlane.xlu0 %3527 }
0x1636   : > { %v3531_v59 = vpop.xlane.xlu1 %3530 }
0x1638   : > { %v3336_v60 = vpop.permute.xlu0 %3335 }
0x1639   : > { %6694 = vmatprep.subr.msk.mxu1 %vm1809_vm10, %v3336_v60 }
0x163a   : > { %6695 = vmatpush3.msk.msra.mxu1 %vm1809_vm10, %v3336_v60  ;;  %v3334_v61 = vpop.permute.xlu1 %3333 }
0x163b   : > { %6696 = vmatprep.subr.mxu1 %v3334_v61 }
0x163c   : > { %6697 = vmatpush3.msra.mxu1 %v3334_v61 }
0x163e   : > { %v3539_v62 = vpop.permute.xlu1 %3538 }
0x163f   : > { %6708 = vmatprep.subr.msk.mxu1 %vm1809_vm10, %v3539_v62 }
0x1669   : > { %v3325_v63 = vpop.xlane.xlu0 %3324 }
0x166a   : > { %7062 = vrcp.f32 %v3325_v63 }
0x166b   : > { %7064 = vrcp.f32 %v3528_v44 }
0x166d   : > { %v3537_v13 = vpop.permute.xlu0 %3536 }
0x166f   : > { %v3328_v0 = vpop.xlane.xlu1 %3327 }
0x1670   : > { %7066 = vrcp.f32 %v3328_v0 }
0x1671   : > { %7068 = vrcp.f32 %v3531_v59  ;;  %v3629_v51 = vpop.permute.xlu0 %3628 }
0x1673   : > { %v3631_v8 = vpop.permute.xlu1 %3630 }
0x1675   : > { %v3627_v22 = vpop.permute.xlu0 %3626 }
0x1677   : > { %v7063_v2 = vpop.eup %7062  ;;  %v3625_v15 = vpop.permute.xlu1 %3624 }
0x1678   : > { %v3331_v3 = vmul.f32 %v7063_v2, %v7059_v54  ;;  %v7065_v4 = vpop.eup %7064 }
0x1679   : > { %v3534_v14 = vmul.f32 %v7065_v4, %v7055_v43 }
0x167a   : > { %6698 = vmatprep.mubr.msk.f32.mxu1 %vm1774_vm9, %v3331_v3 }
0x167d   : > { %v7067_v6 = vpop.eup %7066 }
0x167e   : > { %v3332_v9 = vmul.f32 %v7067_v6, %v7061_v55  ;;  %v7069_v12 = vpop.eup %7068  ;;  %v6222_v6 = vld [vmem:[%s7277_s24 + $0x1] ss:$0 sm:$0xff] }
0x167f   : > { %v3535_v50 = vmul.f32 %v7069_v12, %v7057_v58 }
0x1680   : > { %6699 = vmatmul.mubr.msk.f32.vlgmr.msra.gmra.mxu1 %vm1774_vm9, %v3332_v9 }
0x1681   : > { %6709 = vmatpush3.msk.msra.mxu1 %vm1809_vm10, %v3539_v62  ;;  %6712 = vmatprep.mubr.msk.f32.mxu1 %vm1774_vm9, %v3534_v14 }
0x1682   : > { %6710 = vmatprep.subr.mxu1 %v3537_v13 }
0x1683   : > { %6711 = vmatpush3.msra.mxu1 %v3537_v13 }
0x1684   : > { %6715 = vmatprep.subr.msk.mxu1 %vm1688_vm7, %v3631_v8  ;;  %6713 = vmatmul.mubr.msk.f32.vlgmr.msra.gmra.mxu1 %vm1774_vm9, %v3535_v50 }
0x1685   : > { %6716 = vmatpush3.xpose.msk.msra.mxu1 %vm1688_vm7, %v3631_v8  ;;  %6719 = vmatprep.mubr.msk.f32.mxu1 %vm1688_vm7, %v3625_v15 }
0x1686   : > { %6717 = vmatprep.subr.msk.mxu1 %vm1688_vm7, %v3629_v51 }
0x1689   : > { %6718 = vmatpush3.xpose.msk.msra.mxu1 %vm1688_vm7, %v3629_v51 }
0x168c   : > { %6720 = vmatmul.mubr.msk.f32.vlgmr.msra.gmra.mxu1 %vm1688_vm7, %v3627_v22 }
0x1740   : > { %v6700_v16 = vpop.f32.mrf.mxu1 }
0x1742   : > { %v3412_v17 = vpop.f32.mrf.mxu1 }
0x1744   : > { %v6714_v18 = vpop.f32.mrf.mxu1 }
0x1746   : > { %v3615_v19 = vpop.f32.mrf.mxu1 }
0x174c   : > { %v6721_v21 = vpop.f32.mrf.mxu1 }
0x174d   : > { %v3716_v23 = vmul.f32 0.35355338, %v6721_v21  ;;  %v6230_v21 = vld [vmem:[%s7292_s12 + $0x38] sm:$0xff] }
0x174e   : > { %v3706_v25 = vpop.f32.mrf.mxu1  ;;  %6740 = vmatprep.subr.mxu1 %v6230_v21 }
0x174f   : > { %v3715_v26 = vmul.f32 0.35355338, %v3706_v25  ;;  %v3720_v27 = vsel %vm1778_vm8, %v3716_v23, -inf  ;;  %6741 = vmatpush3.msra.mxu1 %v6230_v21  ;;  %v6228_v25 = vld [vmem:[%s7292_s12 + $0x28] sm:$0xff]  ;;  %v6252_v21 = vld [vmem:[%s8239_s0 + $0x1] ss:$0 sm:$0xff] }
0x1750   : > { %3721 = vmax.xlane.f32.xlu0 %v3720_v27  ;;  %s8248_s0 = sld [smem:[#allocation10_spill]] }
0x1751   : > { %v3717_v28 = vsel %vm1774_vm9, %v3715_v26, -inf }
0x1752   : > { %3718 = vmax.xlane.f32.xlu1 %v3717_v28 }
0x17d9   : > { %v3722_v29 = vpop.xlane.xlu0 %3721 }
0x17da   : > { %v3724_v30 = vsub.f32 %v3716_v23, %v3722_v29  ;;  %v6229_v23 = vld [vmem:[%s7292_s12 + $0x30] sm:$0xff] }
0x17db   : > { %v3719_v31 = vpop.xlane.xlu1 %3718  ;;  %6742 = vmatprep.subr.mxu1 %v6229_v23 }
0x17dc   : > { %v3727_v32 = vmul.f32 1.442695, %v3724_v30  ;;  %v3723_v33 = vsub.f32 %v3715_v26, %v3719_v31  ;;  %6743 = vmatpush3.msra.mxu1 %v6229_v23  ;;  %v6227_v26 = vld [vmem:[%s7292_s12 + $0x20] sm:$0xff] }
0x17dd   : > { %6744 = vmatprep.subr.mxu1 %v6228_v25 }
0x17de   : > { %7070 = vpow2.f32 %v3727_v32  ;;  %v3725_v34 = vmul.f32 1.442695, %v3723_v33  ;;  %6745 = vmatpush3.msra.mxu1 %v6228_v25 }
0x17df   : > { %6746 = vmatprep.subr.mxu1 %v6227_v26 }
0x17e0   : > { %7072 = vpow2.f32 %v3725_v34  ;;  %6747 = vmatpush3.msra.mxu1 %v6227_v26  ;;  %v6225_v34 = vld [vmem:[%s7282_s30 + $0x1] ss:$0 sm:$0xff] }
0x17eb   : > { %v7071_v35 = vpop.eup %7070 }
0x17ec   : > { %v3732_v36 = vsel %vm1778_vm8, %v7071_v35, 0.0 }
0x17ed   : > { %v7073_v37 = vpop.eup %7072  ;;  %3733 = vadd.xlane.f32.xlu1 %v3732_v36 }
0x17ee   : > { %v3729_v38 = vsel %vm1774_vm9, %v7073_v37, 0.0 }
0x17ef   : > { %3730 = vadd.xlane.f32.xlu0 %v3729_v38 }
0x17fe   : > { %3739 = vrot.lane.b32.xlu1 %v7717_v45, %s8243_s15 }
0x1802   : > { %3829 = vrot.lane.b32.xlu1 %v3412_v17, %s8244_s18 }
0x1805   : > { %3741 = vrot.lane.b32.xlu0 %v7715_v42, %s8243_s15 }
0x1806   : > { %3837 = vrot.lane.b32.xlu1 %v3615_v19, %s8245_s16 }
0x1809   : > { %3831 = vrot.lane.b32.xlu0 %v6700_v16, %s8244_s18 }
0x180d   : > { %3839 = vrot.lane.b32.xlu0 %v6714_v18, %s8245_s16 }
0x1876   : > { %v3734_v39 = vpop.xlane.xlu1 %3733 }
0x1877   : > { %7074 = vrcp.f32 %v3734_v39  ;;  %v6226_v39 = vld [vmem:[%s7287_s6 + $0x1] ss:$0 sm:$0xff] }
0x1878   : > { %v3731_v40 = vpop.xlane.xlu0 %3730 }
0x1879   : > { %7076 = vrcp.f32 %v3731_v40 }
0x187a   : > { %v3740_v45 = vpop.permute.xlu1 %3739 }
0x187c   : > { %v3742_v41 = vpop.permute.xlu0 %3741 }
0x187d   : > { %6722 = vmatprep.subr.msk.mxu0 %vm1809_vm10, %v3742_v41 }
0x187e   : > { %6723 = vmatpush3.msk.msra.mxu0 %vm1809_vm10, %v3742_v41  ;;  %v3830_v55 = vpop.permute.xlu1 %3829 }
0x187f   : > { %6724 = vmatprep.subr.mxu0 %v3740_v45  ;;  %v3851_v59 = vsel %vm1688_vm7, %v7773_v20, %v3830_v55  ;;  %v6239_v55 = vld [vmem:[%s8237_s7 + $0xa0] sm:$0xff] }
0x1880   : > { %6725 = vmatpush3.msra.mxu0 %v3740_v45  ;;  %v3832_v49 = vpop.permute.xlu0 %3831 }
0x1881   : > { %6729 = vmatprep.subr.mxu0 %v6218_v47  ;;  %v3852_v61 = vsel %vm1688_vm7, %v7771_v24, %v3832_v49  ;;  %v6240_v49 = vld [vmem:[%s8237_s7 + $0xa8] sm:$0xff] }
0x1882   : > { %v3838_v44 = vpop.permute.xlu1 %3837 }
0x1883   : > { %v3853_v62 = vsel %vm1269_vm0, %v3851_v59, %v3838_v44  ;;  %v6237_v44 = vld [vmem:[%s8237_s7 + $0x90] sm:$0xff]  ;;  %v6236_v59 = vld [vmem:[%s8237_s7 + $0x88] sm:$0xff] }
0x1884   : > { %v7075_v42 = vpop.eup %7074  ;;  %v3840_v56 = vpop.permute.xlu0 %3839 }
0x1885   : > { %v3738_v58 = vmul.f32 %v7075_v42, %v7071_v35  ;;  %v3854_v0 = vsel %vm1269_vm0, %v3852_v61, %v3840_v56  ;;  %v6250_v42 = vld [vmem:[%s8237_s7 + $0xf8] sm:$0xff]  ;;  %v6232_v61 = vld [vmem:[%s8238_s2 + $0x1] ss:$0 sm:$0xff]  ;;  %s8247_s2 = sld [smem:[#allocation3_spill]] }
0x1886   : > { %v7077_v43 = vpop.eup %7076  ;;  %v6238_v56 = vld [vmem:[%s8237_s7 + $0x98] sm:$0xff] }
0x1887   : > { %v3737_v46 = vmul.f32 %v7077_v43, %v7073_v37  ;;  %v6249_v43 = vld [vmem:[%s8237_s7 + $0xf0] sm:$0xff] }
0x1889   : > { %6726 = vmatprep.mubr.msk.f32.mxu0 %vm1774_vm9, %v3737_v46  ;;  %v6248_v46 = vld [vmem:[%s8237_s7 + $0xe8] sm:$0xff] }
0x188a   : > { %6727 = vmatmul.mubr.msk.f32.vlgmr.msra.gmra.mxu0 %vm1774_vm9, %v3738_v58  ;;  %v6247_v58 = vld [vmem:[%s8237_s7 + $0xe0] sm:$0xff] }
0x188b   : > { %6730 = vmatpush3.msra.mxu0 %v6218_v47  ;;  %v6246_v47 = vld [vmem:[%s8237_s7 + $0xd8] sm:$0xff]  ;;  %s1243_s5 = scalar_lea.vmem %s8247_s2, %s8249_s3  ;;  %s8251_s3 = sld [smem:[#allocation9_spill]] }
0x188c   : > { %6731 = vmatprep.subr.mxu0 %v6217_v48  ;;  %s8252_s2 = sld [smem:[#allocation11_spill]] }
0x188d   : > { %6732 = vmatpush3.msra.mxu0 %v6217_v48  ;;  %v6245_v48 = vld [vmem:[%s8237_s7 + $0xd0] sm:$0xff] }
0x188e   : > { %6733 = vmatprep.subr.mxu0 %v6216_v57 }
0x188f   : > { %6734 = vmatpush3.msra.mxu0 %v6216_v57  ;;  %v6244_v57 = vld [vmem:[%s8237_s7 + $0xc8] sm:$0xff] }
0x1890   : > { %6735 = vmatprep.subr.mxu0 %v6215_v52 }
0x1891   : > { %6736 = vmatpush3.msra.mxu0 %v6215_v52  ;;  %v6243_v52 = vld [vmem:[%s8237_s7 + $0xc0] sm:$0xff] }
0x1892   : > { %6751 = vmatprep.subr.mxu0 %v6250_v42 }
0x194a   : > { %v6728_v53 = vpop.f32.mrf.mxu0 }
0x194b   : > { %3847 = vrot.lane.b32.xlu0 %v6728_v53, %s8246_s11  ;;  %v6242_v53 = vld [vmem:[%s8237_s7 + $0xb8] sm:$0xff] }
0x194c   : > { %v3818_v54 = vpop.f32.mrf.mxu0 }
0x194d   : > { %3845 = vrot.lane.b32.xlu1 %v3818_v54, %s8246_s11  ;;  %v6241_v54 = vld [vmem:[%s8237_s7 + $0xb0] sm:$0xff] }
0x19bd   : > { %v3848_v60 = vpop.permute.xlu0 %3847 }
0x19be   : > { %v3856_v3 = vsel %vm2524_vm11, %v3854_v0, %v3848_v60  ;;  %v6235_v60 = vld [vmem:[%s8237_s7 + $0x80] sm:$0xff] }
0x19bf   : > { %v3846_v63 = vpop.permute.xlu1 %3845 }
0x19c0   : > { %v3855_v2 = vsel %vm2524_vm11, %v3853_v62, %v3846_v63 }
0x19c1   : > { %6737 = vmatprep.mubr.msk.f32.mxu0 %vm1545_vm5, %v3855_v2 }
0x19c2   : > { %6738 = vmatmul.mubr.msk.f32.vlgmr.msra.gmra.mxu0 %vm1545_vm5, %v3856_v3 }
0x19c3   : > { %6752 = vmatpush3.msra.mxu0 %v6250_v42 }
0x19c4   : > { %6753 = vmatprep.subr.mxu0 %v6249_v43 }
0x19c5   : > { %6754 = vmatpush3.msra.mxu0 %v6249_v43 }
0x19c6   : > { %6755 = vmatprep.subr.mxu0 %v6248_v46 }
0x19c7   : > { %6756 = vmatpush3.msra.mxu0 %v6248_v46  ;;  %v4262_v46 = vld [vmem:[%s8248_s0 + $0x18] sm:$0xff] }
0x19c8   : > { %6757 = vmatprep.subr.mxu0 %v6247_v58  ;;  %6786 = vmatprep.subr.mxu1 %v4262_v46 }
0x19c9   : > { %6758 = vmatpush3.msra.mxu0 %v6247_v58  ;;  %v4261_v58 = vld [vmem:[%s8248_s0 + $0x10] sm:$0xff] }
0x19ca   : > { %6759 = vmatprep.subr.mxu0 %v6246_v47 }
0x19cb   : > { %6760 = vmatpush3.msra.mxu0 %v6246_v47 }
0x19cc   : > { %6761 = vmatprep.subr.mxu0 %v6245_v48 }
0x19cd   : > { %6762 = vmatpush3.msra.mxu0 %v6245_v48  ;;  %v4260_v48 = vld [vmem:[%s8248_s0 + $0x8] sm:$0xff] }
0x19ce   : > { %6763 = vmatprep.subr.mxu0 %v6244_v57 }
0x19cf   : > { %6764 = vmatpush3.msra.mxu0 %v6244_v57  ;;  %v4259_v57 = vld [vmem:[%s8248_s0] sm:$0xff]  ;;  %s8253_s0 = sld [smem:[#allocation12_spill]] }
0x19d0   : > { %6765 = vmatprep.subr.mxu0 %v6243_v52 }
0x19d1   : > { %6766 = vmatpush3.msra.mxu0 %v6243_v52 }
0x19d2   : > { %6767 = vmatprep.subr.mxu0 %v6242_v53 }
0x19d3   : > { %6768 = vmatpush3.msra.mxu0 %v6242_v53 }
0x19d4   : > { %6769 = vmatprep.subr.mxu0 %v6241_v54 }
0x19d5   : > { %6770 = vmatpush3.msra.mxu0 %v6241_v54 }
0x19d6   : > { %6771 = vmatprep.subr.mxu0 %v6240_v49 }
0x19d7   : > { %6772 = vmatpush3.msra.mxu0 %v6240_v49 }
0x19d8   : > { %6773 = vmatprep.subr.mxu0 %v6239_v55 }
0x19d9   : > { %6774 = vmatpush3.msra.mxu0 %v6239_v55 }
0x19da   : > { %6775 = vmatprep.subr.mxu0 %v6238_v56 }
0x19db   : > { %6776 = vmatpush3.msra.mxu0 %v6238_v56 }
0x19dc   : > { %6777 = vmatprep.subr.mxu0 %v6237_v44 }
0x19dd   : > { %6778 = vmatpush3.msra.mxu0 %v6237_v44 }
0x19de   : > { %6779 = vmatprep.subr.mxu0 %v6236_v59 }
0x19df   : > { %6780 = vmatpush3.msra.mxu0 %v6236_v59 }
0x19e0   : > { %6781 = vmatprep.subr.mxu0 %v6235_v60 }
0x19e1   : > { %6782 = vmatpush3.msra.mxu0 %v6235_v60 }
0x1a82   : > { %v6739_v4 = vpop.f32.mrf.mxu0 }
0x1a83   : > { %v3944_v20 = vadd.f32 %v6739_v4, %v7693_v5 }
0x1a84   : > { %v3934_v8 = vpop.f32.mrf.mxu0 }
0x1a85   : > { %v7847_v9 = vadd.f32 %v6222_v6, %v3944_v20  ;;  %v3943_v24 = vadd.f32 %v3934_v8, %v7696_v7 }
0x1a87   : > { %v7850_v12 = vadd.f32 %v6222_v6, %v3943_v24  ;;  %v3962_v13 = vsel %vm1549_vm6, %v7847_v9, 0.0 }
0x1a88   : > { %3963 = vadd.xlane.f32.xlu0 %v3962_v13 }
0x1a89   : > { %v3959_v14 = vsel %vm1545_vm5, %v7850_v12, 0.0 }
0x1a8a   : > { %3960 = vadd.xlane.f32.xlu1 %v3959_v14 }
0x1b11   : > { %v3964_v50 = vpop.xlane.xlu0 %3963 }
0x1b12   : > { %v3966_v5 = vmul.f32 0.03125, %v3964_v50 }
0x1b13   : > { %v3961_v15 = vpop.xlane.xlu1 %3960 }
0x1b14   : > { %v3968_v51 = vsub.f32 %v7847_v9, %v3966_v5  ;;  %v3965_v7 = vmul.f32 0.03125, %v3961_v15 }
0x1b16   : > { %v3967_v22 = vsub.f32 %v7850_v12, %v3965_v7  ;;  %v3970_v16 = vmul.f32 %v3968_v51, %v3968_v51 }
0x1b18   : > { %v3974_v17 = vsel %vm1549_vm6, %v3970_v16, 0.0  ;;  %v3969_v18 = vmul.f32 %v3967_v22, %v3967_v22 }
0x1b19   : > { %3975 = vadd.xlane.f32.xlu1 %v3974_v17 }
0x1b1a   : > { %v3971_v19 = vsel %vm1545_vm5, %v3969_v18, 0.0 }
0x1b1b   : > { %3972 = vadd.xlane.f32.xlu0 %v3971_v19 }
0x1ba2   : > { %v3976_v27 = vpop.xlane.xlu1 %3975 }
0x1ba3   : > { %v3978_v28 = vmul.f32 0.03125, %v3976_v27 }
0x1ba4   : > { %v3973_v29 = vpop.xlane.xlu0 %3972 }
0x1ba5   : > { %v3980_v30 = vadd.f32 1e-05, %v3978_v28  ;;  %v3977_v31 = vmul.f32 0.03125, %v3973_v29 }
0x1ba7   : > { %7078 = vrsqrt.f32 %v3980_v30  ;;  %v3979_v32 = vadd.f32 1e-05, %v3977_v31 }
0x1ba9   : > { %7080 = vrsqrt.f32 %v3979_v32 }
0x1bb4   : > { %v7079_v33 = vpop.eup %7078 }
0x1bb5   : > { %v3984_v35 = vmul.f32 %v7079_v33, %v3968_v51 }
0x1bb6   : > { %v7081_v36 = vpop.eup %7080 }
0x1bb7   : > { %v3983_v37 = vmul.f32 %v7081_v36, %v3967_v22  ;;  %v3992_v38 = vmul.f32 %v6225_v34, %v3984_v35 }
0x1bb9   : > { %v3991_v40 = vmul.f32 %v6225_v34, %v3983_v37  ;;  %v4000_v45 = vadd.f32 %v6226_v39, %v3992_v38 }
0x1bbb   : > { %v3999_v41 = vadd.f32 %v6226_v39, %v3991_v40  ;;  %v1253_v40 = vld [vmem:[%s1243_s5] sm:$0xff] }
0x1bbc   : > { %vm4363_vm12 = vcmp.lt.s32.totalorder %v1253_v40, 14 }
0x1bbd   : > { %6748 = vmatprep.mubr.msk.f32.mxu1 %vm1545_vm5, %v3999_v41  ;;  %v7896_v41 = vsel %vm4363_vm12, 1.0, %v7199_v1 }
0x1bbe   : > { %6749 = vmatmul.mubr.msk.f32.vlgmr.msra.gmra.mxu1 %vm1545_vm5, %v4000_v45  ;;  %v1254_v45 = vld [vmem:[%s1243_s5 + $0x8] sm:$0xff]  ;;  %v4369_v42 = vsub.f32 1.0, %v7896_v41  ;;  %s8250_s5 = sld [smem:[#allocation8_spill]] }
0x1bbf   : > { %vm4364_vm13 = vcmp.lt.s32.totalorder %v1254_v45, 14  ;;  %6787 = vmatpush3.msra.mxu1 %v4262_v46 }
0x1bc0   : > { %v7900_v43 = vsel %vm4364_vm13, 1.0, %v7199_v1  ;;  %6788 = vmatprep.subr.mxu1 %v4261_v58 }
0x1bc1   : > { %v4370_v47 = vsub.f32 1.0, %v7900_v43  ;;  %6789 = vmatpush3.msra.mxu1 %v4261_v58 }
0x1bc2   : > { %6790 = vmatprep.subr.mxu1 %v4260_v48 }
0x1bc3   : > { %6791 = vmatpush3.msra.mxu1 %v4260_v48 }
0x1bc4   : > { %6792 = vmatprep.subr.mxu1 %v4259_v57  ;;  %v6253_v59 = vld [vmem:[%s8250_s5] ss:$0 sm:$0xff]  ;;  %s8254_s5 = sld [smem:[#allocation13_spill]] }
0x1bc5   : > { %6793 = vmatpush3.msra.mxu1 %v4259_v57 }
0x1c7e   : > { %v6750_v62 = vpop.f32.mrf.mxu1 }
0x1c7f   : > { %v4092_v63 = vadd.f32 %v6750_v62, %v6232_v61 }
0x1c80   : > { %v4086_v0 = vpop.f32.mrf.mxu1 }
0x1c81   : > { %v4096_v2 = vmul.f32 %v4092_v63, %v4092_v63  ;;  %v4087_v3 = vadd.f32 %v6232_v61, %v4086_v0 }
0x1c83   : > { %v4098_v4 = vmul.f32 %v4096_v2, %v4092_v63  ;;  %v4095_v6 = vmul.f32 %v4087_v3, %v4087_v3  ;;  %v6254_v2 = vld [vmem:[%s8251_s3] ss:$0 sm:$0xff]  ;;  %s8256_s3 = sld [smem:[#allocation14_spill]] }
0x1c85   : > { %v4100_v20 = vmul.f32 0.044715, %v4098_v4  ;;  %v4097_v8 = vmul.f32 %v4095_v6, %v4087_v3 }
0x1c87   : > { %v4102_v24 = vadd.f32 %v4100_v20, %v4092_v63  ;;  %v4099_v13 = vmul.f32 0.044715, %v4097_v8  ;;  %v6255_v8 = vld [vmem:[%s8252_s2] ss:$0 sm:$0xff]  ;;  %s8257_s2 = sld [smem:[#allocation15_spill]] }
0x1c89   : > { %v4104_v14 = vmul.f32 0.7978846, %v4102_v24  ;;  %v4101_v50 = vadd.f32 %v4099_v13, %v4087_v3 }
0x1c8b   : > { %7082 = vtanh.f32 %v4104_v14  ;;  %v4103_v5 = vmul.f32 0.7978846, %v4101_v50 }
0x1c8d   : > { %7084 = vtanh.f32 %v4103_v5 }
0x1c98   : > { %v7083_v15 = vpop.eup %7082 }
0x1c99   : > { %v4108_v51 = vadd.f32 1.0, %v7083_v15 }
0x1c9a   : > { %v7085_v7 = vpop.eup %7084 }
0x1c9b   : > { %v4107_v22 = vadd.f32 1.0, %v7085_v7  ;;  %v4110_v16 = vmul.f32 0.5, %v4108_v51  ;;  %v6262_v7 = vld [vmem:[%s8253_s0] ss:$0 sm:$0xff]  ;;  %s8255_s0 = sld [smem:[#allocation16_spill]] }
0x1c9d   : > { %v4109_v17 = vmul.f32 0.5, %v4107_v22  ;;  %v4112_v19 = vmul.f32 %v4110_v16, %v4092_v63 }
0x1c9f   : > { %v4111_v18 = vmul.f32 %v4109_v17, %v4087_v3 }
0x1ca1   : > { %6783 = vmatprep.mubr.f32.mxu0 %v4111_v18  ;;  %v4475_v18 = vld [vmem:[%s8254_s5 + $0x8] sm:$0xff]  ;;  %v4522_v46 = vld [vmem:[%s8255_s0] sm:$0xff] }
0x1ca2   : > { %6784 = vmatmul.mubr.f32.vlgmr.msra.gmra.mxu0 %v4112_v19 }
0x1d62   : > { %v6785_v23 = vpop.f32.mrf.mxu0 }
0x1d63   : > { %v4210_v25 = vadd.f32 %v6785_v23, %v6252_v21 }
0x1d64   : > { %v4204_v26 = vpop.f32.mrf.mxu0 }
0x1d65   : > { %v4214_v27 = vadd.f32 %v4210_v25, %v7847_v9  ;;  %v4205_v28 = vadd.f32 %v6252_v21, %v4204_v26  ;;  %v4474_v25 = vld [vmem:[%s8254_s5] sm:$0xff]  ;;  %s8258_s5 = sld [smem:[#allocation17_spill]] }
0x1d67   : > { %v4213_v29 = vadd.f32 %v4205_v28, %v7850_v12  ;;  %v4220_v30 = vsel %vm1549_vm6, %v4214_v27, 0.0 }
0x1d68   : > { %4221 = vadd.xlane.f32.xlu1 %v4220_v30 }
0x1d69   : > { %v4217_v31 = vsel %vm1545_vm5, %v4213_v29, 0.0 }
0x1d6a   : > { %4218 = vadd.xlane.f32.xlu0 %v4217_v31 }
0x1df1   : > { %v4222_v32 = vpop.xlane.xlu1 %4221 }
0x1df2   : > { %v4224_v33 = vmul.f32 0.03125, %v4222_v32 }
0x1df3   : > { %v4219_v34 = vpop.xlane.xlu0 %4218 }
0x1df4   : > { %v4226_v35 = vsub.f32 %v4214_v27, %v4224_v33  ;;  %v4223_v36 = vmul.f32 0.03125, %v4219_v34 }
0x1df6   : > { %v4225_v37 = vsub.f32 %v4213_v29, %v4223_v36  ;;  %v4228_v38 = vmul.f32 %v4226_v35, %v4226_v35 }
0x1df8   : > { %v4232_v9 = vsel %vm1549_vm6, %v4228_v38, 0.0  ;;  %v4227_v12 = vmul.f32 %v4225_v37, %v4225_v37 }
0x1df9   : > { %4233 = vadd.xlane.f32.xlu1 %v4232_v9 }
0x1dfa   : > { %v4229_v39 = vsel %vm1545_vm5, %v4227_v12, 0.0 }
0x1dfb   : > { %4230 = vadd.xlane.f32.xlu0 %v4229_v39  ;;  %v4525_v39 = vld [vmem:[%s8255_s0 + $0x18] sm:$0xff] }
0x1e0a   : > { %4355 = vperm.xlu1 %6997, %v1254_v45   ;;  %v4523_v45 = vld [vmem:[%s8255_s0 + $0x8] sm:$0xff] }
0x1e0e   : > { %4374 = vperm.xlu1 %6997, %v4369_v42  }
0x1e11   : > { %4352 = vperm.xlu0 %6996, %v1253_v40   ;;  %v4524_v40 = vld [vmem:[%s8255_s0 + $0x10] sm:$0xff] }
0x1e15   : > { %4379 = vperm.xlu0 %6996, %v4370_v47  }
0x1e82   : > { %v4234_v52 = vpop.xlane.xlu1 %4233 }
0x1e83   : > { %v4236_v53 = vmul.f32 0.03125, %v4234_v52 }
0x1e84   : > { %v4231_v54 = vpop.xlane.xlu0 %4230 }
0x1e85   : > { %v4238_v49 = vadd.f32 1e-05, %v4236_v53  ;;  %v4235_v55 = vmul.f32 0.03125, %v4231_v54 }
0x1e86   : > { %v4356_v13 = vpop.permute.xlu1 %4355 }
0x1e87   : > { %7086 = vrsqrt.f32 %v4238_v49  ;;  %v4237_v56 = vadd.f32 1e-05, %v4235_v55  ;;  %vm4358_vm15 = vcmp.eq.s32.totalorder %v4356_v13, %v7451_v11  ;;  %v6266_v55 = vld [vmem:[%s8256_s3] ss:$0 sm:$0xff]  ;;  %s8259_s3 = smov 96  }
0x1e88   : > { %v6259_v15 = vsel %vm4358_vm15, 1.0, %v7199_v1 }
0x1e89   : > { %7088 = vrsqrt.f32 %v4237_v56 }
0x1e8a   : > { %v7927_v22 = vpop.permute.xlu1 %4374 }
0x1e8b   : > { %v4388_v21 = vmul.f32 %v6262_v7, %v7927_v22 }
0x1e8c   : > { %v4353_v63 = vpop.permute.xlu0 %4352 }
0x1e8d   : > { %vm4357_vm14 = vcmp.eq.s32.totalorder %v4353_v63, %v7451_v11 }
0x1e8e   : > { %v6258_v20 = vsel %vm4357_vm14, 1.0, %v7199_v1 }
0x1e90   : > { %v7924_v51 = vpop.permute.xlu0 %4379 }
0x1e91   : > { %v4389_v16 = vmul.f32 %v6262_v7, %v7924_v51 }
0x1e94   : > { %v7087_v44 = vpop.eup %7086 }
0x1e95   : > { %v4242_v60 = vmul.f32 %v7087_v44, %v4226_v35 }
0x1e96   : > { %v7089_v61 = vpop.eup %7088 }
0x1e97   : > { %v4241_v62 = vmul.f32 %v7089_v61, %v4225_v37  ;;  %v4250_v0 = vmul.f32 %v6253_v59, %v4242_v60  ;;  %v6267_v61 = vld [vmem:[%s8257_s2] ss:$0 sm:$0xff]  ;;  %s8260_s2 = smov 88  }
0x1e99   : > { %v4249_v3 = vmul.f32 %v6253_v59, %v4241_v62  ;;  %v4258_v6 = vadd.f32 %v6254_v2, %v4250_v0 }
0x1e9b   : > { %v4257_v4 = vadd.f32 %v6254_v2, %v4249_v3  ;;  %v6268_v2 = vld [vmem:[%s8258_s5] ss:$0 sm:$0xff]  ;;  %s8261_s5 = smov 120  }
0x1e9d   : > { %6794 = vmatprep.mubr.msk.f32.mxu1 %vm1545_vm5, %v4257_v4 }
0x1e9e   : > { %6795 = vmatmul.mubr.msk.f32.vlgmr.msra.gmra.mxu1 %vm1545_vm5, %v4258_v6 }
0x1e9f   : > { %6801 = vmatprep.mubr.msk.f32.mxu1 %vm1774_vm9, %v6258_v20 }
0x1f5e   : > { %v6796_v24 = vpop.f32.mrf.mxu1 }
0x1f5f   : > { %v4348_v14 = vadd.f32 %v6796_v24, %v6255_v8 }
0x1f60   : > { %v4342_v50 = vpop.f32.mrf.mxu1 }
0x1f61   : > { %v4343_v5 = vadd.f32 %v6255_v8, %v4342_v50  ;;  %6797 = vmatprep.subr.msk.mxu1 %vm1809_vm10, %v4348_v14 }
0x1f62   : > { %6798 = vmatpush3.msk.msra.mxu1 %vm1809_vm10, %v4348_v14 }
0x1f63   : > { %6799 = vmatprep.subr.mxu1 %v4343_v5 }
0x1f64   : > { %6800 = vmatpush3.msra.mxu1 %v4343_v5 }
0x1f65   : > { %6802 = vmatmul.mubr.msk.f32.vlgmr.msra.gmra.mxu1 %vm1774_vm9, %v6259_v15  ;;  %6804 = vmatprep.subr.mxu1 %v4525_v39 }
0x1f66   : > { %6805 = vmatpush3.msra.mxu1 %v4525_v39 }
0x1f67   : > { %6806 = vmatprep.subr.mxu1 %v4524_v40 }
0x1f68   : > { %6807 = vmatpush3.msra.mxu1 %v4524_v40 }
0x1f69   : > { %6808 = vmatprep.subr.mxu1 %v4523_v45 }
0x1f6a   : > { %6809 = vmatpush3.msra.mxu1 %v4523_v45 }
0x1f6b   : > { %6810 = vmatprep.subr.mxu1 %v4522_v46 }
0x1f6c   : > { %6811 = vmatpush3.msra.mxu1 %v4522_v46 }
0x2025   : > { %v6803_v17 = vpop.f32.mrf.mxu1 }
0x2026   : > { %v4471_v19 = vadd.f32 %v6803_v17, %v4389_v16 }
0x2027   : > { %v4465_v23 = vpop.f32.mrf.mxu1 }
0x2028   : > { %v7933_v26 = vadd.f32 %v4475_v18, %v4471_v19  ;;  %v4466_v27 = vadd.f32 %v4465_v23, %v4388_v21 }
0x202a   : > { %v7935_v28 = vadd.f32 %v4474_v25, %v4466_v27  ;;  %v4483_v29 = vsel %vm1545_vm5, %v7933_v26, 0.0 }
0x202b   : > { %4484 = vadd.xlane.f32.xlu0 %v4483_v29 }
0x202c   : > { %v4480_v30 = vsel %vm1545_vm5, %v7935_v28, 0.0 }
0x202d   : > { %4481 = vadd.xlane.f32.xlu1 %v4480_v30 }
0x20b4   : > { %v4485_v31 = vpop.xlane.xlu0 %4484 }
0x20b5   : > { %v4487_v32 = vmul.f32 0.03125, %v4485_v31 }
0x20b6   : > { %v4482_v33 = vpop.xlane.xlu1 %4481 }
0x20b7   : > { %v4489_v34 = vsub.f32 %v7933_v26, %v4487_v32  ;;  %v4486_v35 = vmul.f32 0.03125, %v4482_v33 }
0x20b9   : > { %v4488_v36 = vsub.f32 %v7935_v28, %v4486_v35  ;;  %v4491_v37 = vmul.f32 %v4489_v34, %v4489_v34 }
0x20bb   : > { %v4495_v38 = vsel %vm1545_vm5, %v4491_v37, 0.0  ;;  %v4490_v9 = vmul.f32 %v4488_v36, %v4488_v36 }
0x20bc   : > { %4496 = vadd.xlane.f32.xlu1 %v4495_v38 }
0x20bd   : > { %v4492_v12 = vsel %vm1545_vm5, %v4490_v9, 0.0 }
0x20be   : > { %4493 = vadd.xlane.f32.xlu0 %v4492_v12 }
0x2145   : > { %v4497_v58 = vpop.xlane.xlu1 %4496 }
0x2146   : > { %v4499_v48 = vmul.f32 0.03125, %v4497_v58 }
0x2147   : > { %v4494_v57 = vpop.xlane.xlu0 %4493 }
0x2148   : > { %v4501_v52 = vadd.f32 1e-05, %v4499_v48  ;;  %v4498_v53 = vmul.f32 0.03125, %v4494_v57 }
0x214a   : > { %7090 = vrsqrt.f32 %v4501_v52  ;;  %v4500_v54 = vadd.f32 1e-05, %v4498_v53 }
0x214c   : > { %7092 = vrsqrt.f32 %v4500_v54 }
0x2157   : > { %v7091_v49 = vpop.eup %7090 }
0x2158   : > { %v4505_v56 = vmul.f32 %v7091_v49, %v4489_v34 }
0x2159   : > { %v7093_v44 = vpop.eup %7092 }
0x215a   : > { %v4504_v59 = vmul.f32 %v7093_v44, %v4488_v36  ;;  %v4513_v60 = vmul.f32 %v6266_v55, %v4505_v56 }
0x215c   : > { %v4512_v62 = vmul.f32 %v6266_v55, %v4504_v59  ;;  %v4521_v0 = vadd.f32 %v6267_v61, %v4513_v60 }
0x215e   : > { %v4520_v63 = vadd.f32 %v6267_v61, %v4512_v62 }
0x2160   : > { %6812 = vmatprep.mubr.msk.f32.mxu1 %vm1545_vm5, %v4520_v63 }
0x2161   : > { %6813 = vmatmul.mubr.msk.f32.vlgmr.msra.gmra.mxu1 %vm1545_vm5, %v4521_v0 }
0x2221   : > { %v6814_v3 = vpop.f32.mrf.mxu1 }
0x2222   : > { %v7954_v4 = vadd.f32 %v6814_v3, %v6268_v2 }
0x2223   : > { %v4605_v6 = vpop.f32.mrf.mxu1 }
0x2224   : > { %v7956_v20 = vadd.f32 %v6268_v2, %v4605_v6  ;;  %4618 = vrot.lane.b32.xlu0 %v7954_v4, %s8259_s3 }
0x2226   : > { %4616 = vrot.lane.b32.xlu1 %v7956_v20, %s8259_s3  ;;  %6819 = vmatprep.mubr.msk.f32.mxu1 %vm1688_vm7, %v7956_v20  ;;  %s8262_s3 = smov 64  }
0x2228   : > { %4818 = vrot.lane.b32.xlu0 %v7956_v20, %s8260_s2 }
0x222a   : > { %4820 = vrot.lane.b32.xlu1 %v7954_v4, %s8260_s2  ;;  %s8263_s2 = smov 56  }
0x222c   : > { %4816 = vrot.lane.b32.xlu0 %v7954_v4, %s8261_s5 }
0x222e   : > { %4814 = vrot.lane.b32.xlu1 %v7956_v20, %s8261_s5  ;;  %s8264_s5 = smov 80  }
0x2296   : > { %v4619_v8 = vpop.permute.xlu0 %4618 }
0x2297   : > { %6815 = vmatprep.subr.msk.mxu1 %vm1688_vm7, %v4619_v8 }
0x2298   : > { %6816 = vmatpush3.xpose.msk.msra.mxu1 %vm1688_vm7, %v4619_v8  ;;  %v4617_v24 = vpop.permute.xlu1 %4616 }
0x2299   : > { %6817 = vmatprep.subr.msk.mxu1 %vm1688_vm7, %v4617_v24 }
0x229a   : > { %v4819_v14 = vpop.permute.xlu0 %4818 }
0x229c   : > { %6818 = vmatpush3.xpose.msk.msra.mxu1 %vm1688_vm7, %v4617_v24  ;;  %v4821_v13 = vpop.permute.xlu1 %4820 }
0x229d   : > { %6829 = vmatprep.subr.msk.mxu0 %vm1688_vm7, %v4821_v13 }
0x229e   : > { %6830 = vmatpush3.xpose.msk.msra.mxu0 %vm1688_vm7, %v4821_v13  ;;  %v4817_v5 = vpop.permute.xlu0 %4816 }
0x229f   : > { %6820 = vmatmul.mubr.msk.f32.vlgmr.msra.gmra.mxu1 %vm1688_vm7, %v7954_v4  ;;  %6831 = vmatprep.subr.msk.mxu0 %vm1688_vm7, %v4819_v14 }
0x22a0   : > { %v4815_v50 = vpop.permute.xlu1 %4814 }
0x22a1   : > { %6833 = vmatprep.mubr.msk.f32.mxu0 %vm1688_vm7, %v4815_v50 }
0x22a2   : > { %6832 = vmatpush3.xpose.msk.msra.mxu0 %vm1688_vm7, %v4819_v14 }
0x22a5   : > { %6834 = vmatmul.mubr.msk.f32.vlgmr.msra.gmra.mxu0 %vm1688_vm7, %v4817_v5 }
0x235f   : > { %v6821_v15 = vpop.f32.mrf.mxu1 }
0x2360   : > { %v4704_v7 = vmul.f32 0.35355338, %v6821_v15 }
0x2361   : > { %v4694_v16 = vpop.f32.mrf.mxu1 }
0x2362   : > { %v4703_v17 = vmul.f32 0.35355338, %v4694_v16  ;;  %v4708_v18 = vsel %vm1269_vm0, %v4704_v7, -inf }
0x2363   : > { %4709 = vmax.xlane.f32.xlu0 %v4708_v18 }
0x2364   : > { %v4705_v19 = vsel %vm1269_vm0, %v4703_v17, -inf }
0x2365   : > { %v6835_v21 = vpop.f32.mrf.mxu0  ;;  %4706 = vmax.xlane.f32.xlu1 %v4705_v19 }
0x2366   : > { %v4906_v23 = vmul.f32 0.35355338, %v6835_v21 }
0x2367   : > { %v4896_v25 = vpop.f32.mrf.mxu0 }
0x2368   : > { %v4905_v27 = vmul.f32 0.35355338, %v4896_v25  ;;  %v4910_v29 = vsel %vm1269_vm0, %v4906_v23, -inf }
0x2369   : > { %4911 = vmax.xlane.f32.xlu1 %v4910_v29 }
0x236a   : > { %v4907_v30 = vsel %vm1269_vm0, %v4905_v27, -inf }
0x236b   : > { %4908 = vmax.xlane.f32.xlu0 %v4907_v30 }
0x237a   : > { %4727 = vrot.lane.b32.xlu1 %v7956_v20, %s8262_s3 }
0x237e   : > { %4931 = vrot.lane.b32.xlu1 %v7954_v4, %s8263_s2 }
0x2381   : > { %4729 = vrot.lane.b32.xlu0 %v7954_v4, %s8262_s3  ;;  %s8265_s3 = smov 112  }
0x23ec   : > { %v4710_v31 = vpop.xlane.xlu0 %4709 }
0x23ed   : > { %v4712_v32 = vsub.f32 %v4704_v7, %v4710_v31 }
0x23ee   : > { %v4707_v33 = vpop.xlane.xlu1 %4706 }
0x23ef   : > { %v4715_v34 = vmul.f32 1.442695, %v4712_v32  ;;  %v4711_v35 = vsub.f32 %v4703_v17, %v4707_v33 }
0x23f1   : > { %7094 = vpow2.f32 %v4715_v34  ;;  %v4713_v36 = vmul.f32 1.442695, %v4711_v35 }
0x23f2   : > { %v4912_v37 = vpop.xlane.xlu1 %4911 }
0x23f3   : > { %7096 = vpow2.f32 %v4713_v36  ;;  %v4914_v38 = vsub.f32 %v4906_v23, %v4912_v37 }
0x23f4   : > { %v4909_v9 = vpop.xlane.xlu0 %4908 }
0x23f5   : > { %v4917_v12 = vmul.f32 1.442695, %v4914_v38  ;;  %v4913_v39 = vsub.f32 %v4905_v27, %v4909_v9 }
0x23f6   : > { %v4728_v40 = vpop.permute.xlu1 %4727 }
0x23f7   : > { %7098 = vpow2.f32 %v4917_v12  ;;  %v4915_v45 = vmul.f32 1.442695, %v4913_v39 }
0x23f8   : > { %v4730_v46 = vpop.permute.xlu0 %4729 }
0x23f9   : > { %7100 = vpow2.f32 %v4915_v45  ;;  %6822 = vmatprep.subr.mxu1 %v4730_v46 }
0x23fa   : > { %6823 = vmatpush3.msra.mxu1 %v4730_v46  ;;  %v4932_v58 = vpop.permute.xlu1 %4931 }
0x23fb   : > { %6824 = vmatprep.subr.mxu1 %v4728_v40 }
0x23fc   : > { %6825 = vmatpush3.msra.mxu1 %v4728_v40 }
0x23fd   : > { %6836 = vmatprep.subr.mxu1 %v4932_v58 }
0x23fe   : > { %v7095_v48 = vpop.eup %7094 }
0x23ff   : > { %v4720_v57 = vsel %vm1269_vm0, %v7095_v48, 0.0 }
0x2400   : > { %v7097_v52 = vpop.eup %7096  ;;  %4721 = vadd.xlane.f32.xlu1 %v4720_v57 }
0x2401   : > { %v4717_v53 = vsel %vm1269_vm0, %v7097_v52, 0.0 }
0x2402   : > { %4718 = vadd.xlane.f32.xlu0 %v4717_v53 }
0x2404   : > { %v7099_v54 = vpop.eup %7098 }
0x2405   : > { %v4922_v49 = vsel %vm1269_vm0, %v7099_v54, 0.0 }
0x2406   : > { %v7101_v55 = vpop.eup %7100  ;;  %4923 = vadd.xlane.f32.xlu1 %v4922_v49 }
0x2407   : > { %v4919_v56 = vsel %vm1269_vm0, %v7101_v55, 0.0 }
0x2408   : > { %4920 = vadd.xlane.f32.xlu0 %v4919_v56 }
0x2417   : > { %5022 = vrot.lane.b32.xlu1 %v7954_v4, %s8264_s5 }
0x241b   : > { %5016 = vrot.lane.b32.xlu1 %v7956_v20, %s8265_s3 }
0x241e   : > { %4929 = vrot.lane.b32.xlu0 %v7956_v20, %s8263_s2  ;;  %s8273_s2 = sld [smem:[#allocation25_spill]] }
0x2422   : > { %5020 = vrot.lane.b32.xlu0 %v7956_v20, %s8264_s5  ;;  %s8274_s5 = sld [smem:[#allocation26_spill]] }
0x2426   : > { %5018 = vrot.lane.b32.xlu0 %v7954_v4, %s8265_s3 }
0x2489   : > { %v4722_v44 = vpop.xlane.xlu1 %4721 }
0x248a   : > { %7102 = vrcp.f32 %v4722_v44 }
0x248b   : > { %v4719_v59 = vpop.xlane.xlu0 %4718 }
0x248c   : > { %7104 = vrcp.f32 %v4719_v59 }
0x248f   : > { %v4924_v60 = vpop.xlane.xlu1 %4923 }
0x2490   : > { %7106 = vrcp.f32 %v4924_v60 }
0x2491   : > { %v4921_v61 = vpop.xlane.xlu0 %4920 }
0x2492   : > { %7108 = vrcp.f32 %v4921_v61 }
0x2493   : > { %v5023_v3 = vpop.permute.xlu1 %5022 }
0x2495   : > { %v4930_v8 = vpop.permute.xlu0 %4929 }
0x2497   : > { %v7103_v62 = vpop.eup %7102  ;;  %v5017_v50 = vpop.permute.xlu1 %5016 }
0x2498   : > { %v4726_v2 = vmul.f32 %v7103_v62, %v7095_v48 }
0x2499   : > { %v7105_v63 = vpop.eup %7104  ;;  %v5021_v5 = vpop.permute.xlu0 %5020 }
0x249a   : > { %v4725_v0 = vmul.f32 %v7105_v63, %v7097_v52 }
0x249c   : > { %6826 = vmatprep.mubr.msk.f32.mxu1 %vm1269_vm0, %v4725_v0 }
0x249d   : > { %6827 = vmatmul.mubr.msk.f32.vlgmr.msra.gmra.mxu1 %vm1269_vm0, %v4726_v2  ;;  %v7107_v6 = vpop.eup %7106  ;;  %v5019_v15 = vpop.permute.xlu0 %5018 }
0x249e   : > { %6837 = vmatpush3.msra.mxu1 %v4932_v58  ;;  %v4928_v14 = vmul.f32 %v7107_v6, %v7099_v54 }
0x249f   : > { %v7109_v24 = vpop.eup %7108  ;;  %6838 = vmatprep.subr.mxu1 %v4930_v8 }
0x24a0   : > { %6839 = vmatpush3.msra.mxu1 %v4930_v8  ;;  %v4927_v13 = vmul.f32 %v7109_v24, %v7101_v55 }
0x24a1   : > { %6843 = vmatprep.subr.msk.mxu1 %vm1688_vm7, %v5023_v3 }
0x24a2   : > { %6840 = vmatprep.mubr.msk.f32.mxu1 %vm1269_vm0, %v4927_v13 }
0x24a3   : > { %6841 = vmatmul.mubr.msk.f32.vlgmr.msra.gmra.mxu1 %vm1269_vm0, %v4928_v14 }
0x24a4   : > { %6844 = vmatpush3.xpose.msk.msra.mxu1 %vm1688_vm7, %v5023_v3  ;;  %6847 = vmatprep.mubr.msk.f32.mxu1 %vm1688_vm7, %v5017_v50 }
0x24a5   : > { %6845 = vmatprep.subr.msk.mxu1 %vm1688_vm7, %v5021_v5 }
0x24a8   : > { %6846 = vmatpush3.xpose.msk.msra.mxu1 %vm1688_vm7, %v5021_v5 }
0x24ab   : > { %6848 = vmatmul.mubr.msk.f32.vlgmr.msra.gmra.mxu1 %vm1688_vm7, %v5019_v15 }
0x255d   : > { %v8018_v7 = vpop.f32.mrf.mxu1 }
0x255f   : > { %v8020_v16 = vpop.f32.mrf.mxu1 }
0x2563   : > { %v8022_v17 = vpop.f32.mrf.mxu1 }
0x2565   : > { %v8024_v18 = vpop.f32.mrf.mxu1 }
0x256b   : > { %v6849_v19 = vpop.f32.mrf.mxu1 }
0x256c   : > { %v5108_v21 = vmul.f32 0.35355338, %v6849_v19 }
0x256d   : > { %v5098_v23 = vpop.f32.mrf.mxu1 }
0x256e   : > { %v5107_v25 = vmul.f32 0.35355338, %v5098_v23  ;;  %v5112_v27 = vsel %vm1269_vm0, %v5108_v21, -inf }
0x256f   : > { %5113 = vmax.xlane.f32.xlu0 %v5112_v27 }
0x2570   : > { %v5109_v29 = vsel %vm1269_vm0, %v5107_v25, -inf }
0x2571   : > { %5110 = vmax.xlane.f32.xlu1 %v5109_v29 }
0x25f8   : > { %v5114_v30 = vpop.xlane.xlu0 %5113 }
0x25f9   : > { %v5116_v31 = vsub.f32 %v5108_v21, %v5114_v30 }
0x25fa   : > { %v5111_v32 = vpop.xlane.xlu1 %5110 }
0x25fb   : > { %v5119_v33 = vmul.f32 1.442695, %v5116_v31  ;;  %v5115_v34 = vsub.f32 %v5107_v25, %v5111_v32 }
0x25fd   : > { %7110 = vpow2.f32 %v5119_v33  ;;  %v5117_v35 = vmul.f32 1.442695, %v5115_v34 }
0x25ff   : > { %7112 = vpow2.f32 %v5117_v35 }
0x260a   : > { %v7111_v36 = vpop.eup %7110 }
0x260b   : > { %v5124_v37 = vsel %vm1269_vm0, %v7111_v36, 0.0 }
0x260c   : > { %v7113_v38 = vpop.eup %7112  ;;  %5125 = vadd.xlane.f32.xlu1 %v5124_v37 }
0x260d   : > { %v5121_v9 = vsel %vm1269_vm0, %v7113_v38, 0.0 }
0x260e   : > { %5122 = vadd.xlane.f32.xlu0 %v5121_v9 }
0x261d   : > { %5131 = vrot.lane.b32.xlu1 %v7956_v20, %s8240_s26 }
0x2621   : > { %5224 = vrot.lane.b32.xlu1 %v7954_v4, %s8241_s23 }
0x2624   : > { %5133 = vrot.lane.b32.xlu0 %v7954_v4, %s8240_s26  ;;  %s8272_s26 = sld [smem:[#allocation23_spill]] }
0x2625   : > { %5218 = vrot.lane.b32.xlu1 %v7956_v20, %s8242_s22 }
0x2628   : > { %5222 = vrot.lane.b32.xlu0 %v7956_v20, %s8241_s23  ;;  %s8271_s23 = sld [smem:[#allocation24_spill]] }
0x262c   : > { %5220 = vrot.lane.b32.xlu0 %v7954_v4, %s8242_s22  ;;  %s8266_s22 = sld [smem:[#allocation18_spill]] }
0x2632   : > { %v5453_v25 = vld [vmem:[%s8266_s22 + $0x18] sm:$0xff]  ;;  %v5452_v27 = vld [vmem:[%s8266_s22 + $0x10] sm:$0xff]  ;;  %v5451_v29 = vld [vmem:[%s8266_s22 + $0x8] sm:$0xff] }
0x2633   : > { %v5450_v30 = vld [vmem:[%s8266_s22] sm:$0xff] }
0x2695   : > { %v5126_v12 = vpop.xlane.xlu1 %5125 }
0x2696   : > { %7114 = vrcp.f32 %v5126_v12 }
0x2697   : > { %v5123_v39 = vpop.xlane.xlu0 %5122 }
0x2698   : > { %7116 = vrcp.f32 %v5123_v39 }
0x2699   : > { %v5132_v40 = vpop.permute.xlu1 %5131 }
0x269b   : > { %v5134_v45 = vpop.permute.xlu0 %5133 }
0x269c   : > { %6850 = vmatprep.subr.mxu0 %v5134_v45 }
0x269d   : > { %6851 = vmatpush3.msra.mxu0 %v5134_v45  ;;  %v5225_v46 = vpop.permute.xlu1 %5224 }
0x269e   : > { %6852 = vmatprep.subr.mxu0 %v5132_v40 }
0x269f   : > { %6853 = vmatpush3.msra.mxu0 %v5132_v40  ;;  %v5223_v54 = vpop.permute.xlu0 %5222 }
0x26a0   : > { %6857 = vmatprep.subr.msk.mxu0 %vm1688_vm7, %v5225_v46 }
0x26a1   : > { %v5219_v53 = vpop.permute.xlu1 %5218 }
0x26a3   : > { %v7115_v58 = vpop.eup %7114  ;;  %v5221_v49 = vpop.permute.xlu0 %5220 }
0x26a4   : > { %v5130_v52 = vmul.f32 %v7115_v58, %v7111_v36 }
0x26a5   : > { %v7117_v48 = vpop.eup %7116 }
0x26a6   : > { %v5129_v57 = vmul.f32 %v7117_v48, %v7113_v38 }
0x26a8   : > { %6854 = vmatprep.mubr.msk.f32.mxu0 %vm1269_vm0, %v5129_v57 }
0x26a9   : > { %6855 = vmatmul.mubr.msk.f32.vlgmr.msra.gmra.mxu0 %vm1269_vm0, %v5130_v52 }
0x26aa   : > { %6858 = vmatpush3.xpose.msk.msra.mxu0 %vm1688_vm7, %v5225_v46  ;;  %6861 = vmatprep.mubr.msk.f32.mxu0 %vm1688_vm7, %v5219_v53 }
0x26ab   : > { %6859 = vmatprep.subr.msk.mxu0 %vm1688_vm7, %v5223_v54 }
0x26ae   : > { %6860 = vmatpush3.xpose.msk.msra.mxu0 %vm1688_vm7, %v5223_v54 }
0x26b1   : > { %6862 = vmatmul.mubr.msk.f32.vlgmr.msra.gmra.mxu0 %vm1688_vm7, %v5221_v49 }
0x2769   : > { %v6856_v55 = vpop.f32.mrf.mxu0 }
0x276b   : > { %v5209_v56 = vpop.f32.mrf.mxu0 }
0x2771   : > { %v6863_v44 = vpop.f32.mrf.mxu0 }
0x2772   : > { %v5310_v59 = vmul.f32 0.35355338, %v6863_v44 }
0x2773   : > { %v5300_v60 = vpop.f32.mrf.mxu0 }
0x2774   : > { %v5309_v61 = vmul.f32 0.35355338, %v5300_v60  ;;  %v5314_v62 = vsel %vm1269_vm0, %v5310_v59, -inf }
0x2775   : > { %5315 = vmax.xlane.f32.xlu0 %v5314_v62 }
0x2776   : > { %v5311_v63 = vsel %vm1269_vm0, %v5309_v61, -inf }
0x2777   : > { %5312 = vmax.xlane.f32.xlu1 %v5311_v63 }
0x27fe   : > { %v5316_v0 = vpop.xlane.xlu0 %5315 }
0x27ff   : > { %v5318_v2 = vsub.f32 %v5310_v59, %v5316_v0 }
0x2800   : > { %v5313_v3 = vpop.xlane.xlu1 %5312 }
0x2801   : > { %v5321_v6 = vmul.f32 1.442695, %v5318_v2  ;;  %v5317_v8 = vsub.f32 %v5309_v61, %v5313_v3 }
0x2803   : > { %7118 = vpow2.f32 %v5321_v6  ;;  %v5319_v24 = vmul.f32 1.442695, %v5317_v8 }
0x2805   : > { %7120 = vpow2.f32 %v5319_v24 }
0x2810   : > { %v7119_v13 = vpop.eup %7118 }
0x2811   : > { %v5326_v14 = vsel %vm1269_vm0, %v7119_v13, 0.0 }
0x2812   : > { %v7121_v50 = vpop.eup %7120  ;;  %5327 = vadd.xlane.f32.xlu1 %v5326_v14 }
0x2813   : > { %v5323_v5 = vsel %vm1269_vm0, %v7121_v50, 0.0 }
0x2814   : > { %5324 = vadd.xlane.f32.xlu0 %v5323_v5 }
0x2823   : > { %5333 = vrot.lane.b32.xlu1 %v7956_v20, %s8243_s15 }
0x2827   : > { %5422 = vrot.lane.b32.xlu1 %v8024_v18, %s8244_s18 }
0x282a   : > { %5335 = vrot.lane.b32.xlu0 %v7954_v4, %s8243_s15  ;;  %s8267_s15 = sld [smem:[#allocation19_spill]] }
0x282b   : > { %5430 = vrot.lane.b32.xlu1 %v5209_v56, %s8245_s16 }
0x282e   : > { %5424 = vrot.lane.b32.xlu0 %v8022_v17, %s8244_s18  ;;  %s8270_s18 = sld [smem:[#allocation21_spill]] }
0x2830   : > { %v6297_v48 = vld [vmem:[%s8267_s15] ss:$0 sm:$0xff]  ;;  %s1246_s15 = scalar_lea.vmem %s7422_s27, %s8276_s1 }
0x2832   : > { %5432 = vrot.lane.b32.xlu0 %v6856_v55, %s8245_s16  ;;  %s8269_s16 = sld [smem:[#allocation20_spill]] }
0x289b   : > { %v5328_v15 = vpop.xlane.xlu1 %5327 }
0x289c   : > { %7122 = vrcp.f32 %v5328_v15 }
0x289d   : > { %v5325_v19 = vpop.xlane.xlu0 %5324 }
0x289e   : > { %7124 = vrcp.f32 %v5325_v19  ;;  %v6298_v19 = vld [vmem:[%s8269_s16] ss:$0 sm:$0xff] }
0x289f   : > { %v5334_v21 = vpop.permute.xlu1 %5333 }
0x28a1   : > { %v5336_v20 = vpop.permute.xlu0 %5335 }
0x28a2   : > { %6864 = vmatprep.subr.mxu1 %v5336_v20 }
0x28a3   : > { %6865 = vmatpush3.msra.mxu1 %v5336_v20  ;;  %v5423_v34 = vpop.permute.xlu1 %5422 }
0x28a4   : > { %6866 = vmatprep.subr.mxu1 %v5334_v21  ;;  %v5444_v37 = vsel %vm1688_vm7, %v8020_v16, %v5423_v34  ;;  %v5710_v34 = vld [vmem:[%s8271_s23 + $0x50] sm:$0xff] }
0x28a5   : > { %6867 = vmatpush3.msra.mxu1 %v5334_v21  ;;  %v5425_v33 = vpop.permute.xlu0 %5424 }
0x28a6   : > { %6871 = vmatprep.subr.mxu1 %v5453_v25  ;;  %v5445_v9 = vsel %vm1688_vm7, %v8018_v7, %v5425_v33  ;;  %v5711_v33 = vld [vmem:[%s8271_s23 + $0x58] sm:$0xff] }
0x28a7   : > { %v5431_v36 = vpop.permute.xlu1 %5430 }
0x28a8   : > { %v5446_v12 = vsel %vm1269_vm0, %v5444_v37, %v5431_v36  ;;  %v5708_v36 = vld [vmem:[%s8271_s23 + $0x40] sm:$0xff]  ;;  %v5707_v37 = vld [vmem:[%s8271_s23 + $0x38] sm:$0xff] }
0x28a9   : > { %v7123_v4 = vpop.eup %7122  ;;  %v5433_v35 = vpop.permute.xlu0 %5432 }
0x28aa   : > { %v5332_v17 = vmul.f32 %v7123_v4, %v7119_v13  ;;  %v5447_v40 = vsel %vm1269_vm0, %v5445_v9, %v5433_v35  ;;  %v5709_v35 = vld [vmem:[%s8271_s23 + $0x48] sm:$0xff] }
0x28ab   : > { %v7125_v18 = vpop.eup %7124  ;;  %v5705_v9 = vld [vmem:[%s8271_s23 + $0x28] sm:$0xff] }
0x28ac   : > { %v5331_v23 = vmul.f32 %v7125_v18, %v7121_v50 }
0x28ae   : > { %6868 = vmatprep.mubr.msk.f32.mxu1 %vm1269_vm0, %v5331_v23  ;;  %v6299_v23 = vld [vmem:[%s8270_s18] ss:$0 sm:$0xff] }
0x28af   : > { %6869 = vmatmul.mubr.msk.f32.vlgmr.msra.gmra.mxu1 %vm1269_vm0, %v5332_v17  ;;  %vm5981_vm0 = vcmask 7168  }
0x28b0   : > { %6872 = vmatpush3.msra.mxu1 %v5453_v25 }
0x28b1   : > { %6873 = vmatprep.subr.mxu1 %v5452_v27 }
0x28b2   : > { %6874 = vmatpush3.msra.mxu1 %v5452_v27 }
0x28b3   : > { %6875 = vmatprep.subr.mxu1 %v5451_v29 }
0x28b4   : > { %6876 = vmatpush3.msra.mxu1 %v5451_v29  ;;  %v5715_v29 = vld [vmem:[%s8271_s23 + $0x78] sm:$0xff] }
0x28b5   : > { %6877 = vmatprep.subr.mxu1 %v5450_v30 }
0x28b6   : > { %6878 = vmatpush3.msra.mxu1 %v5450_v30  ;;  %v5714_v30 = vld [vmem:[%s8271_s23 + $0x70] sm:$0xff] }
0x28b7   : > { %6893 = vmatprep.subr.mxu1 %v5715_v29 }
0x296f   : > { %v6870_v31 = vpop.f32.mrf.mxu1 }
0x2970   : > { %5440 = vrot.lane.b32.xlu0 %v6870_v31, %s8246_s11  ;;  %v5713_v31 = vld [vmem:[%s8271_s23 + $0x68] sm:$0xff] }
0x2971   : > { %v5411_v32 = vpop.f32.mrf.mxu1 }
0x2972   : > { %5438 = vrot.lane.b32.xlu1 %v5411_v32, %s8246_s11  ;;  %s8268_s11 = sld [smem:[#allocation22_spill]]  ;;  %v5712_v32 = vld [vmem:[%s8271_s23 + $0x60] sm:$0xff] }
0x2978   : > { %v5593_v0 = vld [vmem:[%s8268_s11 + $0x18] sm:$0xff]  ;;  %v5592_v2 = vld [vmem:[%s8268_s11 + $0x10] sm:$0xff]  ;;  %v5591_v3 = vld [vmem:[%s8268_s11 + $0x8] sm:$0xff] }
0x2979   : > { %6882 = vmatprep.subr.mxu0 %v5593_v0  ;;  %v5590_v6 = vld [vmem:[%s8268_s11] sm:$0xff] }
0x297a   : > { %6883 = vmatpush3.msra.mxu0 %v5593_v0 }
0x297b   : > { %6884 = vmatprep.subr.mxu0 %v5592_v2 }
0x297c   : > { %6885 = vmatpush3.msra.mxu0 %v5592_v2 }
0x297d   : > { %6886 = vmatprep.subr.mxu0 %v5591_v3 }
0x297e   : > { %6887 = vmatpush3.msra.mxu0 %v5591_v3 }
0x297f   : > { %6888 = vmatprep.subr.mxu0 %v5590_v6 }
0x2980   : > { %6889 = vmatpush3.msra.mxu0 %v5590_v6 }
0x29e2   : > { %v5441_v38 = vpop.permute.xlu0 %5440 }
0x29e3   : > { %v5449_v46 = vsel %vm2524_vm11, %v5447_v40, %v5441_v38  ;;  %v5706_v38 = vld [vmem:[%s8271_s23 + $0x30] sm:$0xff] }
0x29e4   : > { %v5439_v39 = vpop.permute.xlu1 %5438  ;;  %v5702_v40 = vld [vmem:[%s8271_s23 + $0x10] sm:$0xff] }
0x29e5   : > { %v5448_v45 = vsel %vm2524_vm11, %v5446_v12, %v5439_v39  ;;  %v5704_v12 = vld [vmem:[%s8271_s23 + $0x20] sm:$0xff]  ;;  %v5703_v39 = vld [vmem:[%s8271_s23 + $0x18] sm:$0xff] }
0x29e6   : > { %6879 = vmatprep.mubr.msk.f32.mxu1 %vm1545_vm5, %v5448_v45  ;;  %v5701_v45 = vld [vmem:[%s8271_s23 + $0x8] sm:$0xff] }
0x29e7   : > { %6880 = vmatmul.mubr.msk.f32.vlgmr.msra.gmra.mxu1 %vm1545_vm5, %v5449_v46  ;;  %v5700_v46 = vld [vmem:[%s8271_s23] sm:$0xff] }
0x29e8   : > { %6894 = vmatpush3.msra.mxu1 %v5715_v29 }
0x29e9   : > { %6895 = vmatprep.subr.mxu1 %v5714_v30 }
0x29ea   : > { %6896 = vmatpush3.msra.mxu1 %v5714_v30 }
0x29eb   : > { %6897 = vmatprep.subr.mxu1 %v5713_v31 }
0x29ec   : > { %6898 = vmatpush3.msra.mxu1 %v5713_v31 }
0x29ed   : > { %6899 = vmatprep.subr.mxu1 %v5712_v32 }
0x29ee   : > { %6900 = vmatpush3.msra.mxu1 %v5712_v32  ;;  %v5851_v32 = vld [vmem:[%s7412_s13 + $0x38] sm:$0xff] }
0x29ef   : > { %6901 = vmatprep.subr.mxu1 %v5711_v33  ;;  %5894 = vmatprep.subr.mxu0 %v5851_v32 }
0x29f0   : > { %6902 = vmatpush3.msra.mxu1 %v5711_v33  ;;  %v5850_v33 = vld [vmem:[%s7412_s13 + $0x30] sm:$0xff] }
0x29f1   : > { %6903 = vmatprep.subr.mxu1 %v5710_v34 }
0x29f2   : > { %6904 = vmatpush3.msra.mxu1 %v5710_v34  ;;  %v5849_v34 = vld [vmem:[%s7412_s13 + $0x28] sm:$0xff] }
0x29f3   : > { %6905 = vmatprep.subr.mxu1 %v5709_v35 }
0x29f4   : > { %6906 = vmatpush3.msra.mxu1 %v5709_v35  ;;  %v5848_v35 = vld [vmem:[%s7412_s13 + $0x20] sm:$0xff] }
0x29f5   : > { %6907 = vmatprep.subr.mxu1 %v5708_v36 }
0x29f6   : > { %6908 = vmatpush3.msra.mxu1 %v5708_v36  ;;  %v5847_v36 = vld [vmem:[%s7412_s13 + $0x18] sm:$0xff] }
0x29f7   : > { %6909 = vmatprep.subr.mxu1 %v5707_v37 }
0x29f8   : > { %6910 = vmatpush3.msra.mxu1 %v5707_v37  ;;  %v5846_v37 = vld [vmem:[%s7412_s13 + $0x10] sm:$0xff] }
0x29f9   : > { %6911 = vmatprep.subr.mxu1 %v5706_v38 }
0x29fa   : > { %6912 = vmatpush3.msra.mxu1 %v5706_v38  ;;  %v5845_v38 = vld [vmem:[%s7412_s13 + $0x8] sm:$0xff] }
0x29fb   : > { %6913 = vmatprep.subr.mxu1 %v5705_v9 }
0x29fc   : > { %6914 = vmatpush3.msra.mxu1 %v5705_v9  ;;  %v5844_v9 = vld [vmem:[%s7412_s13] sm:$0xff] }
0x29fd   : > { %6915 = vmatprep.subr.mxu1 %v5704_v12 }
0x29fe   : > { %6916 = vmatpush3.msra.mxu1 %v5704_v12 }
0x29ff   : > { %6917 = vmatprep.subr.mxu1 %v5703_v39 }
0x2a00   : > { %6918 = vmatpush3.msra.mxu1 %v5703_v39 }
0x2a01   : > { %6919 = vmatprep.subr.mxu1 %v5702_v40 }
0x2a02   : > { %6920 = vmatpush3.msra.mxu1 %v5702_v40 }
0x2a03   : > { %6921 = vmatprep.subr.mxu1 %v5701_v45 }
0x2a04   : > { %6922 = vmatpush3.msra.mxu1 %v5701_v45 }
0x2a05   : > { %6923 = vmatprep.subr.mxu1 %v5700_v46 }
0x2a06   : > { %6924 = vmatpush3.msra.mxu1 %v5700_v46 }
0x2aa7   : > { %v6881_v58 = vpop.f32.mrf.mxu1 }
0x2aa8   : > { %v5536_v16 = vadd.f32 %v6881_v58, %v7933_v26  ;;  %v6300_v58 = vld [vmem:[%s8272_s26] ss:$0 sm:$0xff] }
0x2aa9   : > { %v5526_v57 = vpop.f32.mrf.mxu1 }
0x2aaa   : > { %v8084_v52 = vadd.f32 %v6297_v48, %v5536_v16  ;;  %v5535_v7 = vadd.f32 %v5526_v57, %v7935_v28 }
0x2aac   : > { %v8087_v53 = vadd.f32 %v6297_v48, %v5535_v7  ;;  %v5551_v54 = vsel %vm1545_vm5, %v8084_v52, 0.0 }
0x2aad   : > { %5552 = vadd.xlane.f32.xlu0 %v5551_v54 }
0x2aae   : > { %v5548_v49 = vsel %vm1545_vm5, %v8087_v53, 0.0 }
0x2aaf   : > { %5549 = vadd.xlane.f32.xlu1 %v5548_v49 }
0x2b36   : > { %v5553_v55 = vpop.xlane.xlu0 %5552 }
0x2b37   : > { %v5555_v26 = vmul.f32 0.03125, %v5553_v55 }
0x2b38   : > { %v5550_v56 = vpop.xlane.xlu1 %5549 }
0x2b39   : > { %v5557_v44 = vsub.f32 %v8084_v52, %v5555_v26  ;;  %v5554_v28 = vmul.f32 0.03125, %v5550_v56 }
0x2b3b   : > { %v5556_v59 = vsub.f32 %v8087_v53, %v5554_v28  ;;  %v5559_v60 = vmul.f32 %v5557_v44, %v5557_v44 }
0x2b3d   : > { %v5563_v61 = vsel %vm1545_vm5, %v5559_v60, 0.0  ;;  %v5558_v62 = vmul.f32 %v5556_v59, %v5556_v59 }
0x2b3e   : > { %5564 = vadd.xlane.f32.xlu1 %v5563_v61 }
0x2b3f   : > { %v5560_v63 = vsel %vm1545_vm5, %v5558_v62, 0.0 }
0x2b40   : > { %5561 = vadd.xlane.f32.xlu0 %v5560_v63 }
0x2bc7   : > { %v5565_v8 = vpop.xlane.xlu1 %5564 }
0x2bc8   : > { %v5567_v24 = vmul.f32 0.03125, %v5565_v8 }
0x2bc9   : > { %v5562_v13 = vpop.xlane.xlu0 %5561 }
0x2bca   : > { %v5569_v14 = vadd.f32 1e-05, %v5567_v24  ;;  %v5566_v50 = vmul.f32 0.03125, %v5562_v13  ;;  %v6303_v13 = vld [vmem:[%s8273_s2] ss:$0 sm:$0xff] }
0x2bcc   : > { %7126 = vrsqrt.f32 %v5569_v14  ;;  %v5568_v5 = vadd.f32 1e-05, %v5566_v50 }
0x2bce   : > { %7128 = vrsqrt.f32 %v5568_v5 }
0x2bd9   : > { %v7127_v15 = vpop.eup %7126 }
0x2bda   : > { %v5573_v20 = vmul.f32 %v7127_v15, %v5557_v44 }
0x2bdb   : > { %v7129_v21 = vpop.eup %7128 }
0x2bdc   : > { %v5572_v4 = vmul.f32 %v7129_v21, %v5556_v59  ;;  %v5581_v18 = vmul.f32 %v6298_v19, %v5573_v20 }
0x2bde   : > { %v5580_v17 = vmul.f32 %v6298_v19, %v5572_v4  ;;  %v5589_v27 = vadd.f32 %v6299_v23, %v5581_v18 }
0x2be0   : > { %v5588_v25 = vadd.f32 %v6299_v23, %v5580_v17 }
0x2be2   : > { %6890 = vmatprep.mubr.msk.f32.mxu0 %vm1545_vm5, %v5588_v25 }
0x2be3   : > { %6891 = vmatmul.mubr.msk.f32.vlgmr.msra.gmra.mxu0 %vm1545_vm5, %v5589_v27 }
0x2be4   : > { %5934 = vmatprep.mubr.f32.mxu0 %v7199_v1  ;;  %5895 = vmatpush1.msra.mxu0 %v5850_v33 }
0x2be5   : > { %5896 = vmatprep.subr.mxu0 %v5849_v34 }
0x2be6   : > { %5897 = vmatpush1.msra.mxu0 %v5848_v35 }
0x2be7   : > { %5898 = vmatprep.subr.mxu0 %v5847_v36 }
0x2be8   : > { %5899 = vmatpush1.msra.mxu0 %v5846_v37 }
0x2be9   : > { %5900 = vmatprep.subr.mxu0 %v5845_v38 }
0x2bea   : > { %5901 = vmatpush1.msra.mxu0 %v5844_v9 }
0x2ca3   : > { %v6892_v48 = vpop.f32.mrf.mxu0 }
0x2ca4   : > { %v5679_v16 = vadd.f32 %v6892_v48, %v6300_v58 }
0x2ca5   : > { %v5673_v57 = vpop.f32.mrf.mxu0 }
0x2ca6   : > { %v5683_v7 = vmul.f32 %v5679_v16, %v5679_v16  ;;  %v5674_v54 = vadd.f32 %v6300_v58, %v5673_v57 }
0x2ca8   : > { %v5685_v49 = vmul.f32 %v5683_v7, %v5679_v16  ;;  %v5682_v55 = vmul.f32 %v5674_v54, %v5674_v54 }
0x2caa   : > { %v5687_v26 = vmul.f32 0.044715, %v5685_v49  ;;  %v5684_v56 = vmul.f32 %v5682_v55, %v5674_v54  ;;  %v6305_v55 = vld [vmem:[%s7407_s4] ss:$0 sm:$0xff] }
0x2cac   : > { %v5689_v44 = vadd.f32 %v5687_v26, %v5679_v16  ;;  %v5686_v28 = vmul.f32 0.044715, %v5684_v56 }
0x2cae   : > { %v5691_v59 = vmul.f32 0.7978846, %v5689_v44  ;;  %v5688_v60 = vadd.f32 %v5686_v28, %v5674_v54  ;;  %v5982_v28 = vsel %vm5981_vm0, %v4369_v42, 0.0 }
0x2cb0   : > { %7130 = vtanh.f32 %v5691_v59  ;;  %v5690_v61 = vmul.f32 0.7978846, %v5688_v60  ;;  %v5983_v59 = vsel %vm5981_vm0, %v4370_v47, 0.0 }
0x2cb1   : > { %v5984_v60 = vadd.f32 %v5983_v59, %v5982_v28 }
0x2cb2   : > { %7132 = vtanh.f32 %v5690_v61  ;;  %v5855_v61 = vshrl.u32 %v1255_v10, 7 }
0x2cbd   : > { %v7131_v62 = vpop.eup %7130 }
0x2cbe   : > { %v5695_v63 = vadd.f32 1.0, %v7131_v62  ;;  %v5856_v62 = vsub.s32 0, %v5855_v61 }
0x2cbf   : > { %v7133_v0 = vpop.eup %7132 }
0x2cc0   : > { %v5694_v2 = vadd.f32 1.0, %v7133_v0  ;;  %v5697_v3 = vmul.f32 0.5, %v5695_v63  ;;  %v5852_v63 = vld [vmem:[%s7417_s20] sm:$0x3]  ;;  %v5860_v0 = vsub.s32 1, %v5855_v61 }
0x2cc2   : > { %v5696_v6 = vmul.f32 0.5, %v5694_v2  ;;  %v5699_v24 = vmul.f32 %v5697_v3, %v5679_v16  ;;  %v5857_v2 = vrot.slane %v5852_v63, %v5856_v62  ;;  %v5861_v3 = vrot.slane %v5852_v63, %v5860_v0 }
0x2cc4   : > { %v5698_v8 = vmul.f32 %v5696_v6, %v5674_v54  ;;  %v6304_v54 = vld [vmem:[%s8274_s5] ss:$0 sm:$0xff] }
0x2cc6   : > { %6925 = vmatprep.mubr.f32.mxu1 %v5698_v8 }
0x2cc7   : > { %6926 = vmatmul.mubr.f32.vlgmr.msra.gmra.mxu1 %v5699_v24 }
0x2d87   : > { %v6927_v14 = vpop.f32.mrf.mxu1 }
0x2d88   : > { %v5795_v50 = vadd.f32 %v6927_v14, %v6303_v13 }
0x2d89   : > { %v5789_v5 = vpop.f32.mrf.mxu1 }
0x2d8a   : > { %v5799_v15 = vadd.f32 %v5795_v50, %v8084_v52  ;;  %v5790_v19 = vadd.f32 %v6303_v13, %v5789_v5 }
0x2d8c   : > { %v5798_v20 = vadd.f32 %v5790_v19, %v8087_v53  ;;  %v5805_v21 = vsel %vm1545_vm5, %v5799_v15, 0.0 }
0x2d8d   : > { %5806 = vadd.xlane.f32.xlu1 %v5805_v21 }
0x2d8e   : > { %v5802_v4 = vsel %vm1545_vm5, %v5798_v20, 0.0 }
0x2d8f   : > { %5803 = vadd.xlane.f32.xlu0 %v5802_v4 }
0x2e16   : > { %v5807_v18 = vpop.xlane.xlu1 %5806 }
0x2e17   : > { %v5809_v23 = vmul.f32 0.03125, %v5807_v18 }
0x2e18   : > { %v5804_v17 = vpop.xlane.xlu0 %5803 }
0x2e19   : > { %v5811_v25 = vsub.f32 %v5799_v15, %v5809_v23  ;;  %v5808_v27 = vmul.f32 0.03125, %v5804_v17  ;;  %v7146_v15 = vld [vmem:[%s7442_s10] sm:$0xff]  ;;  %v7148_v17 = vld [vmem:[%s7442_s10 + $0x10] sm:$0xff] }
0x2e1b   : > { %v5810_v52 = vsub.f32 %v5798_v20, %v5808_v27  ;;  %v5813_v29 = vmul.f32 %v5811_v25, %v5811_v25  ;;  %v7147_v20 = vld [vmem:[%s7442_s10 + $0x8] sm:$0xff] }
0x2e1d   : > { %v5817_v53 = vsel %vm1545_vm5, %v5813_v29, 0.0  ;;  %v5812_v30 = vmul.f32 %v5810_v52, %v5810_v52 }
0x2e1e   : > { %5818 = vadd.xlane.f32.xlu1 %v5817_v53  ;;  %v7149_v53 = vld [vmem:[%s7442_s10 + $0x18] sm:$0xff] }
0x2e1f   : > { %v5814_v31 = vsel %vm1545_vm5, %v5812_v30, 0.0 }
0x2e20   : > { %5815 = vadd.xlane.f32.xlu0 %v5814_v31 }
0x2e22   : > { %5985 = vadd.xlane.f32.xlu1 %v5984_v60 }
0x2ea7   : > { %v5819_v12 = vpop.xlane.xlu1 %5818 }
0x2ea8   : > { %v5821_v39 = vmul.f32 0.03125, %v5819_v12 }
0x2ea9   : > { %v5816_v40 = vpop.xlane.xlu0 %5815 }
0x2eaa   : > { %v5823_v45 = vadd.f32 1e-05, %v5821_v39  ;;  %v5820_v46 = vmul.f32 0.03125, %v5816_v40 }
0x2eab   : > { %v5986_v39 = vpop.xlane.xlu1 %5985 }
0x2eac   : > { %7134 = vrsqrt.f32 %v5823_v45  ;;  %v5822_v58 = vadd.f32 1e-05, %v5820_v46  ;;  %v5987_v40 = vrot.slane %v5986_v39, 4 }
0x2eae   : > { %7136 = vrsqrt.f32 %v5822_v58  ;;  %v5988_v45 = vadd.f32 %v5987_v40, %v5986_v39 }
0x2eb0   : > { %v5989_v46 = vrot.slane %v5988_v45, 2 }
0x2eb9   : > { %v7135_v48 = vpop.eup %7134 }
0x2eba   : > { %v5827_v7 = vmul.f32 %v7135_v48, %v5811_v25 }
0x2ebb   : > { %v7137_v16 = vpop.eup %7136 }
0x2ebc   : > { %v5826_v57 = vmul.f32 %v7137_v16, %v5810_v52  ;;  %v5835_v56 = vmul.f32 %v6304_v54, %v5827_v7  ;;  %v5990_v16 = vadd.f32 %v5989_v46, %v5988_v45 }
0x2ebe   : > { %v5834_v49 = vmul.f32 %v6304_v54, %v5826_v57  ;;  %v5843_v44 = vadd.f32 %v6305_v55, %v5835_v56  ;;  %v5991_v54 = vrot.slane %v5990_v16, 1 }
0x2ec0   : > { %v5842_v26 = vadd.f32 %v6305_v55, %v5834_v49  ;;  %v5992_v55 = vadd.f32 %v5991_v54, %v5990_v16 }
0x2ec2   : > { %6306 = vmatmul.mubr.msk.f32.vlgmr.msra.gmra.mxu0 %vm1545_vm5, %v5842_v26 }
0x2ec3   : > { %5940 = vmatprep.mubr.f32.mxu0 %v7199_v1 }
0x2ec6   : > { %6307 = vmatmul.mubr.msk.f32.gmra.mxu0 %vm1545_vm5, %v5843_v44 }
0x2f82   : > { %v5936_v1 = vpop.f32.mrf.mxu0 }
0x2f83   : > { %v5937_v6 = vadd.f32 %v5936_v1, %v5857_v2 }
0x2f84   : > { %v5938_v8 = vpop.f32.mrf.mxu0 }
0x2f85   : > { %v5947_v24 = vmul.f32 1.442695, %v5937_v6  ;;  %v5939_v41 = vadd.f32 %v5938_v8, %v5861_v3  ;;  %v5955_v19 = vmul.f32 %v7146_v15, %v5937_v6 }
0x2f86   : > { %v5942_v42 = vpop.f32.mrf.mxu0 }
0x2f87   : > { %7138 = vpow2.f32 %v5947_v24  ;;  %v5949_v43 = vmul.f32 1.442695, %v5939_v41  ;;  %v5943_v47 = vadd.f32 %v5942_v42, %v5857_v2  ;;  %v5956_v21 = vmul.f32 %v7147_v20, %v5939_v41 }
0x2f88   : > { %v5944_v13 = vpop.f32.mrf.mxu0 }
0x2f89   : > { %7140 = vpow2.f32 %v5949_v43  ;;  %v5951_v10 = vmul.f32 1.442695, %v5943_v47  ;;  %v5945_v14 = vadd.f32 %v5944_v13, %v5861_v3  ;;  %v5957_v25 = vmul.f32 %v7148_v17, %v5943_v47 }
0x2f8b   : > { %7142 = vpow2.f32 %v5951_v10  ;;  %v5953_v50 = vmul.f32 1.442695, %v5945_v14  ;;  %v5958_v30 = vmul.f32 %v7149_v53, %v5945_v14 }
0x2f8d   : > { %7144 = vpow2.f32 %v5953_v50 }
0x2f94   : > { %v7139_v5 = vpop.eup %7138 }
0x2f95   : > { %v5959_v18 = vsub.f32 %v7139_v5, %v5955_v19 }
0x2f96   : > { %v7141_v4 = vpop.eup %7140 }
0x2f97   : > { %v5960_v23 = vsub.f32 %v7141_v4, %v5956_v21  ;;  %v5963_v32 = vmul.f32 %v5959_v18, %v7927_v22 }
0x2f98   : > { %v7143_v27 = vpop.eup %7142 }
0x2f99   : > { %v5964_v52 = vmul.f32 %v5960_v23, %v7927_v22  ;;  %v5961_v29 = vsub.f32 %v7143_v27, %v5957_v25 }
0x2f9a   : > { %v7145_v31 = vpop.eup %7144 }
0x2f9b   : > { %v5967_v33 = vsel %vm1455_vm4, %v5964_v52, 0.0  ;;  %v5965_v34 = vmul.f32 %v5961_v29, %v7924_v51  ;;  %v5962_v35 = vsub.f32 %v7145_v31, %v5958_v30 }
0x2f9c   : > { %v5968_v36 = vadd.f32 %v5967_v33, %v5963_v32 }
0x2f9d   : > { %v5966_v37 = vmul.f32 %v5962_v35, %v7924_v51 }
0x2f9e   : > { %v5969_v38 = vadd.f32 %v5968_v36, %v5965_v34 }
0x2f9f   : > { %v5970_v9 = vsel %vm1455_vm4, %v5966_v37, 0.0 }
0x2fa0   : > { %v5971_v12 = vadd.f32 %v5970_v9, %v5969_v38 }
0x2fa2   : > { %5972 = vadd.xlane.f32.xlu0 %v5971_v12 }
0x302b   : > { %v5973_v58 = vpop.xlane.xlu0 %5972 }
0x302c   : > { %v5974_v48 = vrot.slane %v5973_v58, 4 }
0x302e   : > { %v5975_v22 = vadd.f32 %v5974_v48, %v5973_v58 }
0x3030   : > { %v5976_v57 = vrot.slane %v5975_v22, 2 }
0x3032   : > { %v5977_v7 = vadd.f32 %v5976_v57, %v5975_v22 }
0x3034   : > { %v5978_v49 = vrot.slane %v5977_v7, 1 }
0x3036   : > { %v5979_v51 = vadd.f32 %v5978_v49, %v5977_v7 }
0x3038   : > { %6928 = vpush %v5979_v51 }
0x3039   : > { %6930 = vpush %v5992_v55 }
0x3069   : > { %s6929_s10 = spop %6928 }
0x306a   : > { %v5998_v26 = vstv %s6929_s10  ;;  %s6931_s3 = spop %6930 }
0x306b   : > { %v5996_v56 = vstv %s6931_s3 }
0x306c   : > { %v5997_v44 = vsel %vm5995_vm1, %v5996_v56, 0.0 }
0x306d   : > { %v5999_v28 = vsel %vm5994_vm2, %v5998_v26, %v5997_v44 }
0x306e   : > { %6000 = vst [vmem:[%s1246_s15] sm:$0x1] %v5999_v28 }
0x306f PF: > { %s91_s28 = sadd.s32 1, %s7156_s28  }
0x3070   : > { %p88_p4 = scmp.ge.s32.totalorder %s91_s28, 4  }
0x3072   :  { %90 = sbr.rel (!%p88_p4) target bundleno = 79 (0x4f), region = 268 }

</bundles_post_ra>
